<compile_context>
chip_gen: v7x
topology: tpu7x:2x2x1
jax: 0.10.0
libtpu: 0.0.40
codegen_flags: <defaults>
</compile_context>

<pallas_src>
import functools

import jax
import jax.numpy as jnp
from jax.experimental import pallas as pl
from jax.experimental.pallas import tpu as pltpu

_LRELU_SLOPE = 0.2
_BN_EPS = 1e-5
_C1 = 64      # conv1 output channels
_C2 = 128     # conv2 output channels
_FC1 = 1024   # fc1 hidden width


def _leaky(x):
    return jnp.where(x > 0, x, _LRELU_SLOPE * x)


def _bn(y, gamma, beta):
    # Training-mode batch statistics (biased variance), single pass.
    mean = jnp.mean(y, axis=0, keepdims=True)
    msq = jnp.mean(y * y, axis=0, keepdims=True)
    var = jnp.maximum(msq - mean * mean, 0.0)
    return (y - mean) * jax.lax.rsqrt(var + _BN_EPS) * gamma + beta


def _fused_disc_kernel(
    cols1_ref, w1_ref, b1_ref,
    w2_ref, b2_ref, g2_ref, be2_ref,
    wf1_ref, bf1_ref, gf_ref, bef_ref,
    wf2_ref, bf2_ref,
    o_ref,
    y1s_ref, lhs_ref, acc_ref,
    *, N, U, SPC):
    """N: batch, U = input_size // 4, SPC: spatial positions per fc1 K-chunk."""
    k = pl.program_id(0)
    nk = pl.num_programs(0)
    SG = U + 1            # zero-padded phase sub-grid extent for conv2
    S = U * U             # conv2 output spatial positions
    GB = U * U * N        # rows per conv1 phase group == conv2 output rows

    # ------------------- step 0: conv1 -> conv2 -> BN2d ------------------- #
    @pl.when(k == 0)
    def _conv_stage():
        # conv1: phase-grouped im2col matmul + bias + LeakyReLU
        y1 = jnp.dot(cols1_ref[...], w1_ref[...],
                     preferred_element_type=jnp.float32)
        y1 = _leaky(y1 + b1_ref[...])          # (4*U*U*N, C1), rows (p,q,u,v,n)

        # Scatter conv1 output into a zero-padded, phase-split sub-grid:
        # y1s[(1-p)*2+(1-q), u+p, (v+q)*N + n, c] = y1[((p*2+q)*U*U+u*U+v)*N+n, c]
        # One block store per phase group; untouched border rows stay zero (pad).
        y1s_ref[...] = jnp.zeros_like(y1s_ref)
        for p in range(2):
            for q in range(2):
                g = p * 2 + q
                ph = (1 - p) * 2 + (1 - q)
                blk = y1[g * GB:(g + 1) * GB, :].reshape(U, U * N, _C1)
                y1s_ref[ph, p:p + U, q * N:q * N + U * N, :] = blk

        # conv2 as 16 shifted tap-matmuls, f32 accumulation in registers.
        acc2 = jnp.zeros((GB, _C2), jnp.float32)
        for kh in range(4):
            for kw in range(4):
                ph = (kh % 2) * 2 + (kw % 2)
                t = kh * 4 + kw
                piece = y1s_ref[ph, kh // 2:kh // 2 + U,
                                (kw // 2) * N:(kw // 2) * N + U * N, :]
                piece = piece.reshape(GB, _C1).astype(jnp.bfloat16)
                acc2 = acc2 + jnp.dot(piece, w2_ref[t * _C1:(t + 1) * _C1, :],
                                      preferred_element_type=jnp.float32)

        # BatchNorm2d (stats over N*H*W rows) + LeakyReLU.  Rows are (s, n).
        y2 = _leaky(_bn(acc2 + b2_ref[...], g2_ref[...], be2_ref[...]))
        y2 = y2.astype(jnp.bfloat16)

        # Repack into fc1-chunked lhs: lhs[s // SPC, n, (s % SPC)*C2 + c].
        # Together with the offline fc1 row permutation this reproduces the
        # PyTorch NCHW flatten exactly with zero runtime transposes.
        for s in range(S):
            lhs_ref[s // SPC, :, (s % SPC) * _C2:(s % SPC + 1) * _C2] = (
                y2[s * N:(s + 1) * N, :])

        acc_ref[...] = jnp.zeros_like(acc_ref)

    # --------- every step: fc1 partial product for weight chunk k ---------- #
    acc_ref[...] += jnp.dot(lhs_ref[k], wf1_ref[...],
                            preferred_element_type=jnp.float32)

    # ---------------- last step: BN1d + LeakyReLU + fc2 -------------------- #
    @pl.when(k == nk - 1)
    def _head_stage():
        y3 = _leaky(_bn(acc_ref[...] + bf1_ref[...], gf_ref[...], bef_ref[...]))
        o_ref[...] = jnp.dot(y3.astype(jnp.bfloat16), wf2_ref[...],
                             preferred_element_type=jnp.float32) + bf2_ref[...]


# ------------------------------ JAX wrapper -------------------------------- #
def _build_cols1(x_nhwc, k=4):
    """Phase-grouped im2col for conv1 (kernel 4, stride 2, pad 1).

    Row order: ((p*2+q)*U*V + u*V + v)*N + n for output (ho,wo)=(2u+p, 2v+q).
    Column order: (kh*4+kw)*C + c_in.
    """
    N, H, W, C = x_nhwc.shape
    U, V = H // 4, W // 4
    xp = jnp.pad(x_nhwc, ((0, 0), (1, 1), (1, 1), (0, 0)))
    groups = []
    for p in range(2):
        for q in range(2):
            taps = []
            for kh in range(k):
                for kw in range(k):
                    sub = xp[:, 2 * p + kh: 2 * p + kh + 4 * U: 4,
                             2 * q + kw: 2 * q + kw + 4 * V: 4, :]   # (N,U,V,C)
                    taps.append(sub)
            grp = jnp.stack(taps, axis=3)                  # (N, U, V, 16, C)
            grp = jnp.transpose(grp, (1, 2, 0, 3, 4))      # (U, V, N, 16, C)
            groups.append(grp.reshape(U * V * N, k * k * C))
    return jnp.concatenate(groups, axis=0)                 # (4*U*V*N, 16*C)


def init_params(key, input_dim, input_size, output_dim):
    inp = input_size // 4
    S = inp * inp
    ks = jax.random.split(key, 4)
    std = 0.02
    # PyTorch-shaped weights: conv [out, in, kh, kw]; linear [out, in]; zero bias.
    conv1_w = jax.random.normal(ks[0], (_C1, input_dim, 4, 4), jnp.float32) * std
    conv2_w = jax.random.normal(ks[1], (_C2, _C1, 4, 4), jnp.float32) * std
    fc1_w = jax.random.normal(ks[2], (_FC1, _C2 * S), jnp.float32) * std
    fc2_w = jax.random.normal(ks[3], (output_dim, _FC1), jnp.float32) * std

    # Conv weights -> [(kh*4+kw)*c_in, c_out], bf16 for MXU / weight streaming.
    w1 = conv1_w.transpose(2, 3, 1, 0).reshape(16 * input_dim, _C1).astype(jnp.bfloat16)
    w2 = conv2_w.transpose(2, 3, 1, 0).reshape(16 * _C1, _C2).astype(jnp.bfloat16)
    # fc1 rows permuted: PyTorch NCHW flatten index c*S + s  ->  kernel order s*C2 + c.
    wf1 = fc1_w.T.reshape(_C2, S, _FC1).transpose(1, 0, 2).reshape(_C2 * S, _FC1)
    wf1 = wf1.astype(jnp.bfloat16)
    # fc2 columns zero-padded to 128 for a lane-dense output store.
    wf2 = jnp.zeros((_FC1, 128), jnp.float32).at[:, :output_dim].set(fc2_w.T)
    wf2 = wf2.astype(jnp.bfloat16)

    return {
        "w1": w1, "b1": jnp.zeros((1, _C1), jnp.float32),
        "w2": w2, "b2": jnp.zeros((1, _C2), jnp.float32),
        "g2": jnp.ones((1, _C2), jnp.float32), "be2": jnp.zeros((1, _C2), jnp.float32),
        "wf1": wf1, "bf1": jnp.zeros((1, _FC1), jnp.float32),
        "gf": jnp.ones((1, _FC1), jnp.float32), "bef": jnp.zeros((1, _FC1), jnp.float32),
        "wf2": wf2, "bf2": jnp.zeros((1, 128), jnp.float32),
    }


@functools.partial(jax.jit, static_argnames=("input_size", "output_dim"))
def discriminator_forward(params, x_nchw, *, input_size, output_dim):
    N = x_nchw.shape[0]
    U = input_size // 4
    S = U * U
    SG = U + 1

    # fc1 K-chunking: SPC spatial positions (SPC*C2 weight rows) per grid step.
    SPC = 4 if S % 4 == 0 else (2 if S % 2 == 0 else 1)
    CK = SPC * _C2
    NK = S // SPC

    x_nhwc = jnp.transpose(x_nchw, (0, 2, 3, 1)).astype(jnp.float32)
    cols1 = _build_cols1(x_nhwc).astype(jnp.bfloat16)        # (4*U*U*N, 16*Cin)

    operands = (cols1,
                params["w1"], params["b1"],
                params["w2"], params["b2"], params["g2"], params["be2"],
                params["wf1"], params["bf1"], params["gf"], params["bef"],
                params["wf2"], params["bf2"])

    def _full(arr):
        nd = arr.ndim
        return pl.BlockSpec(arr.shape, lambda k, _nd=nd: (0,) * _nd)

    in_specs = [
        _full(cols1),
        _full(params["w1"]), _full(params["b1"]),
        _full(params["w2"]), _full(params["b2"]), _full(params["g2"]), _full(params["be2"]),
        pl.BlockSpec((CK, _FC1), lambda k: (k, 0)),     # streamed fc1 weight chunks
        _full(params["bf1"]), _full(params["gf"]), _full(params["bef"]),
        _full(params["wf2"]), _full(params["bf2"]),
    ]

    kernel = functools.partial(_fused_disc_kernel, N=N, U=U, SPC=SPC)

    out = pl.pallas_call(
        kernel,
        grid=(NK,),
        out_shape=jax.ShapeDtypeStruct((N, 128), jnp.float32),
        in_specs=in_specs,
        out_specs=pl.BlockSpec((N, 128), lambda k: (0, 0)),
        scratch_shapes=[
            pltpu.VMEM((4, SG, SG * N, _C1), jnp.float32),   # phase-split padded conv1 out
            pltpu.VMEM((NK, N, CK), jnp.bfloat16),           # fc1 lhs, chunked along K
            pltpu.VMEM((N, _FC1), jnp.float32),              # fc1 accumulator
        ],
        compiler_params=pltpu.CompilerParams(
            dimension_semantics=("arbitrary",),
            vmem_limit_bytes=32 * 1024 * 1024),
    )(*operands)

    return out[:, :output_dim]


if __name__ == "__main__":
    input_dim, input_size, output_dim = 4, 16, 1
    batch = 2

    key = jax.random.PRNGKey(0)
    kp, kx = jax.random.split(key)
    params = init_params(kp, input_dim, input_size, output_dim)

    # TODO(synk): weight persistence (torch.save/load of Discriminator_weight.pt)
    # is host-side I/O with no Pallas equivalent; weights are initialized in-script.
    x = jax.random.normal(kx, (batch, input_dim, input_size, input_size), jnp.float32)

    out = discriminator_forward(params, x, input_size=input_size, output_dim=output_dim)
    jax.block_until_ready(out)
    assert out.shape == (batch, output_dim)
    print("KERNEL_OK")
</pallas_src>

<mosaic_0001>
module attributes {stable_mosaic.version = 11 : i64} {
  func.func @_fused_disc_kernel(%arg0: i32, %arg1: memref<128x64xbf16, #tpu.memory_space<vmem>>, %arg2: memref<64x64xbf16, #tpu.memory_space<vmem>>, %arg3: memref<1x64xf32, #tpu.memory_space<vmem>>, %arg4: memref<1024x128xbf16, #tpu.memory_space<vmem>>, %arg5: memref<1x128xf32, #tpu.memory_space<vmem>>, %arg6: memref<1x128xf32, #tpu.memory_space<vmem>>, %arg7: memref<1x128xf32, #tpu.memory_space<vmem>>, %arg8: memref<512x1024xbf16, #tpu.memory_space<vmem>>, %arg9: memref<1x1024xf32, #tpu.memory_space<vmem>>, %arg10: memref<1x1024xf32, #tpu.memory_space<vmem>>, %arg11: memref<1x1024xf32, #tpu.memory_space<vmem>>, %arg12: memref<1024x128xbf16, #tpu.memory_space<vmem>>, %arg13: memref<1x128xf32, #tpu.memory_space<vmem>>, %arg14: memref<2x128xf32, #tpu.memory_space<vmem>>, %arg15: memref<4x5x10x64xf32, #tpu.memory_space<vmem>>, %arg16: memref<4x2x512xbf16, #tpu.memory_space<vmem>>, %arg17: memref<2x1024xf32, #tpu.memory_space<vmem>>) attributes {dimension_semantics = [#tpu.dimension_semantics<arbitrary>], iteration_bounds = array<i64: 4>, scalar_prefetch = 0 : i64, scratch_operands = 3 : i64, tpu.core_type = #tpu.core_type<tc>, window_params = [{pipeline_mode = #tpu.pipeline_mode<synchronous>, transform_indices = @transform_0, window_bounds = array<i64: 128, 64>}, {pipeline_mode = #tpu.pipeline_mode<synchronous>, transform_indices = @transform_1, window_bounds = array<i64: 64, 64>}, {pipeline_mode = #tpu.pipeline_mode<synchronous>, transform_indices = @transform_2, window_bounds = array<i64: 1, 64>}, {pipeline_mode = #tpu.pipeline_mode<synchronous>, transform_indices = @transform_3, window_bounds = array<i64: 1024, 128>}, {pipeline_mode = #tpu.pipeline_mode<synchronous>, transform_indices = @transform_4, window_bounds = array<i64: 1, 128>}, {pipeline_mode = #tpu.pipeline_mode<synchronous>, transform_indices = @transform_5, window_bounds = array<i64: 1, 128>}, {pipeline_mode = #tpu.pipeline_mode<synchronous>, transform_indices = @transform_6, window_bounds = array<i64: 1, 128>}, {transform_indices = @transform_7, window_bounds = array<i64: 512, 1024>}, {pipeline_mode = #tpu.pipeline_mode<synchronous>, transform_indices = @transform_8, window_bounds = array<i64: 1, 1024>}, {pipeline_mode = #tpu.pipeline_mode<synchronous>, transform_indices = @transform_9, window_bounds = array<i64: 1, 1024>}, {pipeline_mode = #tpu.pipeline_mode<synchronous>, transform_indices = @transform_10, window_bounds = array<i64: 1, 1024>}, {pipeline_mode = #tpu.pipeline_mode<synchronous>, transform_indices = @transform_11, window_bounds = array<i64: 1024, 128>}, {pipeline_mode = #tpu.pipeline_mode<synchronous>, transform_indices = @transform_12, window_bounds = array<i64: 1, 128>}, {pipeline_mode = #tpu.pipeline_mode<synchronous>, transform_indices = @transform_13, window_bounds = array<i64: 2, 128>}]} {
    %c0_i32 = arith.constant 0 : i32
    %0 = arith.cmpi eq, %arg0, %c0_i32 : i32
    %1 = arith.extui %0 : i1 to i32
    %c0_i32_0 = arith.constant 0 : i32
    %2 = arith.cmpi ne, %1, %c0_i32_0 : i32
    scf.if %2 {
      %c0_9 = arith.constant 0 : index
      %c0_10 = arith.constant 0 : index
      %14 = vector.load %arg1[%c0_9, %c0_10] : memref<128x64xbf16, #tpu.memory_space<vmem>>, vector<128x64xbf16>
      %c0_11 = arith.constant 0 : index
      %c0_12 = arith.constant 0 : index
      %15 = vector.load %arg2[%c0_11, %c0_12] : memref<64x64xbf16, #tpu.memory_space<vmem>>, vector<64x64xbf16>
      %cst_13 = arith.constant dense<0.000000e+00> : vector<128x64xf32>
      %16 = tpu.matmul %14, %15, %cst_13 {dimension_numbers = #tpu.dot_dimension_numbers<[1], [0], [0], [1], [0, 0, 1, 1], [], []>} : vector<128x64xbf16>, vector<64x64xbf16>, vector<128x64xf32> -> vector<128x64xf32>
      %c0_14 = arith.constant 0 : index
      %c0_15 = arith.constant 0 : index
      %17 = vector.load %arg3[%c0_14, %c0_15] : memref<1x64xf32, #tpu.memory_space<vmem>>, vector<1x64xf32>
      %18 = vector.broadcast %17 : vector<1x64xf32> to vector<128x64xf32>
      %19 = arith.addf %16, %18 : vector<128x64xf32>
      %cst_16 = arith.constant 0.000000e+00 : f32
      %20 = vector.broadcast %cst_16 : f32 to vector<128x64xf32>
      %21 = arith.cmpf ogt, %19, %20 : vector<128x64xf32>
      %cst_17 = arith.constant 2.000000e-01 : f32
      %22 = vector.broadcast %cst_17 : f32 to vector<128x64xf32>
      %23 = arith.mulf %22, %19 : vector<128x64xf32>
      %24 = arith.select %21, %19, %23 : vector<128x64xi1>, vector<128x64xf32>
      %cst_18 = arith.constant 0.000000e+00 : f32
      %25 = vector.broadcast %cst_18 : f32 to vector<4x5x10x64xf32>
      %c0_19 = arith.constant 0 : index
      %c0_20 = arith.constant 0 : index
      %c0_21 = arith.constant 0 : index
      %c0_22 = arith.constant 0 : index
      %26 = vector.load %arg15[%c0_19, %c0_20, %c0_21, %c0_22] : memref<4x5x10x64xf32, #tpu.memory_space<vmem>>, vector<4x5x10x64xf32>
      tpu.vector_store %arg15[%c0_19, %c0_20, %c0_21, %c0_22], %25 {strides = array<i32>} : memref<4x5x10x64xf32, #tpu.memory_space<vmem>>, vector<4x5x10x64xf32>,
      %27 = vector.extract_strided_slice %24 {offsets = [0, 0], sizes = [32, 64], strides = [1, 1]} : vector<128x64xf32> to vector<32x64xf32>
      %28 = vector.shape_cast %27 : vector<32x64xf32> to vector<4x8x64xf32>
      %c3 = arith.constant 3 : index
      %c0_23 = arith.constant 0 : index
      %c0_24 = arith.constant 0 : index
      %c0_25 = arith.constant 0 : index
      %29 = vector.load %arg15[%c3, %c0_23, %c0_24, %c0_25] : memref<4x5x10x64xf32, #tpu.memory_space<vmem>>, vector<1x4x8x64xf32>
      %30 = vector.shape_cast %29 : vector<1x4x8x64xf32> to vector<4x8x64xf32>
      %31 = vector.shape_cast %28 : vector<4x8x64xf32> to vector<1x4x8x64xf32>
      tpu.vector_store %arg15[%c3, %c0_23, %c0_24, %c0_25], %31 {strides = array<i32>} : memref<4x5x10x64xf32, #tpu.memory_space<vmem>>, vector<1x4x8x64xf32>,
      %32 = vector.extract_strided_slice %24 {offsets = [32, 0], sizes = [32, 64], strides = [1, 1]} : vector<128x64xf32> to vector<32x64xf32>
      %33 = vector.shape_cast %32 : vector<32x64xf32> to vector<4x8x64xf32>
      %c2 = arith.constant 2 : index
      %c0_26 = arith.constant 0 : index
      %c2_27 = arith.constant 2 : index
      %c0_28 = arith.constant 0 : index
      %34 = vector.load %arg15[%c2, %c0_26, %c2_27, %c0_28] : memref<4x5x10x64xf32, #tpu.memory_space<vmem>>, vector<1x4x8x64xf32>
      %35 = vector.shape_cast %34 : vector<1x4x8x64xf32> to vector<4x8x64xf32>
      %36 = vector.shape_cast %33 : vector<4x8x64xf32> to vector<1x4x8x64xf32>
      tpu.vector_store %arg15[%c2, %c0_26, %c2_27, %c0_28], %36 {strides = array<i32>} : memref<4x5x10x64xf32, #tpu.memory_space<vmem>>, vector<1x4x8x64xf32>,
      %37 = vector.extract_strided_slice %24 {offsets = [64, 0], sizes = [32, 64], strides = [1, 1]} : vector<128x64xf32> to vector<32x64xf32>
      %38 = vector.shape_cast %37 : vector<32x64xf32> to vector<4x8x64xf32>
      %c1 = arith.constant 1 : index
      %c1_29 = arith.constant 1 : index
      %c0_30 = arith.constant 0 : index
      %c0_31 = arith.constant 0 : index
      %39 = vector.load %arg15[%c1, %c1_29, %c0_30, %c0_31] : memref<4x5x10x64xf32, #tpu.memory_space<vmem>>, vector<1x4x8x64xf32>
      %40 = vector.shape_cast %39 : vector<1x4x8x64xf32> to vector<4x8x64xf32>
      %41 = vector.shape_cast %38 : vector<4x8x64xf32> to vector<1x4x8x64xf32>
      tpu.vector_store %arg15[%c1, %c1_29, %c0_30, %c0_31], %41 {strides = array<i32>} : memref<4x5x10x64xf32, #tpu.memory_space<vmem>>, vector<1x4x8x64xf32>,
      %42 = vector.extract_strided_slice %24 {offsets = [96, 0], sizes = [32, 64], strides = [1, 1]} : vector<128x64xf32> to vector<32x64xf32>
      %43 = vector.shape_cast %42 : vector<32x64xf32> to vector<4x8x64xf32>
      %c0_32 = arith.constant 0 : index
      %c1_33 = arith.constant 1 : index
      %c2_34 = arith.constant 2 : index
      %c0_35 = arith.constant 0 : index
      %44 = vector.load %arg15[%c0_32, %c1_33, %c2_34, %c0_35] : memref<4x5x10x64xf32, #tpu.memory_space<vmem>>, vector<1x4x8x64xf32>
      %45 = vector.shape_cast %44 : vector<1x4x8x64xf32> to vector<4x8x64xf32>
      %46 = vector.shape_cast %43 : vector<4x8x64xf32> to vector<1x4x8x64xf32>
      tpu.vector_store %arg15[%c0_32, %c1_33, %c2_34, %c0_35], %46 {strides = array<i32>} : memref<4x5x10x64xf32, #tpu.memory_space<vmem>>, vector<1x4x8x64xf32>,
      %cst_36 = arith.constant 0.000000e+00 : f32
      %47 = vector.broadcast %cst_36 : f32 to vector<32x128xf32>
      %c0_37 = arith.constant 0 : index
      %c0_38 = arith.constant 0 : index
      %c0_39 = arith.constant 0 : index
      %c0_40 = arith.constant 0 : index
      %48 = vector.load %arg15[%c0_37, %c0_38, %c0_39, %c0_40] : memref<4x5x10x64xf32, #tpu.memory_space<vmem>>, vector<1x4x8x64xf32>
      %49 = vector.shape_cast %48 : vector<1x4x8x64xf32> to vector<4x8x64xf32>
      %50 = vector.shape_cast %49 : vector<4x8x64xf32> to vector<32x64xf32>
      %51 = arith.truncf %50 : vector<32x64xf32> to vector<32x64xbf16>
      %c0_41 = arith.constant 0 : index
      %c0_42 = arith.constant 0 : index
      %52 = vector.load %arg4[%c0_41, %c0_42] : memref<1024x128xbf16, #tpu.memory_space<vmem>>, vector<64x128xbf16>
      %cst_43 = arith.constant dense<0.000000e+00> : vector<32x128xf32>
      %53 = tpu.matmul %51, %52, %cst_43 {dimension_numbers = #tpu.dot_dimension_numbers<[1], [0], [0], [1], [0, 0, 1, 1], [], []>} : vector<32x64xbf16>, vector<64x128xbf16>, vector<32x128xf32> -> vector<32x128xf32>
      %54 = arith.addf %47, %53 : vector<32x128xf32>
      %c1_44 = arith.constant 1 : index
      %c0_45 = arith.constant 0 : index
      %c0_46 = arith.constant 0 : index
      %c0_47 = arith.constant 0 : index
      %55 = vector.load %arg15[%c1_44, %c0_45, %c0_46, %c0_47] : memref<4x5x10x64xf32, #tpu.memory_space<vmem>>, vector<1x4x8x64xf32>
      %56 = vector.shape_cast %55 : vector<1x4x8x64xf32> to vector<4x8x64xf32>
      %57 = vector.shape_cast %56 : vector<4x8x64xf32> to vector<32x64xf32>
      %58 = arith.truncf %57 : vector<32x64xf32> to vector<32x64xbf16>
      %c64 = arith.constant 64 : index
      %c0_48 = arith.constant 0 : index
      %59 = vector.load %arg4[%c64, %c0_48] : memref<1024x128xbf16, #tpu.memory_space<vmem>>, vector<64x128xbf16>
      %cst_49 = arith.constant dense<0.000000e+00> : vector<32x128xf32>
      %60 = tpu.matmul %58, %59, %cst_49 {dimension_numbers = #tpu.dot_dimension_numbers<[1], [0], [0], [1], [0, 0, 1, 1], [], []>} : vector<32x64xbf16>, vector<64x128xbf16>, vector<32x128xf32> -> vector<32x128xf32>
      %61 = arith.addf %54, %60 : vector<32x128xf32>
      %c0_50 = arith.constant 0 : index
      %c0_51 = arith.constant 0 : index
      %c2_52 = arith.constant 2 : index
      %c0_53 = arith.constant 0 : index
      %62 = vector.load %arg15[%c0_50, %c0_51, %c2_52, %c0_53] : memref<4x5x10x64xf32, #tpu.memory_space<vmem>>, vector<1x4x8x64xf32>
      %63 = vector.shape_cast %62 : vector<1x4x8x64xf32> to vector<4x8x64xf32>
      %64 = vector.shape_cast %63 : vector<4x8x64xf32> to vector<32x64xf32>
      %65 = arith.truncf %64 : vector<32x64xf32> to vector<32x64xbf16>
      %c128 = arith.constant 128 : index
      %c0_54 = arith.constant 0 : index
      %66 = vector.load %arg4[%c128, %c0_54] : memref<1024x128xbf16, #tpu.memory_space<vmem>>, vector<64x128xbf16>
      %cst_55 = arith.constant dense<0.000000e+00> : vector<32x128xf32>
      %67 = tpu.matmul %65, %66, %cst_55 {dimension_numbers = #tpu.dot_dimension_numbers<[1], [0], [0], [1], [0, 0, 1, 1], [], []>} : vector<32x64xbf16>, vector<64x128xbf16>, vector<32x128xf32> -> vector<32x128xf32>
      %68 = arith.addf %61, %67 : vector<32x128xf32>
      %c1_56 = arith.constant 1 : index
      %c0_57 = arith.constant 0 : index
      %c2_58 = arith.constant 2 : index
      %c0_59 = arith.constant 0 : index
      %69 = vector.load %arg15[%c1_56, %c0_57, %c2_58, %c0_59] : memref<4x5x10x64xf32, #tpu.memory_space<vmem>>, vector<1x4x8x64xf32>
      %70 = vector.shape_cast %69 : vector<1x4x8x64xf32> to vector<4x8x64xf32>
      %71 = vector.shape_cast %70 : vector<4x8x64xf32> to vector<32x64xf32>
      %72 = arith.truncf %71 : vector<32x64xf32> to vector<32x64xbf16>
      %c192 = arith.constant 192 : index
      %c0_60 = arith.constant 0 : index
      %73 = vector.load %arg4[%c192, %c0_60] : memref<1024x128xbf16, #tpu.memory_space<vmem>>, vector<64x128xbf16>
      %cst_61 = arith.constant dense<0.000000e+00> : vector<32x128xf32>
      %74 = tpu.matmul %72, %73, %cst_61 {dimension_numbers = #tpu.dot_dimension_numbers<[1], [0], [0], [1], [0, 0, 1, 1], [], []>} : vector<32x64xbf16>, vector<64x128xbf16>, vector<32x128xf32> -> vector<32x128xf32>
      %75 = arith.addf %68, %74 : vector<32x128xf32>
      %c2_62 = arith.constant 2 : index
      %c0_63 = arith.constant 0 : index
      %c0_64 = arith.constant 0 : index
      %c0_65 = arith.constant 0 : index
      %76 = vector.load %arg15[%c2_62, %c0_63, %c0_64, %c0_65] : memref<4x5x10x64xf32, #tpu.memory_space<vmem>>, vector<1x4x8x64xf32>
      %77 = vector.shape_cast %76 : vector<1x4x8x64xf32> to vector<4x8x64xf32>
      %78 = vector.shape_cast %77 : vector<4x8x64xf32> to vector<32x64xf32>
      %79 = arith.truncf %78 : vector<32x64xf32> to vector<32x64xbf16>
      %c256 = arith.constant 256 : index
      %c0_66 = arith.constant 0 : index
      %80 = vector.load %arg4[%c256, %c0_66] : memref<1024x128xbf16, #tpu.memory_space<vmem>>, vector<64x128xbf16>
      %cst_67 = arith.constant dense<0.000000e+00> : vector<32x128xf32>
      %81 = tpu.matmul %79, %80, %cst_67 {dimension_numbers = #tpu.dot_dimension_numbers<[1], [0], [0], [1], [0, 0, 1, 1], [], []>} : vector<32x64xbf16>, vector<64x128xbf16>, vector<32x128xf32> -> vector<32x128xf32>
      %82 = arith.addf %75, %81 : vector<32x128xf32>
      %c3_68 = arith.constant 3 : index
      %c0_69 = arith.constant 0 : index
      %c0_70 = arith.constant 0 : index
      %c0_71 = arith.constant 0 : index
      %83 = vector.load %arg15[%c3_68, %c0_69, %c0_70, %c0_71] : memref<4x5x10x64xf32, #tpu.memory_space<vmem>>, vector<1x4x8x64xf32>
      %84 = vector.shape_cast %83 : vector<1x4x8x64xf32> to vector<4x8x64xf32>
      %85 = vector.shape_cast %84 : vector<4x8x64xf32> to vector<32x64xf32>
      %86 = arith.truncf %85 : vector<32x64xf32> to vector<32x64xbf16>
      %c320 = arith.constant 320 : index
      %c0_72 = arith.constant 0 : index
      %87 = vector.load %arg4[%c320, %c0_72] : memref<1024x128xbf16, #tpu.memory_space<vmem>>, vector<64x128xbf16>
      %cst_73 = arith.constant dense<0.000000e+00> : vector<32x128xf32>
      %88 = tpu.matmul %86, %87, %cst_73 {dimension_numbers = #tpu.dot_dimension_numbers<[1], [0], [0], [1], [0, 0, 1, 1], [], []>} : vector<32x64xbf16>, vector<64x128xbf16>, vector<32x128xf32> -> vector<32x128xf32>
      %89 = arith.addf %82, %88 : vector<32x128xf32>
      %c2_74 = arith.constant 2 : index
      %c0_75 = arith.constant 0 : index
      %c2_76 = arith.constant 2 : index
      %c0_77 = arith.constant 0 : index
      %90 = vector.load %arg15[%c2_74, %c0_75, %c2_76, %c0_77] : memref<4x5x10x64xf32, #tpu.memory_space<vmem>>, vector<1x4x8x64xf32>
      %91 = vector.shape_cast %90 : vector<1x4x8x64xf32> to vector<4x8x64xf32>
      %92 = vector.shape_cast %91 : vector<4x8x64xf32> to vector<32x64xf32>
      %93 = arith.truncf %92 : vector<32x64xf32> to vector<32x64xbf16>
      %c384 = arith.constant 384 : index
      %c0_78 = arith.constant 0 : index
      %94 = vector.load %arg4[%c384, %c0_78] : memref<1024x128xbf16, #tpu.memory_space<vmem>>, vector<64x128xbf16>
      %cst_79 = arith.constant dense<0.000000e+00> : vector<32x128xf32>
      %95 = tpu.matmul %93, %94, %cst_79 {dimension_numbers = #tpu.dot_dimension_numbers<[1], [0], [0], [1], [0, 0, 1, 1], [], []>} : vector<32x64xbf16>, vector<64x128xbf16>, vector<32x128xf32> -> vector<32x128xf32>
      %96 = arith.addf %89, %95 : vector<32x128xf32>
      %c3_80 = arith.constant 3 : index
      %c0_81 = arith.constant 0 : index
      %c2_82 = arith.constant 2 : index
      %c0_83 = arith.constant 0 : index
      %97 = vector.load %arg15[%c3_80, %c0_81, %c2_82, %c0_83] : memref<4x5x10x64xf32, #tpu.memory_space<vmem>>, vector<1x4x8x64xf32>
      %98 = vector.shape_cast %97 : vector<1x4x8x64xf32> to vector<4x8x64xf32>
      %99 = vector.shape_cast %98 : vector<4x8x64xf32> to vector<32x64xf32>
      %100 = arith.truncf %99 : vector<32x64xf32> to vector<32x64xbf16>
      %c448 = arith.constant 448 : index
      %c0_84 = arith.constant 0 : index
      %101 = vector.load %arg4[%c448, %c0_84] : memref<1024x128xbf16, #tpu.memory_space<vmem>>, vector<64x128xbf16>
      %cst_85 = arith.constant dense<0.000000e+00> : vector<32x128xf32>
      %102 = tpu.matmul %100, %101, %cst_85 {dimension_numbers = #tpu.dot_dimension_numbers<[1], [0], [0], [1], [0, 0, 1, 1], [], []>} : vector<32x64xbf16>, vector<64x128xbf16>, vector<32x128xf32> -> vector<32x128xf32>
      %103 = arith.addf %96, %102 : vector<32x128xf32>
      %c0_86 = arith.constant 0 : index
      %c1_87 = arith.constant 1 : index
      %c0_88 = arith.constant 0 : index
      %c0_89 = arith.constant 0 : index
      %104 = vector.load %arg15[%c0_86, %c1_87, %c0_88, %c0_89] : memref<4x5x10x64xf32, #tpu.memory_space<vmem>>, vector<1x4x8x64xf32>
      %105 = vector.shape_cast %104 : vector<1x4x8x64xf32> to vector<4x8x64xf32>
      %106 = vector.shape_cast %105 : vector<4x8x64xf32> to vector<32x64xf32>
      %107 = arith.truncf %106 : vector<32x64xf32> to vector<32x64xbf16>
      %c512 = arith.constant 512 : index
      %c0_90 = arith.constant 0 : index
      %108 = vector.load %arg4[%c512, %c0_90] : memref<1024x128xbf16, #tpu.memory_space<vmem>>, vector<64x128xbf16>
      %cst_91 = arith.constant dense<0.000000e+00> : vector<32x128xf32>
      %109 = tpu.matmul %107, %108, %cst_91 {dimension_numbers = #tpu.dot_dimension_numbers<[1], [0], [0], [1], [0, 0, 1, 1], [], []>} : vector<32x64xbf16>, vector<64x128xbf16>, vector<32x128xf32> -> vector<32x128xf32>
      %110 = arith.addf %103, %109 : vector<32x128xf32>
      %c1_92 = arith.constant 1 : index
      %c1_93 = arith.constant 1 : index
      %c0_94 = arith.constant 0 : index
      %c0_95 = arith.constant 0 : index
      %111 = vector.load %arg15[%c1_92, %c1_93, %c0_94, %c0_95] : memref<4x5x10x64xf32, #tpu.memory_space<vmem>>, vector<1x4x8x64xf32>
      %112 = vector.shape_cast %111 : vector<1x4x8x64xf32> to vector<4x8x64xf32>
      %113 = vector.shape_cast %112 : vector<4x8x64xf32> to vector<32x64xf32>
      %114 = arith.truncf %113 : vector<32x64xf32> to vector<32x64xbf16>
      %c576 = arith.constant 576 : index
      %c0_96 = arith.constant 0 : index
      %115 = vector.load %arg4[%c576, %c0_96] : memref<1024x128xbf16, #tpu.memory_space<vmem>>, vector<64x128xbf16>
      %cst_97 = arith.constant dense<0.000000e+00> : vector<32x128xf32>
      %116 = tpu.matmul %114, %115, %cst_97 {dimension_numbers = #tpu.dot_dimension_numbers<[1], [0], [0], [1], [0, 0, 1, 1], [], []>} : vector<32x64xbf16>, vector<64x128xbf16>, vector<32x128xf32> -> vector<32x128xf32>
      %117 = arith.addf %110, %116 : vector<32x128xf32>
      %c0_98 = arith.constant 0 : index
      %c1_99 = arith.constant 1 : index
      %c2_100 = arith.constant 2 : index
      %c0_101 = arith.constant 0 : index
      %118 = vector.load %arg15[%c0_98, %c1_99, %c2_100, %c0_101] : memref<4x5x10x64xf32, #tpu.memory_space<vmem>>, vector<1x4x8x64xf32>
      %119 = vector.shape_cast %118 : vector<1x4x8x64xf32> to vector<4x8x64xf32>
      %120 = vector.shape_cast %119 : vector<4x8x64xf32> to vector<32x64xf32>
      %121 = arith.truncf %120 : vector<32x64xf32> to vector<32x64xbf16>
      %c640 = arith.constant 640 : index
      %c0_102 = arith.constant 0 : index
      %122 = vector.load %arg4[%c640, %c0_102] : memref<1024x128xbf16, #tpu.memory_space<vmem>>, vector<64x128xbf16>
      %cst_103 = arith.constant dense<0.000000e+00> : vector<32x128xf32>
      %123 = tpu.matmul %121, %122, %cst_103 {dimension_numbers = #tpu.dot_dimension_numbers<[1], [0], [0], [1], [0, 0, 1, 1], [], []>} : vector<32x64xbf16>, vector<64x128xbf16>, vector<32x128xf32> -> vector<32x128xf32>
      %124 = arith.addf %117, %123 : vector<32x128xf32>
      %c1_104 = arith.constant 1 : index
      %c1_105 = arith.constant 1 : index
      %c2_106 = arith.constant 2 : index
      %c0_107 = arith.constant 0 : index
      %125 = vector.load %arg15[%c1_104, %c1_105, %c2_106, %c0_107] : memref<4x5x10x64xf32, #tpu.memory_space<vmem>>, vector<1x4x8x64xf32>
      %126 = vector.shape_cast %125 : vector<1x4x8x64xf32> to vector<4x8x64xf32>
      %127 = vector.shape_cast %126 : vector<4x8x64xf32> to vector<32x64xf32>
      %128 = arith.truncf %127 : vector<32x64xf32> to vector<32x64xbf16>
      %c704 = arith.constant 704 : index
      %c0_108 = arith.constant 0 : index
      %129 = vector.load %arg4[%c704, %c0_108] : memref<1024x128xbf16, #tpu.memory_space<vmem>>, vector<64x128xbf16>
      %cst_109 = arith.constant dense<0.000000e+00> : vector<32x128xf32>
      %130 = tpu.matmul %128, %129, %cst_109 {dimension_numbers = #tpu.dot_dimension_numbers<[1], [0], [0], [1], [0, 0, 1, 1], [], []>} : vector<32x64xbf16>, vector<64x128xbf16>, vector<32x128xf32> -> vector<32x128xf32>
      %131 = arith.addf %124, %130 : vector<32x128xf32>
      %c2_110 = arith.constant 2 : index
      %c1_111 = arith.constant 1 : index
      %c0_112 = arith.constant 0 : index
      %c0_113 = arith.constant 0 : index
      %132 = vector.load %arg15[%c2_110, %c1_111, %c0_112, %c0_113] : memref<4x5x10x64xf32, #tpu.memory_space<vmem>>, vector<1x4x8x64xf32>
      %133 = vector.shape_cast %132 : vector<1x4x8x64xf32> to vector<4x8x64xf32>
      %134 = vector.shape_cast %133 : vector<4x8x64xf32> to vector<32x64xf32>
      %135 = arith.truncf %134 : vector<32x64xf32> to vector<32x64xbf16>
      %c768 = arith.constant 768 : index
      %c0_114 = arith.constant 0 : index
      %136 = vector.load %arg4[%c768, %c0_114] : memref<1024x128xbf16, #tpu.memory_space<vmem>>, vector<64x128xbf16>
      %cst_115 = arith.constant dense<0.000000e+00> : vector<32x128xf32>
      %137 = tpu.matmul %135, %136, %cst_115 {dimension_numbers = #tpu.dot_dimension_numbers<[1], [0], [0], [1], [0, 0, 1, 1], [], []>} : vector<32x64xbf16>, vector<64x128xbf16>, vector<32x128xf32> -> vector<32x128xf32>
      %138 = arith.addf %131, %137 : vector<32x128xf32>
      %c3_116 = arith.constant 3 : index
      %c1_117 = arith.constant 1 : index
      %c0_118 = arith.constant 0 : index
      %c0_119 = arith.constant 0 : index
      %139 = vector.load %arg15[%c3_116, %c1_117, %c0_118, %c0_119] : memref<4x5x10x64xf32, #tpu.memory_space<vmem>>, vector<1x4x8x64xf32>
      %140 = vector.shape_cast %139 : vector<1x4x8x64xf32> to vector<4x8x64xf32>
      %141 = vector.shape_cast %140 : vector<4x8x64xf32> to vector<32x64xf32>
      %142 = arith.truncf %141 : vector<32x64xf32> to vector<32x64xbf16>
      %c832 = arith.constant 832 : index
      %c0_120 = arith.constant 0 : index
      %143 = vector.load %arg4[%c832, %c0_120] : memref<1024x128xbf16, #tpu.memory_space<vmem>>, vector<64x128xbf16>
      %cst_121 = arith.constant dense<0.000000e+00> : vector<32x128xf32>
      %144 = tpu.matmul %142, %143, %cst_121 {dimension_numbers = #tpu.dot_dimension_numbers<[1], [0], [0], [1], [0, 0, 1, 1], [], []>} : vector<32x64xbf16>, vector<64x128xbf16>, vector<32x128xf32> -> vector<32x128xf32>
      %145 = arith.addf %138, %144 : vector<32x128xf32>
      %c2_122 = arith.constant 2 : index
      %c1_123 = arith.constant 1 : index
      %c2_124 = arith.constant 2 : index
      %c0_125 = arith.constant 0 : index
      %146 = vector.load %arg15[%c2_122, %c1_123, %c2_124, %c0_125] : memref<4x5x10x64xf32, #tpu.memory_space<vmem>>, vector<1x4x8x64xf32>
      %147 = vector.shape_cast %146 : vector<1x4x8x64xf32> to vector<4x8x64xf32>
      %148 = vector.shape_cast %147 : vector<4x8x64xf32> to vector<32x64xf32>
      %149 = arith.truncf %148 : vector<32x64xf32> to vector<32x64xbf16>
      %c896 = arith.constant 896 : index
      %c0_126 = arith.constant 0 : index
      %150 = vector.load %arg4[%c896, %c0_126] : memref<1024x128xbf16, #tpu.memory_space<vmem>>, vector<64x128xbf16>
      %cst_127 = arith.constant dense<0.000000e+00> : vector<32x128xf32>
      %151 = tpu.matmul %149, %150, %cst_127 {dimension_numbers = #tpu.dot_dimension_numbers<[1], [0], [0], [1], [0, 0, 1, 1], [], []>} : vector<32x64xbf16>, vector<64x128xbf16>, vector<32x128xf32> -> vector<32x128xf32>
      %152 = arith.addf %145, %151 : vector<32x128xf32>
      %c3_128 = arith.constant 3 : index
      %c1_129 = arith.constant 1 : index
      %c2_130 = arith.constant 2 : index
      %c0_131 = arith.constant 0 : index
      %153 = vector.load %arg15[%c3_128, %c1_129, %c2_130, %c0_131] : memref<4x5x10x64xf32, #tpu.memory_space<vmem>>, vector<1x4x8x64xf32>
      %154 = vector.shape_cast %153 : vector<1x4x8x64xf32> to vector<4x8x64xf32>
      %155 = vector.shape_cast %154 : vector<4x8x64xf32> to vector<32x64xf32>
      %156 = arith.truncf %155 : vector<32x64xf32> to vector<32x64xbf16>
      %c960 = arith.constant 960 : index
      %c0_132 = arith.constant 0 : index
      %157 = vector.load %arg4[%c960, %c0_132] : memref<1024x128xbf16, #tpu.memory_space<vmem>>, vector<64x128xbf16>
      %cst_133 = arith.constant dense<0.000000e+00> : vector<32x128xf32>
      %158 = tpu.matmul %156, %157, %cst_133 {dimension_numbers = #tpu.dot_dimension_numbers<[1], [0], [0], [1], [0, 0, 1, 1], [], []>} : vector<32x64xbf16>, vector<64x128xbf16>, vector<32x128xf32> -> vector<32x128xf32>
      %159 = arith.addf %152, %158 : vector<32x128xf32>
      %c0_134 = arith.constant 0 : index
      %c0_135 = arith.constant 0 : index
      %160 = vector.load %arg5[%c0_134, %c0_135] : memref<1x128xf32, #tpu.memory_space<vmem>>, vector<1x128xf32>
      %161 = vector.broadcast %160 : vector<1x128xf32> to vector<32x128xf32>
      %162 = arith.addf %159, %161 : vector<32x128xf32>
      %c0_136 = arith.constant 0 : index
      %c0_137 = arith.constant 0 : index
      %163 = vector.load %arg6[%c0_136, %c0_137] : memref<1x128xf32, #tpu.memory_space<vmem>>, vector<1x128xf32>
      %c0_138 = arith.constant 0 : index
      %c0_139 = arith.constant 0 : index
      %164 = vector.load %arg7[%c0_138, %c0_139] : memref<1x128xf32, #tpu.memory_space<vmem>>, vector<1x128xf32>
      %cst_140 = arith.constant dense<0.000000e+00> : vector<128xf32>
      %165 = vector.multi_reduction <add>, %162, %cst_140 [0] : vector<32x128xf32> to vector<128xf32>
      %166 = vector.shape_cast %165 : vector<128xf32> to vector<1x128xf32>
      %cst_141 = arith.constant 3.200000e+01 : f32
      %167 = vector.broadcast %cst_141 : f32 to vector<1x128xf32>
      %168 = arith.divf %166, %167 : vector<1x128xf32>
      %169 = arith.mulf %162, %162 : vector<32x128xf32>
      %cst_142 = arith.constant dense<0.000000e+00> : vector<128xf32>
      %170 = vector.multi_reduction <add>, %169, %cst_142 [0] : vector<32x128xf32> to vector<128xf32>
      %171 = vector.shape_cast %170 : vector<128xf32> to vector<1x128xf32>
      %cst_143 = arith.constant 3.200000e+01 : f32
      %172 = vector.broadcast %cst_143 : f32 to vector<1x128xf32>
      %173 = arith.divf %171, %172 : vector<1x128xf32>
      %174 = arith.mulf %168, %168 : vector<1x128xf32>
      %175 = arith.subf %173, %174 : vector<1x128xf32>
      %cst_144 = arith.constant 0.000000e+00 : f32
      %176 = vector.broadcast %cst_144 : f32 to vector<1x128xf32>
      %177 = arith.maximumf %175, %176 : vector<1x128xf32>
      %178 = vector.broadcast %168 : vector<1x128xf32> to vector<32x128xf32>
      %179 = arith.subf %162, %178 : vector<32x128xf32>
      %cst_145 = arith.constant 9.99999974E-6 : f32
      %180 = vector.broadcast %cst_145 : f32 to vector<1x128xf32>
      %181 = arith.addf %177, %180 : vector<1x128xf32>
      %182 = math.rsqrt %181 : vector<1x128xf32>
      %183 = vector.broadcast %182 : vector<1x128xf32> to vector<32x128xf32>
      %184 = arith.mulf %179, %183 : vector<32x128xf32>
      %185 = vector.broadcast %163 : vector<1x128xf32> to vector<32x128xf32>
      %186 = arith.mulf %184, %185 : vector<32x128xf32>
      %187 = vector.broadcast %164 : vector<1x128xf32> to vector<32x128xf32>
      %188 = arith.addf %186, %187 : vector<32x128xf32>
      %cst_146 = arith.constant 0.000000e+00 : f32
      %189 = vector.broadcast %cst_146 : f32 to vector<32x128xf32>
      %190 = arith.cmpf ogt, %188, %189 : vector<32x128xf32>
      %cst_147 = arith.constant 2.000000e-01 : f32
      %191 = vector.broadcast %cst_147 : f32 to vector<32x128xf32>
      %192 = arith.mulf %191, %188 : vector<32x128xf32>
      %193 = arith.select %190, %188, %192 : vector<32x128xi1>, vector<32x128xf32>
      %194 = arith.truncf %193 : vector<32x128xf32> to vector<32x128xbf16>
      %195 = vector.extract_strided_slice %194 {offsets = [0, 0], sizes = [2, 128], strides = [1, 1]} : vector<32x128xbf16> to vector<2x128xbf16>
      %c0_148 = arith.constant 0 : index
      %c0_149 = arith.constant 0 : index
      %c0_150 = arith.constant 0 : index
      %196 = vector.load %arg16[%c0_148, %c0_149, %c0_150] : memref<4x2x512xbf16, #tpu.memory_space<vmem>>, vector<1x2x128xbf16>
      %197 = vector.shape_cast %196 : vector<1x2x128xbf16> to vector<2x128xbf16>
      %198 = vector.shape_cast %195 : vector<2x128xbf16> to vector<1x2x128xbf16>
      tpu.vector_store %arg16[%c0_148, %c0_149, %c0_150], %198 {strides = array<i32>} : memref<4x2x512xbf16, #tpu.memory_space<vmem>>, vector<1x2x128xbf16>,
      %199 = vector.extract_strided_slice %194 {offsets = [2, 0], sizes = [2, 128], strides = [1, 1]} : vector<32x128xbf16> to vector<2x128xbf16>
      %c0_151 = arith.constant 0 : index
      %c0_152 = arith.constant 0 : index
      %c128_153 = arith.constant 128 : index
      %200 = vector.load %arg16[%c0_151, %c0_152, %c128_153] : memref<4x2x512xbf16, #tpu.memory_space<vmem>>, vector<1x2x128xbf16>
      %201 = vector.shape_cast %200 : vector<1x2x128xbf16> to vector<2x128xbf16>
      %202 = vector.shape_cast %199 : vector<2x128xbf16> to vector<1x2x128xbf16>
      tpu.vector_store %arg16[%c0_151, %c0_152, %c128_153], %202 {strides = array<i32>} : memref<4x2x512xbf16, #tpu.memory_space<vmem>>, vector<1x2x128xbf16>,
      %203 = vector.extract_strided_slice %194 {offsets = [4, 0], sizes = [2, 128], strides = [1, 1]} : vector<32x128xbf16> to vector<2x128xbf16>
      %c0_154 = arith.constant 0 : index
      %c0_155 = arith.constant 0 : index
      %c256_156 = arith.constant 256 : index
      %204 = vector.load %arg16[%c0_154, %c0_155, %c256_156] : memref<4x2x512xbf16, #tpu.memory_space<vmem>>, vector<1x2x128xbf16>
      %205 = vector.shape_cast %204 : vector<1x2x128xbf16> to vector<2x128xbf16>
      %206 = vector.shape_cast %203 : vector<2x128xbf16> to vector<1x2x128xbf16>
      tpu.vector_store %arg16[%c0_154, %c0_155, %c256_156], %206 {strides = array<i32>} : memref<4x2x512xbf16, #tpu.memory_space<vmem>>, vector<1x2x128xbf16>,
      %207 = vector.extract_strided_slice %194 {offsets = [6, 0], sizes = [2, 128], strides = [1, 1]} : vector<32x128xbf16> to vector<2x128xbf16>
      %c0_157 = arith.constant 0 : index
      %c0_158 = arith.constant 0 : index
      %c384_159 = arith.constant 384 : index
      %208 = vector.load %arg16[%c0_157, %c0_158, %c384_159] : memref<4x2x512xbf16, #tpu.memory_space<vmem>>, vector<1x2x128xbf16>
      %209 = vector.shape_cast %208 : vector<1x2x128xbf16> to vector<2x128xbf16>
      %210 = vector.shape_cast %207 : vector<2x128xbf16> to vector<1x2x128xbf16>
      tpu.vector_store %arg16[%c0_157, %c0_158, %c384_159], %210 {strides = array<i32>} : memref<4x2x512xbf16, #tpu.memory_space<vmem>>, vector<1x2x128xbf16>,
      %211 = vector.extract_strided_slice %194 {offsets = [8, 0], sizes = [2, 128], strides = [1, 1]} : vector<32x128xbf16> to vector<2x128xbf16>
      %c1_160 = arith.constant 1 : index
      %c0_161 = arith.constant 0 : index
      %c0_162 = arith.constant 0 : index
      %212 = vector.load %arg16[%c1_160, %c0_161, %c0_162] : memref<4x2x512xbf16, #tpu.memory_space<vmem>>, vector<1x2x128xbf16>
      %213 = vector.shape_cast %212 : vector<1x2x128xbf16> to vector<2x128xbf16>
      %214 = vector.shape_cast %211 : vector<2x128xbf16> to vector<1x2x128xbf16>
      tpu.vector_store %arg16[%c1_160, %c0_161, %c0_162], %214 {strides = array<i32>} : memref<4x2x512xbf16, #tpu.memory_space<vmem>>, vector<1x2x128xbf16>,
      %215 = vector.extract_strided_slice %194 {offsets = [10, 0], sizes = [2, 128], strides = [1, 1]} : vector<32x128xbf16> to vector<2x128xbf16>
      %c1_163 = arith.constant 1 : index
      %c0_164 = arith.constant 0 : index
      %c128_165 = arith.constant 128 : index
      %216 = vector.load %arg16[%c1_163, %c0_164, %c128_165] : memref<4x2x512xbf16, #tpu.memory_space<vmem>>, vector<1x2x128xbf16>
      %217 = vector.shape_cast %216 : vector<1x2x128xbf16> to vector<2x128xbf16>
      %218 = vector.shape_cast %215 : vector<2x128xbf16> to vector<1x2x128xbf16>
      tpu.vector_store %arg16[%c1_163, %c0_164, %c128_165], %218 {strides = array<i32>} : memref<4x2x512xbf16, #tpu.memory_space<vmem>>, vector<1x2x128xbf16>,
      %219 = vector.extract_strided_slice %194 {offsets = [12, 0], sizes = [2, 128], strides = [1, 1]} : vector<32x128xbf16> to vector<2x128xbf16>
      %c1_166 = arith.constant 1 : index
      %c0_167 = arith.constant 0 : index
      %c256_168 = arith.constant 256 : index
      %220 = vector.load %arg16[%c1_166, %c0_167, %c256_168] : memref<4x2x512xbf16, #tpu.memory_space<vmem>>, vector<1x2x128xbf16>
      %221 = vector.shape_cast %220 : vector<1x2x128xbf16> to vector<2x128xbf16>
      %222 = vector.shape_cast %219 : vector<2x128xbf16> to vector<1x2x128xbf16>
      tpu.vector_store %arg16[%c1_166, %c0_167, %c256_168], %222 {strides = array<i32>} : memref<4x2x512xbf16, #tpu.memory_space<vmem>>, vector<1x2x128xbf16>,
      %223 = vector.extract_strided_slice %194 {offsets = [14, 0], sizes = [2, 128], strides = [1, 1]} : vector<32x128xbf16> to vector<2x128xbf16>
      %c1_169 = arith.constant 1 : index
      %c0_170 = arith.constant 0 : index
      %c384_171 = arith.constant 384 : index
      %224 = vector.load %arg16[%c1_169, %c0_170, %c384_171] : memref<4x2x512xbf16, #tpu.memory_space<vmem>>, vector<1x2x128xbf16>
      %225 = vector.shape_cast %224 : vector<1x2x128xbf16> to vector<2x128xbf16>
      %226 = vector.shape_cast %223 : vector<2x128xbf16> to vector<1x2x128xbf16>
      tpu.vector_store %arg16[%c1_169, %c0_170, %c384_171], %226 {strides = array<i32>} : memref<4x2x512xbf16, #tpu.memory_space<vmem>>, vector<1x2x128xbf16>,
      %227 = vector.extract_strided_slice %194 {offsets = [16, 0], sizes = [2, 128], strides = [1, 1]} : vector<32x128xbf16> to vector<2x128xbf16>
      %c2_172 = arith.constant 2 : index
      %c0_173 = arith.constant 0 : index
      %c0_174 = arith.constant 0 : index
      %228 = vector.load %arg16[%c2_172, %c0_173, %c0_174] : memref<4x2x512xbf16, #tpu.memory_space<vmem>>, vector<1x2x128xbf16>
      %229 = vector.shape_cast %228 : vector<1x2x128xbf16> to vector<2x128xbf16>
      %230 = vector.shape_cast %227 : vector<2x128xbf16> to vector<1x2x128xbf16>
      tpu.vector_store %arg16[%c2_172, %c0_173, %c0_174], %230 {strides = array<i32>} : memref<4x2x512xbf16, #tpu.memory_space<vmem>>, vector<1x2x128xbf16>,
      %231 = vector.extract_strided_slice %194 {offsets = [18, 0], sizes = [2, 128], strides = [1, 1]} : vector<32x128xbf16> to vector<2x128xbf16>
      %c2_175 = arith.constant 2 : index
      %c0_176 = arith.constant 0 : index
      %c128_177 = arith.constant 128 : index
      %232 = vector.load %arg16[%c2_175, %c0_176, %c128_177] : memref<4x2x512xbf16, #tpu.memory_space<vmem>>, vector<1x2x128xbf16>
      %233 = vector.shape_cast %232 : vector<1x2x128xbf16> to vector<2x128xbf16>
      %234 = vector.shape_cast %231 : vector<2x128xbf16> to vector<1x2x128xbf16>
      tpu.vector_store %arg16[%c2_175, %c0_176, %c128_177], %234 {strides = array<i32>} : memref<4x2x512xbf16, #tpu.memory_space<vmem>>, vector<1x2x128xbf16>,
      %235 = vector.extract_strided_slice %194 {offsets = [20, 0], sizes = [2, 128], strides = [1, 1]} : vector<32x128xbf16> to vector<2x128xbf16>
      %c2_178 = arith.constant 2 : index
      %c0_179 = arith.constant 0 : index
      %c256_180 = arith.constant 256 : index
      %236 = vector.load %arg16[%c2_178, %c0_179, %c256_180] : memref<4x2x512xbf16, #tpu.memory_space<vmem>>, vector<1x2x128xbf16>
      %237 = vector.shape_cast %236 : vector<1x2x128xbf16> to vector<2x128xbf16>
      %238 = vector.shape_cast %235 : vector<2x128xbf16> to vector<1x2x128xbf16>
      tpu.vector_store %arg16[%c2_178, %c0_179, %c256_180], %238 {strides = array<i32>} : memref<4x2x512xbf16, #tpu.memory_space<vmem>>, vector<1x2x128xbf16>,
      %239 = vector.extract_strided_slice %194 {offsets = [22, 0], sizes = [2, 128], strides = [1, 1]} : vector<32x128xbf16> to vector<2x128xbf16>
      %c2_181 = arith.constant 2 : index
      %c0_182 = arith.constant 0 : index
      %c384_183 = arith.constant 384 : index
      %240 = vector.load %arg16[%c2_181, %c0_182, %c384_183] : memref<4x2x512xbf16, #tpu.memory_space<vmem>>, vector<1x2x128xbf16>
      %241 = vector.shape_cast %240 : vector<1x2x128xbf16> to vector<2x128xbf16>
      %242 = vector.shape_cast %239 : vector<2x128xbf16> to vector<1x2x128xbf16>
      tpu.vector_store %arg16[%c2_181, %c0_182, %c384_183], %242 {strides = array<i32>} : memref<4x2x512xbf16, #tpu.memory_space<vmem>>, vector<1x2x128xbf16>,
      %243 = vector.extract_strided_slice %194 {offsets = [24, 0], sizes = [2, 128], strides = [1, 1]} : vector<32x128xbf16> to vector<2x128xbf16>
      %c3_184 = arith.constant 3 : index
      %c0_185 = arith.constant 0 : index
      %c0_186 = arith.constant 0 : index
      %244 = vector.load %arg16[%c3_184, %c0_185, %c0_186] : memref<4x2x512xbf16, #tpu.memory_space<vmem>>, vector<1x2x128xbf16>
      %245 = vector.shape_cast %244 : vector<1x2x128xbf16> to vector<2x128xbf16>
      %246 = vector.shape_cast %243 : vector<2x128xbf16> to vector<1x2x128xbf16>
      tpu.vector_store %arg16[%c3_184, %c0_185, %c0_186], %246 {strides = array<i32>} : memref<4x2x512xbf16, #tpu.memory_space<vmem>>, vector<1x2x128xbf16>,
      %247 = vector.extract_strided_slice %194 {offsets = [26, 0], sizes = [2, 128], strides = [1, 1]} : vector<32x128xbf16> to vector<2x128xbf16>
      %c3_187 = arith.constant 3 : index
      %c0_188 = arith.constant 0 : index
      %c128_189 = arith.constant 128 : index
      %248 = vector.load %arg16[%c3_187, %c0_188, %c128_189] : memref<4x2x512xbf16, #tpu.memory_space<vmem>>, vector<1x2x128xbf16>
      %249 = vector.shape_cast %248 : vector<1x2x128xbf16> to vector<2x128xbf16>
      %250 = vector.shape_cast %247 : vector<2x128xbf16> to vector<1x2x128xbf16>
      tpu.vector_store %arg16[%c3_187, %c0_188, %c128_189], %250 {strides = array<i32>} : memref<4x2x512xbf16, #tpu.memory_space<vmem>>, vector<1x2x128xbf16>,
      %251 = vector.extract_strided_slice %194 {offsets = [28, 0], sizes = [2, 128], strides = [1, 1]} : vector<32x128xbf16> to vector<2x128xbf16>
      %c3_190 = arith.constant 3 : index
      %c0_191 = arith.constant 0 : index
      %c256_192 = arith.constant 256 : index
      %252 = vector.load %arg16[%c3_190, %c0_191, %c256_192] : memref<4x2x512xbf16, #tpu.memory_space<vmem>>, vector<1x2x128xbf16>
      %253 = vector.shape_cast %252 : vector<1x2x128xbf16> to vector<2x128xbf16>
      %254 = vector.shape_cast %251 : vector<2x128xbf16> to vector<1x2x128xbf16>
      tpu.vector_store %arg16[%c3_190, %c0_191, %c256_192], %254 {strides = array<i32>} : memref<4x2x512xbf16, #tpu.memory_space<vmem>>, vector<1x2x128xbf16>,
      %255 = vector.extract_strided_slice %194 {offsets = [30, 0], sizes = [2, 128], strides = [1, 1]} : vector<32x128xbf16> to vector<2x128xbf16>
      %c3_193 = arith.constant 3 : index
      %c0_194 = arith.constant 0 : index
      %c384_195 = arith.constant 384 : index
      %256 = vector.load %arg16[%c3_193, %c0_194, %c384_195] : memref<4x2x512xbf16, #tpu.memory_space<vmem>>, vector<1x2x128xbf16>
      %257 = vector.shape_cast %256 : vector<1x2x128xbf16> to vector<2x128xbf16>
      %258 = vector.shape_cast %255 : vector<2x128xbf16> to vector<1x2x128xbf16>
      tpu.vector_store %arg16[%c3_193, %c0_194, %c384_195], %258 {strides = array<i32>} : memref<4x2x512xbf16, #tpu.memory_space<vmem>>, vector<1x2x128xbf16>,
      %cst_196 = arith.constant 0.000000e+00 : f32
      %259 = vector.broadcast %cst_196 : f32 to vector<2x1024xf32>
      %c0_197 = arith.constant 0 : index
      %c0_198 = arith.constant 0 : index
      %260 = vector.load %arg17[%c0_197, %c0_198] : memref<2x1024xf32, #tpu.memory_space<vmem>>, vector<2x1024xf32>
      tpu.vector_store %arg17[%c0_197, %c0_198], %259 {strides = array<i32>} : memref<2x1024xf32, #tpu.memory_space<vmem>>, vector<2x1024xf32>,
    } else {
    }
    %c0 = arith.constant 0 : index
    %c0_1 = arith.constant 0 : index
    %3 = vector.load %arg17[%c0, %c0_1] : memref<2x1024xf32, #tpu.memory_space<vmem>>, vector<2x1024xf32>
    %4 = arith.index_cast %arg0 : i32 to index
    %c0_2 = arith.constant 0 : index
    %c0_3 = arith.constant 0 : index
    %5 = vector.load %arg16[%4, %c0_2, %c0_3] : memref<4x2x512xbf16, #tpu.memory_space<vmem>>, vector<1x2x512xbf16>
    %6 = vector.shape_cast %5 : vector<1x2x512xbf16> to vector<2x512xbf16>
    %c0_4 = arith.constant 0 : index
    %c0_5 = arith.constant 0 : index
    %7 = vector.load %arg8[%c0_4, %c0_5] : memref<512x1024xbf16, #tpu.memory_space<vmem>>, vector<512x1024xbf16>
    %cst = arith.constant dense<0.000000e+00> : vector<2x1024xf32>
    %8 = tpu.matmul %6, %7, %cst {dimension_numbers = #tpu.dot_dimension_numbers<[1], [0], [0], [1], [0, 0, 1, 1], [], []>} : vector<2x512xbf16>, vector<512x1024xbf16>, vector<2x1024xf32> -> vector<2x1024xf32>
    %9 = arith.addf %3, %8 : vector<2x1024xf32>
    %c0_6 = arith.constant 0 : index
    %c0_7 = arith.constant 0 : index
    %10 = vector.load %arg17[%c0_6, %c0_7] : memref<2x1024xf32, #tpu.memory_space<vmem>>, vector<2x1024xf32>
    tpu.vector_store %arg17[%c0_6, %c0_7], %9 {strides = array<i32>} : memref<2x1024xf32, #tpu.memory_space<vmem>>, vector<2x1024xf32>,
    %c3_i32 = arith.constant 3 : i32
    %11 = arith.cmpi eq, %arg0, %c3_i32 : i32
    %12 = arith.extui %11 : i1 to i32
    %c0_i32_8 = arith.constant 0 : i32
    %13 = arith.cmpi ne, %12, %c0_i32_8 : i32
    scf.if %13 {
      %c0_9 = arith.constant 0 : index
      %c0_10 = arith.constant 0 : index
      %14 = vector.load %arg17[%c0_9, %c0_10] : memref<2x1024xf32, #tpu.memory_space<vmem>>, vector<2x1024xf32>
      %c0_11 = arith.constant 0 : index
      %c0_12 = arith.constant 0 : index
      %15 = vector.load %arg9[%c0_11, %c0_12] : memref<1x1024xf32, #tpu.memory_space<vmem>>, vector<1x1024xf32>
      %16 = vector.broadcast %15 : vector<1x1024xf32> to vector<2x1024xf32>
      %17 = arith.addf %14, %16 : vector<2x1024xf32>
      %c0_13 = arith.constant 0 : index
      %c0_14 = arith.constant 0 : index
      %18 = vector.load %arg10[%c0_13, %c0_14] : memref<1x1024xf32, #tpu.memory_space<vmem>>, vector<1x1024xf32>
      %c0_15 = arith.constant 0 : index
      %c0_16 = arith.constant 0 : index
      %19 = vector.load %arg11[%c0_15, %c0_16] : memref<1x1024xf32, #tpu.memory_space<vmem>>, vector<1x1024xf32>
      %cst_17 = arith.constant dense<0.000000e+00> : vector<1024xf32>
      %20 = vector.multi_reduction <add>, %17, %cst_17 [0] : vector<2x1024xf32> to vector<1024xf32>
      %21 = vector.shape_cast %20 : vector<1024xf32> to vector<1x1024xf32>
      %cst_18 = arith.constant 2.000000e+00 : f32
      %22 = vector.broadcast %cst_18 : f32 to vector<1x1024xf32>
      %23 = arith.divf %21, %22 : vector<1x1024xf32>
      %24 = arith.mulf %17, %17 : vector<2x1024xf32>
      %cst_19 = arith.constant dense<0.000000e+00> : vector<1024xf32>
      %25 = vector.multi_reduction <add>, %24, %cst_19 [0] : vector<2x1024xf32> to vector<1024xf32>
      %26 = vector.shape_cast %25 : vector<1024xf32> to vector<1x1024xf32>
      %cst_20 = arith.constant 2.000000e+00 : f32
      %27 = vector.broadcast %cst_20 : f32 to vector<1x1024xf32>
      %28 = arith.divf %26, %27 : vector<1x1024xf32>
      %29 = arith.mulf %23, %23 : vector<1x1024xf32>
      %30 = arith.subf %28, %29 : vector<1x1024xf32>
      %cst_21 = arith.constant 0.000000e+00 : f32
      %31 = vector.broadcast %cst_21 : f32 to vector<1x1024xf32>
      %32 = arith.maximumf %30, %31 : vector<1x1024xf32>
      %33 = vector.broadcast %23 : vector<1x1024xf32> to vector<2x1024xf32>
      %34 = arith.subf %17, %33 : vector<2x1024xf32>
      %cst_22 = arith.constant 9.99999974E-6 : f32
      %35 = vector.broadcast %cst_22 : f32 to vector<1x1024xf32>
      %36 = arith.addf %32, %35 : vector<1x1024xf32>
      %37 = math.rsqrt %36 : vector<1x1024xf32>
      %38 = vector.broadcast %37 : vector<1x1024xf32> to vector<2x1024xf32>
      %39 = arith.mulf %34, %38 : vector<2x1024xf32>
      %40 = vector.broadcast %18 : vector<1x1024xf32> to vector<2x1024xf32>
      %41 = arith.mulf %39, %40 : vector<2x1024xf32>
      %42 = vector.broadcast %19 : vector<1x1024xf32> to vector<2x1024xf32>
      %43 = arith.addf %41, %42 : vector<2x1024xf32>
      %cst_23 = arith.constant 0.000000e+00 : f32
      %44 = vector.broadcast %cst_23 : f32 to vector<2x1024xf32>
      %45 = arith.cmpf ogt, %43, %44 : vector<2x1024xf32>
      %cst_24 = arith.constant 2.000000e-01 : f32
      %46 = vector.broadcast %cst_24 : f32 to vector<2x1024xf32>
      %47 = arith.mulf %46, %43 : vector<2x1024xf32>
      %48 = arith.select %45, %43, %47 : vector<2x1024xi1>, vector<2x1024xf32>
      %49 = arith.truncf %48 : vector<2x1024xf32> to vector<2x1024xbf16>
      %c0_25 = arith.constant 0 : index
      %c0_26 = arith.constant 0 : index
      %50 = vector.load %arg12[%c0_25, %c0_26] : memref<1024x128xbf16, #tpu.memory_space<vmem>>, vector<1024x128xbf16>
      %cst_27 = arith.constant dense<0.000000e+00> : vector<2x128xf32>
      %51 = tpu.matmul %49, %50, %cst_27 {dimension_numbers = #tpu.dot_dimension_numbers<[1], [0], [0], [1], [0, 0, 1, 1], [], []>} : vector<2x1024xbf16>, vector<1024x128xbf16>, vector<2x128xf32> -> vector<2x128xf32>
      %c0_28 = arith.constant 0 : index
      %c0_29 = arith.constant 0 : index
      %52 = vector.load %arg13[%c0_28, %c0_29] : memref<1x128xf32, #tpu.memory_space<vmem>>, vector<1x128xf32>
      %53 = vector.broadcast %52 : vector<1x128xf32> to vector<2x128xf32>
      %54 = arith.addf %51, %53 : vector<2x128xf32>
      %c0_30 = arith.constant 0 : index
      %c0_31 = arith.constant 0 : index
      %55 = vector.load %arg14[%c0_30, %c0_31] : memref<2x128xf32, #tpu.memory_space<vmem>>, vector<2x128xf32>
      tpu.vector_store %arg14[%c0_30, %c0_31], %54 {strides = array<i32>} : memref<2x128xf32, #tpu.memory_space<vmem>>, vector<2x128xf32>,
    } else {
    }
    return
  }
  func.func @transform_0(%arg0: i32) -> (i32, i32) {
    %c0_i32 = arith.constant 0 : i32
    %c0_i32_0 = arith.constant 0 : i32
    %c0_i32_1 = arith.constant 0 : i32
    return %c0_i32, %c0_i32_0 : i32, i32
  }
  func.func @transform_1(%arg0: i32) -> (i32, i32) {
    %c0_i32 = arith.constant 0 : i32
    %c0_i32_0 = arith.constant 0 : i32
    %c0_i32_1 = arith.constant 0 : i32
    return %c0_i32, %c0_i32_0 : i32, i32
  }
  func.func @transform_2(%arg0: i32) -> (i32, i32) {
    %c0_i32 = arith.constant 0 : i32
    %c0_i32_0 = arith.constant 0 : i32
    %c0_i32_1 = arith.constant 0 : i32
    return %c0_i32, %c0_i32_0 : i32, i32
  }
  func.func @transform_3(%arg0: i32) -> (i32, i32) {
    %c0_i32 = arith.constant 0 : i32
    %c0_i32_0 = arith.constant 0 : i32
    %c0_i32_1 = arith.constant 0 : i32
    return %c0_i32, %c0_i32_0 : i32, i32
  }
  func.func @transform_4(%arg0: i32) -> (i32, i32) {
    %c0_i32 = arith.constant 0 : i32
    %c0_i32_0 = arith.constant 0 : i32
    %c0_i32_1 = arith.constant 0 : i32
    return %c0_i32, %c0_i32_0 : i32, i32
  }
  func.func @transform_5(%arg0: i32) -> (i32, i32) {
    %c0_i32 = arith.constant 0 : i32
    %c0_i32_0 = arith.constant 0 : i32
    %c0_i32_1 = arith.constant 0 : i32
    return %c0_i32, %c0_i32_0 : i32, i32
  }
  func.func @transform_6(%arg0: i32) -> (i32, i32) {
    %c0_i32 = arith.constant 0 : i32
    %c0_i32_0 = arith.constant 0 : i32
    %c0_i32_1 = arith.constant 0 : i32
    return %c0_i32, %c0_i32_0 : i32, i32
  }
  func.func @transform_7(%arg0: i32) -> (i32, i32) {
    %c0_i32 = arith.constant 0 : i32
    %c0_i32_0 = arith.constant 0 : i32
    return %arg0, %c0_i32 : i32, i32
  }
  func.func @transform_8(%arg0: i32) -> (i32, i32) {
    %c0_i32 = arith.constant 0 : i32
    %c0_i32_0 = arith.constant 0 : i32
    %c0_i32_1 = arith.constant 0 : i32
    return %c0_i32, %c0_i32_0 : i32, i32
  }
  func.func @transform_9(%arg0: i32) -> (i32, i32) {
    %c0_i32 = arith.constant 0 : i32
    %c0_i32_0 = arith.constant 0 : i32
    %c0_i32_1 = arith.constant 0 : i32
    return %c0_i32, %c0_i32_0 : i32, i32
  }
  func.func @transform_10(%arg0: i32) -> (i32, i32) {
    %c0_i32 = arith.constant 0 : i32
    %c0_i32_0 = arith.constant 0 : i32
    %c0_i32_1 = arith.constant 0 : i32
    return %c0_i32, %c0_i32_0 : i32, i32
  }
  func.func @transform_11(%arg0: i32) -> (i32, i32) {
    %c0_i32 = arith.constant 0 : i32
    %c0_i32_0 = arith.constant 0 : i32
    %c0_i32_1 = arith.constant 0 : i32
    return %c0_i32, %c0_i32_0 : i32, i32
  }
  func.func @transform_12(%arg0: i32) -> (i32, i32) {
    %c0_i32 = arith.constant 0 : i32
    %c0_i32_0 = arith.constant 0 : i32
    %c0_i32_1 = arith.constant 0 : i32
    return %c0_i32, %c0_i32_0 : i32, i32
  }
  func.func @transform_13(%arg0: i32) -> (i32, i32) {
    %c0_i32 = arith.constant 0 : i32
    %c0_i32_0 = arith.constant 0 : i32
    %c0_i32_1 = arith.constant 0 : i32
    return %c0_i32, %c0_i32_0 : i32, i32
  }
}

</mosaic_0001>

<bundles_post_ra>
// kernel: discriminator_forward.1
= control target key start
LH: loop header
LB: loop body
LE: loop exit
PB: predicated region body
PF: predicated region fallthrough
CT: control target
= control target key end

     0   :  { %s7020_s25 = smov 0   ;;  %s8124_s0 = inlined_call_operand.vmem [shape: bf16[128,64], index: 0, kind: input, shape index: {}]   ;;  %s8125_s1 = inlined_call_operand.vmem [shape: bf16[64,64], index: 1, kind: input, shape index: {}]   ;;  %s8126_s2 = inlined_call_operand.vmem [shape: f32[1,64], index: 2, kind: input, shape index: {}]   ;;  %s8127_s3 = inlined_call_operand.vmem [shape: bf16[1024,128], index: 3, kind: input, shape index: {}]   ;;  %s8128_s4 = inlined_call_operand.vmem [shape: f32[1,128], index: 4, kind: input, shape index: {}]   ;;  %s8129_s5 = inlined_call_operand.vmem [shape: f32[1,128], index: 5, kind: input, shape index: {}]   ;;  %s8130_s6 = inlined_call_operand.vmem [shape: f32[1,128], index: 6, kind: input, shape index: {}]   ;;  %s8131_s7 = inlined_call_operand.vmem [shape: bf16[2048,1024], index: 7, kind: input, shape index: {}]   ;;  %s8132_s8 = inlined_call_operand.vmem [shape: f32[1,1024], index: 8, kind: input, shape index: {}]   ;;  %s8133_s9 = inlined_call_operand.vmem [shape: f32[1,1024], index: 9, kind: input, shape index: {}]   ;;  %s8134_s10 = inlined_call_operand.vmem [shape: f32[1,1024], index: 10, kind: input, shape index: {}]   ;;  %s8135_s11 = inlined_call_operand.vmem [shape: bf16[1024,128], index: 11, kind: input, shape index: {}]   ;;  %s8136_s12 = inlined_call_operand.vmem [shape: f32[1,128], index: 12, kind: input, shape index: {}]   ;;  %s8137_s13 = inlined_call_operand.vmem [shape: f32[2,128], index: 13, kind: output, shape index: {}]  }
   0x1 LB: > { %s7026_s26 = sadd.s32 4294967295, %s6944_s25   ;;  %p5820_p0 = scmp.ge.s32.totalorder %s6944_s25, 1  ;;  %s6944_s25 = sphi %s7020_s25, %s23_s25  }
   0x2   : > { %p384_p1 = scmp.lt.s32.totalorder %s6944_s25, 5 }
   0x4   : > { %p385_p2 = pnand %p5820_p0, %p384_p1 }
   0x5   : > { %s5821_s27 = sshll.u32 (!%p385_p2), %s7026_s26, 6  ;;  %p5824_p4 = scmp.ne.s32.totalorder (!%p385_p2), %s7026_s26, 0 }
   0x6   : > { %388 = sbr.rel (%p385_p2) target bundleno = 1478 (0x5c6), region = 72  ;;  %p425_p3 = scmp.lt.s32.totalorder (!%p385_p2), %s5821_s27, 255 }
   0xd   : > { %s8139_s27 = smov (!%p425_p3, %s5821_s27), 255  ;;  %435 = sbr.rel (%p5824_p4) target bundleno = 679 (0x2a7), region = 76 }
   0xe   : > { %s6279_s28 = sshll.u32 %s8139_s27, 5  ;;  %v6780_v0 = vld [vmem:[%s8125_s1] sm:$0xff] (!%p5824_p4)   ;;  %v6781_v1 = vld [vmem:[%s8125_s1 + $0x8] sm:$0xff] (!%p5824_p4)   ;;  %v6782_v2 = vld [vmem:[%s8125_s1 + $0x10] sm:$0xff] (!%p5824_p4)   ;;  %vm531_vm0 = vcmask (!%p5824_p4), 523264   ;;  %v6946_v13 = vmov (!%p5824_p4), 0.0  }
   0xf   : > { %s7034_s14 = scalar_lea.vmem %s8131_s7, %s6279_s28  ;;  %6476 = vmatprep.subr.bf16.mxu0 (!%p5824_p4), %v6780_v0  ;;  %v6784_v3 = vld [vmem:[%s8124_s0] sm:$0xff] (!%p5824_p4)   ;;  %v6783_v4 = vld [vmem:[%s8125_s1 + $0x18] sm:$0xff] (!%p5824_p4)   ;;  %v6785_v5 = vld [vmem:[%s8124_s0 + $0x8] sm:$0xff] (!%p5824_p4)   ;;  %736 = vst.msk [vmem:[#allocation2 + $0x110] sm:$0xff] (!%p5824_p4), %vm531_vm0, %v6946_v13  ;;  %vm702_vm1 = vcmask (!%p5824_p4), 517120  }
  0x10   : > { %6477 = vmatpush3.bf16.msra.mxu0 (!%p5824_p4), %v6780_v0  ;;  %6484 = vmatprep.mubr.msk.bf16.mxu0 (!%p5824_p4), %vm531_vm0, %v6784_v3  ;;  %v6786_v6 = vld [vmem:[%s8124_s0 + $0x10] sm:$0xff] (!%p5824_p4)   ;;  %v6787_v7 = vld [vmem:[%s8124_s0 + $0x18] sm:$0xff] (!%p5824_p4)   ;;  %v6788_v8 = vld [vmem:[%s8124_s0 + $0x20] sm:$0xff] (!%p5824_p4)   ;;  %701 = vst.msk [vmem:[#allocation2] sm:$0xff] (!%p5824_p4), %vm531_vm0, %v6946_v13 }
  0x11   : > { %6478 = vmatprep.subr.bf16.mxu0 (!%p5824_p4), %v6781_v1  ;;  %v6789_v9 = vld [vmem:[%s8124_s0 + $0x28] sm:$0xff] (!%p5824_p4)   ;;  %v6790_v10 = vld [vmem:[%s8124_s0 + $0x30] sm:$0xff] (!%p5824_p4)   ;;  %v6791_v11 = vld [vmem:[%s8124_s0 + $0x38] sm:$0xff] (!%p5824_p4)   ;;  %704 = vst.msk [vmem:[#allocation2 + $0x10] sm:$0xff] (!%p5824_p4), %vm531_vm0, %v6946_v13 }
  0x12   : > { %v6792_v12 = vld [vmem:[%s8127_s3 + $0xe0] sm:$0xff] (!%p5824_p4)   ;;  %706 = vst.msk [vmem:[#allocation2 + $0x20] sm:$0xff] (!%p5824_p4), %vm531_vm0, %v6946_v13  ;;  %708 = vst.msk [vmem:[#allocation2 + $0x30] sm:$0xff] (!%p5824_p4), %vm531_vm0, %v6946_v13  ;;  %v6793_v14 = vld [vmem:[%s8127_s3 + $0xe8] sm:$0xff] (!%p5824_p4)  }
  0x13   : > { %6584 = vmatprep.subr.bf16.mxu1 (!%p5824_p4), %v6792_v12  ;;  %710 = vst.msk [vmem:[#allocation2 + $0x40] sm:$0xff] (!%p5824_p4), %vm531_vm0, %v6946_v13  ;;  %712 = vst.msk [vmem:[#allocation2 + $0x50] sm:$0xff] (!%p5824_p4), %vm531_vm0, %v6946_v13  ;;  %v6794_v15 = vld [vmem:[%s8127_s3 + $0xf0] sm:$0xff] (!%p5824_p4)   ;;  %v6795_v16 = vld [vmem:[%s8127_s3 + $0xf8] sm:$0xff] (!%p5824_p4)  }
  0x14   : > { %6479 = vmatpush3.bf16.msra.mxu0 %v6781_v1  ;;  %714 = vst.msk [vmem:[#allocation2 + $0x60] sm:$0xff] %vm531_vm0, %v6946_v13  ;;  %716 = vst.msk [vmem:[#allocation2 + $0x70] sm:$0xff] %vm531_vm0, %v6946_v13  ;;  %6585 = vmatpush3.bf16.msra.mxu1 %v6792_v12  ;;  %v6796_v17 = vld [vmem:[%s8127_s3 + $0x20] sm:$0xff]   ;;  %v6797_v18 = vld [vmem:[%s8127_s3 + $0x28] sm:$0xff]  }
  0x15   : > { %6480 = vmatprep.subr.bf16.mxu0 %v6782_v2  ;;  %718 = vst.msk [vmem:[#allocation2 + $0x80] sm:$0xff] %vm531_vm0, %v6946_v13  ;;  %720 = vst.msk [vmem:[#allocation2 + $0x90] sm:$0xff] %vm531_vm0, %v6946_v13  ;;  %6586 = vmatprep.subr.bf16.mxu1 %v6793_v14  ;;  %v6798_v19 = vld [vmem:[%s8127_s3 + $0x30] sm:$0xff]   ;;  %v7145_v20 = vld [vmem:[%s8127_s3 + $0x100] sm:$0xff]  }
  0x16   : > { %722 = vst.msk [vmem:[#allocation2 + $0xa0] sm:$0xff] %vm531_vm0, %v6946_v13  ;;  %724 = vst.msk [vmem:[#allocation2 + $0xb0] sm:$0xff] %vm531_vm0, %v6946_v13  ;;  %v6800_v21 = vld [vmem:[%s8127_s3 + $0x38] sm:$0xff]   ;;  %v7154_v22 = vld [vmem:[%s8127_s3] sm:$0xff]  }
  0x17   : > { %726 = vst.msk [vmem:[#allocation2 + $0xc0] sm:$0xff] %vm531_vm0, %v6946_v13  ;;  %728 = vst.msk [vmem:[#allocation2 + $0xd0] sm:$0xff] %vm531_vm0, %v6946_v13  ;;  %v7160_v23 = vld [vmem:[%s8126_s2] ss:$0 sm:$0xff]  ;;  %v6801_v3 = vld [vmem:[%s8127_s3 + $0x108] sm:$0xff]  }
  0x18   : > { %6481 = vmatpush3.bf16.msra.mxu0 %v6782_v2  ;;  %730 = vst.msk [vmem:[#allocation2 + $0xe0] sm:$0xff] %vm531_vm0, %v6946_v13  ;;  %732 = vst.msk [vmem:[#allocation2 + $0xf0] sm:$0xff] %vm531_vm0, %v6946_v13  ;;  %6587 = vmatpush3.bf16.msra.mxu1 %v6793_v14  ;;  %v6803_v14 = vld [vmem:[%s8127_s3 + $0x110] sm:$0xff]  }
  0x19   : > { %6482 = vmatprep.subr.bf16.mxu0 %v6783_v4  ;;  %734 = vst.msk [vmem:[#allocation2 + $0x100] sm:$0xff] %vm531_vm0, %v6946_v13  ;;  %738 = vst.msk [vmem:[#allocation2 + $0x120] sm:$0xff] %vm531_vm0, %v6946_v13  ;;  %6588 = vmatprep.subr.bf16.mxu1 %v6794_v15 }
  0x1a   : > { %740 = vst.msk [vmem:[#allocation2 + $0x130] sm:$0xff] %vm531_vm0, %v6946_v13  ;;  %2527 = vst [vmem:[#allocation4] sm:$0xff] %v6946_v13 }
  0x1b   : > { %2528 = vst [vmem:[#allocation4 + $0x8] sm:$0xff] %v6946_v13  ;;  %727 = vst.msk [vmem:[#allocation2 + $0xc8] sm:$0x3] %vm702_vm1, %v6946_v13 }
  0x1c   : > { %6483 = vmatpush3.bf16.msra.mxu0 %v6783_v4  ;;  %703 = vst.msk [vmem:[#allocation2 + $0x8] sm:$0x3] %vm702_vm1, %v6946_v13  ;;  %705 = vst.msk [vmem:[#allocation2 + $0x18] sm:$0x3] %vm702_vm1, %v6946_v13  ;;  %6589 = vmatpush3.bf16.msra.mxu1 %v6794_v15 }
  0x1d   : > { %707 = vst.msk [vmem:[#allocation2 + $0x28] sm:$0x3] %vm702_vm1, %v6946_v13  ;;  %709 = vst.msk [vmem:[#allocation2 + $0x38] sm:$0x3] %vm702_vm1, %v6946_v13  ;;  %6590 = vmatprep.subr.bf16.mxu1 %v6795_v16  ;;  %6500 = vmatprep.subr.bf16.mxu0 %v6796_v17 }
  0x1e   : > { %711 = vst.msk [vmem:[#allocation2 + $0x48] sm:$0x3] %vm702_vm1, %v6946_v13  ;;  %713 = vst.msk [vmem:[#allocation2 + $0x58] sm:$0x3] %vm702_vm1, %v6946_v13 }
  0x1f   : > { %6485 = vmatmul.mubr.msk.bf16.vlgmr.msra.gmra.mrb[0].mxu0 %vm531_vm0, %v6785_v5  ;;  %715 = vst.msk [vmem:[#allocation2 + $0x68] sm:$0x3] %vm702_vm1, %v6946_v13  ;;  %717 = vst.msk [vmem:[#allocation2 + $0x78] sm:$0x3] %vm702_vm1, %v6946_v13 }
  0x20   : > { %6488 = vmatprep.mubr.msk.bf16.mxu0 %vm531_vm0, %v6786_v6  ;;  %719 = vst.msk [vmem:[#allocation2 + $0x88] sm:$0x3] %vm702_vm1, %v6946_v13  ;;  %721 = vst.msk [vmem:[#allocation2 + $0x98] sm:$0x3] %vm702_vm1, %v6946_v13  ;;  %6591 = vmatpush3.bf16.msra.mxu1 %v6795_v16 }
  0x21   : > { %723 = vst.msk [vmem:[#allocation2 + $0xa8] sm:$0x3] %vm702_vm1, %v6946_v13  ;;  %725 = vst.msk [vmem:[#allocation2 + $0xb8] sm:$0x3] %vm702_vm1, %v6946_v13  ;;  %6501 = vmatpush3.bf16.msra.mxu0 %v6796_v17  ;;  %6596 = vmatprep.subr.bf16.mxu1 %v7145_v20 }
  0x22   : > { %729 = vst.msk [vmem:[#allocation2 + $0xd8] sm:$0x3] %vm702_vm1, %v6946_v13  ;;  %731 = vst.msk [vmem:[#allocation2 + $0xe8] sm:$0x3] %vm702_vm1, %v6946_v13  ;;  %6502 = vmatprep.subr.bf16.mxu0 %v6797_v18 }
  0x23   : > { %733 = vst.msk [vmem:[#allocation2 + $0xf8] sm:$0x3] %vm702_vm1, %v6946_v13  ;;  %735 = vst.msk [vmem:[#allocation2 + $0x108] sm:$0x3] %vm702_vm1, %v6946_v13 }
  0x24   : > { %737 = vst.msk [vmem:[#allocation2 + $0x118] sm:$0x3] %vm702_vm1, %v6946_v13  ;;  %739 = vst.msk [vmem:[#allocation2 + $0x128] sm:$0x3] %vm702_vm1, %v6946_v13 }
  0x25   : > { %741 = vst.msk [vmem:[#allocation2 + $0x138] sm:$0x3] %vm702_vm1, %v6946_v13  ;;  %6503 = vmatpush3.bf16.msra.mxu0 %v6797_v18 }
  0x26   : > { %6504 = vmatprep.subr.bf16.mxu0 %v6798_v19 }
  0x27   : > { %6489 = vmatmul.mubr.msk.bf16.gmra.mrb[4].mxu0 %vm531_vm0, %v6787_v7 }
  0x28   : > { %6492 = vmatprep.mubr.msk.bf16.mxu0 %vm531_vm0, %v6788_v8 }
  0x29   : > { %6505 = vmatpush3.bf16.msra.mxu0 %v6798_v19 }
  0x2a   : > { %6506 = vmatprep.subr.bf16.mxu0 %v6800_v21 }
  0x2d   : > { %6507 = vmatpush3.bf16.msra.mxu0 %v6800_v21 }
  0x2e   : > { %6512 = vmatprep.subr.bf16.mxu0 %v7154_v22 }
  0x2f   : > { %6493 = vmatmul.mubr.msk.bf16.gmra.mrb[8].mxu0 %vm531_vm0, %v6789_v9 }
  0x30   : > { %6496 = vmatprep.mubr.msk.bf16.mxu0 %vm531_vm0, %v6790_v10 }
  0x37   : > { %6497 = vmatmul.mubr.msk.bf16.gmra.mrb[12].mxu0 %vm531_vm0, %v6791_v11 }
  0xf2   : > { %v6486_v24 = vpop.f32.mrb[0].mxu0 }
  0xf3   : > { %v599_v25 = vadd.f32 %v6486_v24, %v7160_v23  ;;  %v590_v26 = vpop.f32.mrb[1].mxu0  ;;  %v6805_v24 = vld [vmem:[%s8127_s3 + $0x118] sm:$0xff]  }
  0xf4   : > { %v591_v27 = vadd.f32 %v7160_v23, %v590_v26  ;;  %v6487_v28 = vpop.f32.mrb[2].mxu0 }
  0xf5   : > { %vm655_vm2 = vcmp.gt.f32.partialorder %v599_v25, 0.0  ;;  %v671_v29 = vmul.f32 0.2, %v599_v25  ;;  %v602_v30 = vadd.f32 %v6487_v28, %v7160_v23  ;;  %v593_v31 = vpop.f32.mrb[3].mxu0 }
  0xf6   : > { %vm653_vm3 = vcmp.gt.f32.partialorder %v591_v27, 0.0  ;;  %v669_v32 = vmul.f32 0.2, %v591_v27  ;;  %v594_v33 = vadd.f32 %v7160_v23, %v593_v31 }
  0xf7   : > { %v687_v34 = vsel %vm655_vm2, %v599_v25, %v671_v29  ;;  %vm656_vm4 = vcmp.gt.f32.partialorder %v602_v30, 0.0  ;;  %v672_v35 = vmul.f32 0.2, %v602_v30 }
  0xf8   : > { %745 = vst.msk [vmem:[#allocation2 + $0x110] sm:$0xff] %vm531_vm0, %v687_v34  ;;  %v685_v36 = vsel %vm653_vm3, %v591_v27, %v669_v32  ;;  %vm654_vm5 = vcmp.gt.f32.partialorder %v594_v33, 0.0  ;;  %v670_v37 = vmul.f32 0.2, %v594_v33 }
  0xf9   : > { %743 = vst.msk [vmem:[#allocation2 + $0xf0] sm:$0xff] %vm531_vm0, %v685_v36  ;;  %v688_v38 = vsel %vm656_vm4, %v602_v30, %v672_v35  ;;  %v777_v30 = vld [vmem:[#allocation2 + $0x50] sm:$0xff]  ;;  %v6807_v36 = vld [vmem:[%s8127_s3 + $0x120] sm:$0xff]  }
  0xfa   : > { %746 = vst.msk [vmem:[#allocation2 + $0x120] sm:$0xff] %vm531_vm0, %v688_v38  ;;  %v686_v39 = vsel %vm654_vm5, %v594_v33, %v670_v37  ;;  %v6490_v40 = vpop.f32.mrb[4].mxu0 }
  0xfb   : > { %744 = vst.msk [vmem:[#allocation2 + $0x100] sm:$0xff] %vm531_vm0, %v686_v39  ;;  %v615_v41 = vadd.f32 %v6490_v40, %v7160_v23  ;;  %v606_v42 = vpop.f32.mrb[5].mxu0 }
  0xfc   : > { %v607_v43 = vadd.f32 %v7160_v23, %v606_v42  ;;  %v6491_v44 = vpop.f32.mrb[6].mxu0  ;;  %v6804_v42 = vld [vmem:[%s8127_s3 + $0x8] sm:$0xff]  }
  0xfd   : > { %vm659_vm6 = vcmp.gt.f32.partialorder %v615_v41, 0.0  ;;  %v675_v45 = vmul.f32 0.2, %v615_v41  ;;  %v618_v46 = vadd.f32 %v6491_v44, %v7160_v23  ;;  %v609_v47 = vpop.f32.mrb[7].mxu0  ;;  %v6806_v44 = vld [vmem:[%s8127_s3 + $0x10] sm:$0xff]  }
  0xfe   : > { %vm657_vm7 = vcmp.gt.f32.partialorder %v607_v43, 0.0  ;;  %v673_v48 = vmul.f32 0.2, %v607_v43  ;;  %v610_v49 = vadd.f32 %v7160_v23, %v609_v47 }
  0xff   : > { %v691_v50 = vsel %vm659_vm6, %v615_v41, %v675_v45  ;;  %vm660_vm8 = vcmp.gt.f32.partialorder %v618_v46, 0.0  ;;  %v676_v51 = vmul.f32 0.2, %v618_v46  ;;  %v7184_v63 = vld [vmem:[#allocation2 + $0x112] sm:$0xff] }
 0x100   : > { %750 = vst.msk [vmem:[#allocation2 + $0xc2] sm:$0xff] %vm531_vm0, %v691_v50  ;;  %v689_v52 = vsel %vm657_vm7, %v607_v43, %v673_v48  ;;  %vm658_vm9 = vcmp.gt.f32.partialorder %v610_v49, 0.0  ;;  %v674_v53 = vmul.f32 0.2, %v610_v49  ;;  %v1434_v58 = vld [vmem:[#allocation2 + $0xf2] sm:$0xff]  ;;  %v762_v43 = vld [vmem:[#allocation2] sm:$0xff] }
 0x101   : > { %748 = vst.msk [vmem:[#allocation2 + $0xa2] sm:$0xff] %vm531_vm0, %v689_v52  ;;  %v692_v54 = vsel %vm660_vm8, %v618_v46, %v676_v51  ;;  %v7176_v55 = vld [vmem:[#allocation2 + $0x122] sm:$0xff] }
 0x102   : > { %751 = vst.msk [vmem:[#allocation2 + $0xd2] sm:$0xff] %vm531_vm0, %v692_v54  ;;  %v690_v56 = vsel %vm658_vm9, %v610_v49, %v674_v53  ;;  %v6494_v57 = vpop.f32.mrb[8].mxu0  ;;  %v7179_v59 = vld [vmem:[#allocation2 + $0x102] sm:$0xff]  ;;  %v1439_v2 = vpack.c.bf16 %v7176_v55, %v7184_v63 }
 0x103   : > { %749 = vst.msk [vmem:[#allocation2 + $0xb2] sm:$0xff] %vm531_vm0, %v690_v56  ;;  %v631_v60 = vadd.f32 %v6494_v57, %v7160_v23  ;;  %v622_v61 = vpop.f32.mrb[9].mxu0  ;;  %v1438_v62 = vpack.c.bf16 %v7179_v59, %v1434_v58  ;;  %v2216_v4 = vpack.c.bf16 %v7184_v63, %v7179_v59  ;;  %v6809_v52 = vld [vmem:[%s8127_s3 + $0x128] sm:$0xff]   ;;  %v6810_v54 = vld [vmem:[%s8127_s3 + $0x40] sm:$0xff]   ;;  %v6811_v56 = vld [vmem:[%s8127_s3 + $0x130] sm:$0xff]  }
 0x104   : > { %v623_v0 = vadd.f32 %v7160_v23, %v622_v61  ;;  %v6495_v1 = vpop.f32.mrb[10].mxu0  ;;  %v949_v57 = vld [vmem:[#allocation2 + $0x2] sm:$0xff] }
 0x105   : > { %vm663_vm10 = vcmp.gt.f32.partialorder %v631_v60, 0.0  ;;  %v679_v5 = vmul.f32 0.2, %v631_v60  ;;  %v634_v6 = vadd.f32 %v6495_v1, %v7160_v23  ;;  %v625_v7 = vpop.f32.mrb[11].mxu0  ;;  %6592 = vmatprep.mubr.msk.bf16.mxu1 %vm531_vm0, %v1438_v62  ;;  %v6812_v61 = vld [vmem:[%s8127_s3 + $0x48] sm:$0xff]   ;;  %v6814_v1 = vld [vmem:[%s8127_s3 + $0x50] sm:$0xff]  }
 0x106   : > { %vm661_vm11 = vcmp.gt.f32.partialorder %v623_v0, 0.0  ;;  %v677_v8 = vmul.f32 0.2, %v623_v0  ;;  %v626_v9 = vadd.f32 %v7160_v23, %v625_v7  ;;  %6593 = vmatmul.mubr.msk.bf16.vlgmr.msra.gmra.mrb[0].mxu1 %vm531_vm0, %v1439_v2  ;;  %v6815_v2 = vld [vmem:[%s8127_s3 + $0x140] sm:$0xff]   ;;  %v6816_v7 = vld [vmem:[%s8127_s3 + $0x58] sm:$0xff]  }
 0x107   : > { %v695_v10 = vsel %vm663_vm10, %v631_v60, %v679_v5  ;;  %vm664_vm12 = vcmp.gt.f32.partialorder %v634_v6, 0.0  ;;  %v680_v11 = vmul.f32 0.2, %v634_v6  ;;  %6597 = vmatpush3.bf16.msra.mxu1 %v7145_v20 }
 0x108   : > { %755 = vst.msk [vmem:[#allocation2 + $0x80] sm:$0xff] %vm531_vm0, %v695_v10  ;;  %v693_v12 = vsel %vm661_vm11, %v623_v0, %v677_v8  ;;  %vm662_vm13 = vcmp.gt.f32.partialorder %v626_v9, 0.0  ;;  %v678_v13 = vmul.f32 0.2, %v626_v9  ;;  %6598 = vmatprep.subr.bf16.mxu1 %v6801_v3  ;;  %v6813_v0 = vld [vmem:[%s8127_s3 + $0x138] sm:$0xff]   ;;  %v6817_v8 = vld [vmem:[%s8127_s3 + $0x148] sm:$0xff]  }
 0x109   : > { %753 = vst.msk [vmem:[#allocation2 + $0x60] sm:$0xff] %vm531_vm0, %v693_v12  ;;  %v696_v15 = vsel %vm664_vm12, %v634_v6, %v680_v11  ;;  %v6818_v10 = vld [vmem:[%s8127_s3 + $0x60] sm:$0xff]   ;;  %v6819_v11 = vld [vmem:[%s8127_s3 + $0x150] sm:$0xff]  }
 0x10a   : > { %756 = vst.msk [vmem:[#allocation2 + $0x90] sm:$0xff] %vm531_vm0, %v696_v15  ;;  %v694_v16 = vsel %vm662_vm13, %v626_v9, %v678_v13  ;;  %v6498_v17 = vpop.f32.mrb[12].mxu0  ;;  %v1046_v12 = vld [vmem:[#allocation2 + $0x52] sm:$0xff] }
 0x10b   : > { %754 = vst.msk [vmem:[#allocation2 + $0x70] sm:$0xff] %vm531_vm0, %v694_v16  ;;  %v647_v18 = vadd.f32 %v6498_v17, %v7160_v23  ;;  %v638_v19 = vpop.f32.mrb[13].mxu0  ;;  %6599 = vmatpush3.bf16.msra.mxu1 %v6801_v3  ;;  %v6820_v16 = vld [vmem:[%s8127_s3 + $0x68] sm:$0xff]  }
 0x10c   : > { %v639_v20 = vadd.f32 %v7160_v23, %v638_v19  ;;  %v6499_v21 = vpop.f32.mrb[14].mxu0  ;;  %6600 = vmatprep.subr.bf16.mxu1 %v6803_v14  ;;  %v6822_v19 = vld [vmem:[%s8127_s3 + $0x70] sm:$0xff]  }
 0x10d   : > { %vm667_vm14 = vcmp.gt.f32.partialorder %v647_v18, 0.0  ;;  %v683_v25 = vmul.f32 0.2, %v647_v18  ;;  %v650_v26 = vadd.f32 %v6499_v21, %v7160_v23  ;;  %v641_v27 = vpop.f32.mrb[15].mxu0 }
 0x10e   : > { %vm665_vm15 = vcmp.gt.f32.partialorder %v639_v20, 0.0  ;;  %v681_v28 = vmul.f32 0.2, %v639_v20  ;;  %v642_v29 = vadd.f32 %v7160_v23, %v641_v27  ;;  %v6825_v27 = vld [vmem:[%s8127_s3 + $0x168] sm:$0xff]  }
 0x10f   : > { %v699_v31 = vsel %vm667_vm14, %v647_v18, %v683_v25  ;;  %vm668_vm1 = vcmp.gt.f32.partialorder %v650_v26, 0.0  ;;  %v684_v32 = vmul.f32 0.2, %v650_v26  ;;  %6601 = vmatpush3.bf16.msra.mxu1 %v6803_v14  ;;  %v7219_v40 = vld [vmem:[#allocation2 + $0x80] sm:$0xff]  ;;  %v6821_v18 = vld [vmem:[%s8127_s3 + $0x158] sm:$0xff]  }
 0x110   : > { %760 = vst.msk [vmem:[#allocation2 + $0x32] sm:$0xff] %vm531_vm0, %v699_v31  ;;  %v697_v33 = vsel %vm665_vm15, %v639_v20, %v681_v28  ;;  %vm666_vm2 = vcmp.gt.f32.partialorder %v642_v29, 0.0  ;;  %v682_v34 = vmul.f32 0.2, %v642_v29  ;;  %v778_v35 = vld [vmem:[#allocation2 + $0x60] sm:$0xff]  ;;  %6602 = vmatprep.subr.bf16.mxu1 %v6805_v24  ;;  %v1144_v31 = vld [vmem:[#allocation2 + $0xb0] sm:$0xff] }
 0x111   : > { %758 = vst.msk [vmem:[#allocation2 + $0x12] sm:$0xff] %vm531_vm0, %v697_v33  ;;  %v700_v37 = vsel %vm668_vm1, %v650_v26, %v684_v32  ;;  %v781_v23 = vpack.c.bf16 %v778_v35, %v777_v30  ;;  %v1631_v3 = vld [vmem:[#allocation2 + $0x90] sm:$0xff]  ;;  %v1047_v13 = vld [vmem:[#allocation2 + $0x62] sm:$0xff]  ;;  %v6824_v26 = vld [vmem:[%s8127_s3 + $0x78] sm:$0xff]  }
 0x112   : > { %761 = vst.msk [vmem:[#allocation2 + $0x42] sm:$0xff] %vm531_vm0, %v700_v37  ;;  %v698_v38 = vsel %vm666_vm2, %v642_v29, %v682_v34  ;;  %v779_v39 = vld [vmem:[#allocation2 + $0x70] sm:$0xff]  ;;  %v1633_v6 = vpack.c.bf16 %v1631_v3, %v7219_v40  ;;  %v1050_v17 = vpack.c.bf16 %v1047_v13, %v1046_v12  ;;  %v6823_v20 = vld [vmem:[%s8127_s3 + $0x160] sm:$0xff]   ;;  %v6829_v37 = vld [vmem:[%s8127_s3 + $0x178] sm:$0xff]  }
 0x113   : > { %759 = vst.msk [vmem:[#allocation2 + $0x22] sm:$0xff] %vm531_vm0, %v698_v38  ;;  %6508 = vmatprep.mubr.msk.bf16.mxu0 %vm531_vm0, %v781_v23  ;;  %v782_v41 = vpack.c.bf16 %v7219_v40, %v779_v39  ;;  %6603 = vmatpush3.bf16.msra.mxu1 %v6805_v24  ;;  %v1632_v53 = vpack.c.bf16 %v779_v39, %v778_v35  ;;  %v1823_v24 = vld [vmem:[#allocation2 + $0x72] sm:$0xff]  ;;  %v6826_v29 = vld [vmem:[%s8127_s3 + $0x80] sm:$0xff]   ;;  %v6828_v35 = vld [vmem:[%s8127_s3 + $0x88] sm:$0xff]  }
 0x114   : > { %6608 = vmatprep.subr.bf16.mxu1 %v6807_v36  ;;  %v1826_v28 = vpack.c.bf16 %v1823_v24, %v1047_v13  ;;  %v6827_v30 = vld [vmem:[%s8127_s3 + $0x170] sm:$0xff]   ;;  %v1049_v32 = vld [vmem:[#allocation2 + $0x82] sm:$0xff] }
 0x115   : > { %6509 = vmatmul.mubr.msk.bf16.vlgmr.msra.gmra.mrb[16].mxu0 %vm531_vm0, %v782_v41  ;;  %v1051_v33 = vpack.c.bf16 %v1049_v32, %v1823_v24  ;;  %v1143_v34 = vld [vmem:[#allocation2 + $0xa0] sm:$0xff]  ;;  %v6830_v23 = vld [vmem:[%s8127_s3 + $0x90] sm:$0xff]  }
 0x116   : > { %6513 = vmatpush3.bf16.msra.mxu0 %v7154_v22  ;;  %v6808_v22 = vld [vmem:[%s8127_s3 + $0x18] sm:$0xff]   ;;  %v6831_v38 = vld [vmem:[%s8127_s3 + $0x180] sm:$0xff]   ;;  %v2021_v12 = vld [vmem:[#allocation2 + $0x130] sm:$0xff] }
 0x117   : > { %6514 = vmatprep.subr.bf16.mxu0 %v6804_v42  ;;  %v1533_v50 = vld [vmem:[#allocation2 + $0x30] sm:$0xff]  ;;  %v1921_v41 = vld [vmem:[#allocation2 + $0xc0] sm:$0xff] }
 0x118   : > { %v763_v45 = vld [vmem:[#allocation2 + $0x10] sm:$0xff]  ;;  %v6852_v24 = vld [vmem:[%s8127_s3 + $0x1e0] sm:$0xff]  }
 0x119   : > { %v766_v46 = vpack.c.bf16 %v763_v45, %v762_v43  ;;  %v1534_v47 = vld [vmem:[#allocation2 + $0x40] sm:$0xff]  ;;  %v950_v58 = vld [vmem:[#allocation2 + $0x12] sm:$0xff]  ;;  %v6833_v43 = vld [vmem:[%s8127_s3 + $0x188] sm:$0xff]  }
 0x11a   : > { %6515 = vmatpush3.bf16.msra.mxu0 %v6804_v42  ;;  %v1532_v48 = vld [vmem:[#allocation2 + $0x20] sm:$0xff]  ;;  %v1536_v51 = vpack.c.bf16 %v1534_v47, %v1533_v50  ;;  %v953_v62 = vpack.c.bf16 %v950_v58, %v949_v57  ;;  %v952_v14 = vld [vmem:[#allocation2 + $0x32] sm:$0xff] }
 0x11b   : > { %6520 = vmatprep.mubr.msk.bf16.mxu0 %vm531_vm0, %v766_v46  ;;  %6516 = vmatprep.subr.bf16.mxu0 %v6806_v44  ;;  %v1535_v49 = vpack.c.bf16 %v1532_v48, %v763_v45  ;;  %v767_v60 = vpack.c.bf16 %v1533_v50, %v1532_v48  ;;  %v1726_v5 = vld [vmem:[#allocation2 + $0x22] sm:$0xff]  ;;  %v1825_v39 = vld [vmem:[#allocation2 + $0x92] sm:$0xff] }
 0x11c   : > { %v1729_v9 = vpack.c.bf16 %v1726_v5, %v950_v58  ;;  %v954_v15 = vpack.c.bf16 %v952_v14, %v1726_v5  ;;  %v1728_v21 = vld [vmem:[#allocation2 + $0x42] sm:$0xff]  ;;  %v1827_v40 = vpack.c.bf16 %v1825_v39, %v1049_v32  ;;  %v6832_v42 = vld [vmem:[%s8127_s3 + $0x98] sm:$0xff]   ;;  %v1146_v46 = vld [vmem:[#allocation2 + $0xd0] sm:$0xff] }
 0x11d   : > { %6604 = vmatprep.mubr.msk.bf16.mxu1 %vm531_vm0, %v1535_v49  ;;  %v1730_v25 = vpack.c.bf16 %v1728_v21, %v952_v14  ;;  %v6834_v45 = vld [vmem:[%s8127_s3 + $0xa0] sm:$0xff]   ;;  %v6835_v47 = vld [vmem:[%s8127_s3 + $0x190] sm:$0xff]   ;;  %v1148_v49 = vpack.c.bf16 %v1146_v46, %v1921_v41  ;;  %v6851_v21 = vld [vmem:[%s8127_s3 + $0x1d8] sm:$0xff]  }
 0x11e   : > { %6517 = vmatpush3.bf16.msra.mxu0 %v6806_v44  ;;  %6605 = vmatmul.mubr.msk.bf16.vlgmr.msra.gmra.mrb[0].mxu1 %vm531_vm0, %v1536_v51  ;;  %v1924_v44 = vpack.c.bf16 %v1921_v41, %v1144_v31  ;;  %v1241_v48 = vld [vmem:[#allocation2 + $0x100] sm:$0xff]  ;;  %v1240_v50 = vld [vmem:[#allocation2 + $0xf0] sm:$0xff]  ;;  %v6836_v51 = vld [vmem:[%s8127_s3 + $0xa8] sm:$0xff]  }
 0x11f   : > { %6609 = vmatpush3.bf16.msra.mxu1 %v6807_v36  ;;  %6616 = vmatprep.mubr.msk.bf16.mxu1 %vm531_vm0, %v1632_v53  ;;  %v1147_v36 = vpack.c.bf16 %v1144_v31, %v1143_v34  ;;  %v6838_v53 = vld [vmem:[%s8127_s3 + $0xb0] sm:$0xff]   ;;  %v2116_v14 = vld [vmem:[#allocation2 + $0xc2] sm:$0xff] }
 0x120   : > { %6518 = vmatprep.subr.bf16.mxu0 %v6808_v22  ;;  %6610 = vmatprep.subr.bf16.mxu1 %v6809_v52  ;;  %v2019_v58 = vld [vmem:[#allocation2 + $0x110] sm:$0xff] }
 0x121   : > { %v1338_v3 = vld [vmem:[#allocation2 + $0xb2] sm:$0xff] }
 0x122   : > { %6519 = vmatpush3.bf16.msra.mxu0 %v6808_v22  ;;  %v1244_v22 = vpack.c.bf16 %v1241_v48, %v1240_v50 }
 0x123   : > { %6611 = vmatpush3.bf16.msra.mxu1 %v6809_v52  ;;  %6524 = vmatprep.subr.bf16.mxu0 %v6810_v54  ;;  %v6837_v52 = vld [vmem:[%s8127_s3 + $0x198] sm:$0xff]  }
 0x124   : > { %6612 = vmatprep.subr.bf16.mxu1 %v6811_v56 }
 0x125   : > { %6521 = vmatmul.mubr.msk.bf16.vlgmr.msra.gmra.mrb[16].mxu0 %vm531_vm0, %v767_v60  ;;  %v6840_v60 = vld [vmem:[%s8127_s3 + $0xb8] sm:$0xff]  }
 0x126   : > { %6525 = vmatpush3.bf16.msra.mxu0 %v6810_v54  ;;  %6532 = vmatprep.mubr.msk.bf16.mxu0 %vm531_vm0, %v953_v62  ;;  %v6839_v54 = vld [vmem:[%s8127_s3 + $0x1a0] sm:$0xff]   ;;  %v2022_v62 = vpack.c.bf16 %v2019_v58, %v1241_v48 }
 0x127   : > { %6613 = vmatpush3.bf16.msra.mxu1 %v6811_v56  ;;  %6526 = vmatprep.subr.bf16.mxu0 %v6812_v61  ;;  %v1923_v56 = vld [vmem:[#allocation2 + $0xe0] sm:$0xff] }
 0x128   : > { %6614 = vmatprep.subr.bf16.mxu1 %v6813_v0  ;;  %v1925_v57 = vpack.c.bf16 %v1923_v56, %v1146_v46 }
 0x12a   : > { %6527 = vmatpush3.bf16.msra.mxu0 %v6812_v61  ;;  %v6841_v61 = vld [vmem:[%s8127_s3 + $0x1a8] sm:$0xff]  }
 0x12b   : > { %6615 = vmatpush3.bf16.msra.mxu1 %v6813_v0  ;;  %6528 = vmatprep.subr.bf16.mxu0 %v6814_v1  ;;  %v6842_v0 = vld [vmem:[%s8127_s3 + $0xc0] sm:$0xff]  }
 0x12c   : > { %6620 = vmatprep.subr.bf16.mxu1 %v6815_v2 }
 0x12e   : > { %6529 = vmatpush3.bf16.msra.mxu0 %v6814_v1  ;;  %6617 = vmatmul.mubr.msk.bf16.vlgmr.msra.gmra.mrb[0].mxu1 %vm531_vm0, %v1633_v6  ;;  %v1243_v1 = vld [vmem:[#allocation2 + $0x120] sm:$0xff] }
 0x12f   : > { %6621 = vmatpush3.bf16.msra.mxu1 %v6815_v2  ;;  %6628 = vmatprep.mubr.msk.bf16.mxu1 %vm531_vm0, %v1729_v9  ;;  %v6843_v2 = vld [vmem:[%s8127_s3 + $0x1b0] sm:$0xff]   ;;  %v1245_v5 = vpack.c.bf16 %v1243_v1, %v2019_v58  ;;  %v1337_v6 = vld [vmem:[#allocation2 + $0xa2] sm:$0xff]  ;;  %v6845_v9 = vld [vmem:[%s8127_s3 + $0x1b8] sm:$0xff]   ;;  %v2023_v13 = vpack.c.bf16 %v2021_v12, %v1243_v1 }
 0x130   : > { %6530 = vmatprep.subr.bf16.mxu0 %v6816_v7  ;;  %6622 = vmatprep.subr.bf16.mxu1 %v6817_v8 }
 0x132   : > { %6531 = vmatpush3.bf16.msra.mxu0 %v6816_v7  ;;  %v6844_v7 = vld [vmem:[%s8127_s3 + $0xc8] sm:$0xff]  }
 0x133   : > { %6623 = vmatpush3.bf16.msra.mxu1 %v6817_v8  ;;  %6536 = vmatprep.subr.bf16.mxu0 %v6818_v10  ;;  %v1341_v8 = vpack.c.bf16 %v1338_v3, %v1337_v6 }
 0x134   : > { %6624 = vmatprep.subr.bf16.mxu1 %v6819_v11 }
 0x135   : > { %6533 = vmatmul.mubr.msk.bf16.vlgmr.msra.gmra.mrb[16].mxu0 %vm531_vm0, %v954_v15  ;;  %v6848_v15 = vld [vmem:[%s8127_s3 + $0xd8] sm:$0xff]  }
 0x136   : > { %6537 = vmatpush3.bf16.msra.mxu0 %v6818_v10  ;;  %6544 = vmatprep.mubr.msk.bf16.mxu0 %vm531_vm0, %v1050_v17  ;;  %v6846_v10 = vld [vmem:[%s8127_s3 + $0xd0] sm:$0xff]   ;;  %v2119_v17 = vpack.c.bf16 %v2116_v14, %v1338_v3 }
 0x137   : > { %6625 = vmatpush3.bf16.msra.mxu1 %v6819_v11  ;;  %6538 = vmatprep.subr.bf16.mxu0 %v6820_v16  ;;  %v6847_v11 = vld [vmem:[%s8127_s3 + $0x1c0] sm:$0xff]  }
 0x138   : > { %6626 = vmatprep.subr.bf16.mxu1 %v6821_v18 }
 0x13a   : > { %6539 = vmatpush3.bf16.msra.mxu0 %v6820_v16  ;;  %v6849_v16 = vld [vmem:[%s8127_s3 + $0x1c8] sm:$0xff]  }
 0x13b   : > { %6627 = vmatpush3.bf16.msra.mxu1 %v6821_v18  ;;  %6540 = vmatprep.subr.bf16.mxu0 %v6822_v19  ;;  %v1340_v18 = vld [vmem:[#allocation2 + $0xd2] sm:$0xff] }
 0x13c   : > { %6632 = vmatprep.subr.bf16.mxu1 %v6823_v20 }
 0x13e   : > { %6541 = vmatpush3.bf16.msra.mxu0 %v6822_v19  ;;  %6629 = vmatmul.mubr.msk.bf16.vlgmr.msra.gmra.mrb[0].mxu1 %vm531_vm0, %v1730_v25  ;;  %v6850_v19 = vld [vmem:[%s8127_s3 + $0x1d0] sm:$0xff]   ;;  %v2118_v25 = vld [vmem:[#allocation2 + $0xe2] sm:$0xff] }
 0x13f   : > { %6633 = vmatpush3.bf16.msra.mxu1 %v6823_v20  ;;  %6640 = vmatprep.mubr.msk.bf16.mxu1 %vm531_vm0, %v1826_v28  ;;  %v1342_v20 = vpack.c.bf16 %v1340_v18, %v2116_v14  ;;  %v6854_v28 = vld [vmem:[%s8127_s3 + $0x1f0] sm:$0xff]  }
 0x140   : > { %6542 = vmatprep.subr.bf16.mxu0 %v6824_v26  ;;  %6634 = vmatprep.subr.bf16.mxu1 %v6825_v27 }
 0x142   : > { %6543 = vmatpush3.bf16.msra.mxu0 %v6824_v26  ;;  %v2120_v26 = vpack.c.bf16 %v2118_v25, %v1340_v18 }
 0x143   : > { %6635 = vmatpush3.bf16.msra.mxu1 %v6825_v27  ;;  %6548 = vmatprep.subr.bf16.mxu0 %v6826_v29  ;;  %v6853_v27 = vld [vmem:[%s8127_s3 + $0x1e8] sm:$0xff]  }
 0x144   : > { %6636 = vmatprep.subr.bf16.mxu1 %v6827_v30 }
 0x145   : > { %6545 = vmatmul.mubr.msk.bf16.vlgmr.msra.gmra.mrb[16].mxu0 %vm531_vm0, %v1051_v33 }
 0x146   : > { %6549 = vmatpush3.bf16.msra.mxu0 %v6826_v29  ;;  %6556 = vmatprep.mubr.msk.bf16.mxu0 %vm531_vm0, %v1147_v36  ;;  %v6855_v29 = vld [vmem:[%s8127_s3 + $0x1f8] sm:$0xff]  }
 0x147   : > { %6637 = vmatpush3.bf16.msra.mxu1 %v6827_v30  ;;  %6550 = vmatprep.subr.bf16.mxu0 %v6828_v35  ;;  %v2215_v30 = vld [vmem:[#allocation2 + $0x132] sm:$0xff] }
 0x148   : > { %6638 = vmatprep.subr.bf16.mxu1 %v6829_v37  ;;  %v2217_v31 = vpack.c.bf16 %v2215_v30, %v7176_v55 }
 0x14a   : > { %6551 = vmatpush3.bf16.msra.mxu0 %v6828_v35  ;;  %v5942_v35 = vld [vmem:[%s8128_s4] ss:$0 sm:$0xff] }
 0x14b   : > { %6639 = vmatpush3.bf16.msra.mxu1 %v6829_v37  ;;  %6552 = vmatprep.subr.bf16.mxu0 %v6830_v23 }
 0x14c   : > { %6644 = vmatprep.subr.bf16.mxu1 %v6831_v38 }
 0x14e   : > { %6553 = vmatpush3.bf16.msra.mxu0 %v6830_v23  ;;  %6641 = vmatmul.mubr.msk.bf16.vlgmr.msra.gmra.mrb[0].mxu1 %vm531_vm0, %v1827_v40 }
 0x14f   : > { %6645 = vmatpush3.bf16.msra.mxu1 %v6831_v38  ;;  %6652 = vmatprep.mubr.msk.bf16.mxu1 %vm531_vm0, %v1924_v44 }
 0x150   : > { %6554 = vmatprep.subr.bf16.mxu0 %v6832_v42  ;;  %6646 = vmatprep.subr.bf16.mxu1 %v6833_v43 }
 0x152   : > { %6555 = vmatpush3.bf16.msra.mxu0 %v6832_v42 }
 0x153   : > { %6647 = vmatpush3.bf16.msra.mxu1 %v6833_v43  ;;  %6560 = vmatprep.subr.bf16.mxu0 %v6834_v45 }
 0x154   : > { %6648 = vmatprep.subr.bf16.mxu1 %v6835_v47 }
 0x155   : > { %6557 = vmatmul.mubr.msk.bf16.vlgmr.msra.gmra.mrb[16].mxu0 %vm531_vm0, %v1148_v49 }
 0x156   : > { %6561 = vmatpush3.bf16.msra.mxu0 %v6834_v45  ;;  %6568 = vmatprep.mubr.msk.bf16.mxu0 %vm531_vm0, %v1244_v22 }
 0x157   : > { %6649 = vmatpush3.bf16.msra.mxu1 %v6835_v47  ;;  %6562 = vmatprep.subr.bf16.mxu0 %v6836_v51 }
 0x158   : > { %6650 = vmatprep.subr.bf16.mxu1 %v6837_v52 }
 0x15a   : > { %6563 = vmatpush3.bf16.msra.mxu0 %v6836_v51 }
 0x15b   : > { %6651 = vmatpush3.bf16.msra.mxu1 %v6837_v52  ;;  %6564 = vmatprep.subr.bf16.mxu0 %v6838_v53 }
 0x15c   : > { %6656 = vmatprep.subr.bf16.mxu1 %v6839_v54 }
 0x15e   : > { %6565 = vmatpush3.bf16.msra.mxu0 %v6838_v53  ;;  %6653 = vmatmul.mubr.msk.bf16.vlgmr.msra.gmra.mrb[0].mxu1 %vm531_vm0, %v1925_v57 }
 0x15f   : > { %6657 = vmatpush3.bf16.msra.mxu1 %v6839_v54  ;;  %6664 = vmatprep.mubr.msk.bf16.mxu1 %vm531_vm0, %v2022_v62 }
 0x160   : > { %6566 = vmatprep.subr.bf16.mxu0 %v6840_v60  ;;  %6658 = vmatprep.subr.bf16.mxu1 %v6841_v61 }
 0x162   : > { %6567 = vmatpush3.bf16.msra.mxu0 %v6840_v60 }
 0x163   : > { %6659 = vmatpush3.bf16.msra.mxu1 %v6841_v61  ;;  %6572 = vmatprep.subr.bf16.mxu0 %v6842_v0 }
 0x164   : > { %6660 = vmatprep.subr.bf16.mxu1 %v6843_v2 }
 0x165   : > { %6569 = vmatmul.mubr.msk.bf16.vlgmr.msra.gmra.mrb[16].mxu0 %vm531_vm0, %v1245_v5 }
 0x166   : > { %6573 = vmatpush3.bf16.msra.mxu0 %v6842_v0  ;;  %6580 = vmatprep.mubr.msk.bf16.mxu0 %vm531_vm0, %v1341_v8 }
 0x167   : > { %6661 = vmatpush3.bf16.msra.mxu1 %v6843_v2  ;;  %6574 = vmatprep.subr.bf16.mxu0 %v6844_v7 }
 0x168   : > { %6662 = vmatprep.subr.bf16.mxu1 %v6845_v9 }
 0x16a   : > { %6575 = vmatpush3.bf16.msra.mxu0 %v6844_v7 }
 0x16b   : > { %6663 = vmatpush3.bf16.msra.mxu1 %v6845_v9  ;;  %6576 = vmatprep.subr.bf16.mxu0 %v6846_v10 }
 0x16c   : > { %6668 = vmatprep.subr.bf16.mxu1 %v6847_v11 }
 0x16e   : > { %6577 = vmatpush3.bf16.msra.mxu0 %v6846_v10  ;;  %6665 = vmatmul.mubr.msk.bf16.vlgmr.msra.gmra.mrb[0].mxu1 %vm531_vm0, %v2023_v13 }
 0x16f   : > { %6669 = vmatpush3.bf16.msra.mxu1 %v6847_v11  ;;  %6676 = vmatprep.mubr.msk.bf16.mxu1 %vm531_vm0, %v2119_v17  ;;  %v6947_v17 = vmov 1966171168  }
 0x170   : > { %6578 = vmatprep.subr.bf16.mxu0 %v6848_v15  ;;  %6670 = vmatprep.subr.bf16.mxu1 %v6849_v16  ;;  %v2397_v18 = vunpack.c.l.s4 %v6947_v17 }
 0x172   : > { %6579 = vmatpush3.bf16.msra.mxu0 %v6848_v15 }
 0x173   : > { %6671 = vmatpush3.bf16.msra.mxu1 %v6849_v16  ;;  %v5943_v16 = vld [vmem:[%s8129_s5] ss:$0 sm:$0xff] }
 0x174   : > { %6672 = vmatprep.subr.bf16.mxu1 %v6850_v19 }
 0x175   : > { %6581 = vmatmul.mubr.msk.bf16.vlgmr.msra.gmra.mrb[16].mxu0 %vm531_vm0, %v1342_v20 }
 0x177   : > { %6673 = vmatpush3.bf16.msra.mxu1 %v6850_v19  ;;  %v2399_v19 = vlaneseq }
 0x178   : > { %6674 = vmatprep.subr.bf16.mxu1 %v6851_v21 }
 0x17b   : > { %6675 = vmatpush3.bf16.msra.mxu1 %v6851_v21 }
 0x17c   : > { %6680 = vmatprep.subr.bf16.mxu1 %v6852_v24 }
 0x17e   : > { %6677 = vmatmul.mubr.msk.bf16.vlgmr.msra.gmra.mrb[0].mxu1 %vm531_vm0, %v2120_v26  ;;  %v5944_v26 = vld [vmem:[%s8130_s6] ss:$0 sm:$0xff] }
 0x17f   : > { %6681 = vmatpush3.bf16.msra.mxu1 %v6852_v24  ;;  %6688 = vmatprep.mubr.msk.bf16.mxu1 %vm531_vm0, %v2216_v4 }
 0x180   : > { %6682 = vmatprep.subr.bf16.mxu1 %v6853_v27 }
 0x183   : > { %6683 = vmatpush3.bf16.msra.mxu1 %v6853_v27 }
 0x184   : > { %6684 = vmatprep.subr.bf16.mxu1 %v6854_v28 }
 0x187   : > { %6685 = vmatpush3.bf16.msra.mxu1 %v6854_v28 }
 0x188   : > { %6686 = vmatprep.subr.bf16.mxu1 %v6855_v29 }
 0x18b   : > { %6687 = vmatpush3.bf16.msra.mxu1 %v6855_v29 }
 0x18e   : > { %6689 = vmatmul.mubr.msk.bf16.vlgmr.msra.gmra.mrb[0].mxu1 %vm531_vm0, %v2217_v31  ;;  %v2398_v31 = vunpack.c.0.s8 %v2397_v18 }
 0x248   : > { %v6582_v59 = vpop.f32.mrb[16].mxu0 }
 0x249   : > { %v1415_v63 = vpop.f32.mrb[17].mxu0 }
 0x24a   : > { %v6583_v4 = vpop.f32.mrb[18].mxu0 }
 0x24b   : > { %v1418_v32 = vpop.f32.mrb[19].mxu0 }
 0x261   : > { %v6690_v33 = vpop.f32.mrb[0].mxu1 }
 0x262   : > { %v6692_v34 = vadd.f32 %v6690_v33, %v6582_v59  ;;  %v2290_v36 = vpop.f32.mrb[1].mxu1  ;;  %v2400_v59 = vshrl.u32 %v2399_v19, 7 }
 0x263   : > { %v6693_v37 = vadd.f32 %v2290_v36, %v1415_v63  ;;  %v6691_v23 = vpop.f32.mrb[2].mxu1 }
 0x264   : > { %v6694_v38 = vadd.f32 %v6691_v23, %v6583_v4  ;;  %v2293_v39 = vpop.f32.mrb[3].mxu1  ;;  %v2318_v55 = vadd.f32 %v6692_v34, %v5942_v35  ;;  %v2401_v23 = vsub.s32 %v2398_v31, %v2400_v59 }
 0x265   : > { %v2316_v40 = vadd.f32 %v6693_v37, %v5942_v35  ;;  %v6695_v41 = vadd.f32 %v2293_v39, %v1418_v32 }
 0x266   : > { %v2319_v44 = vadd.f32 %v6694_v38, %v5942_v35  ;;  %v2335_v47 = vmul.f32 %v2318_v55, %v2318_v55 }
 0x267   : > { %v2317_v42 = vadd.f32 %v6695_v41, %v5942_v35  ;;  %v2333_v43 = vmul.f32 %v2316_v40, %v2316_v40 }
 0x268   : > { %v2336_v50 = vmul.f32 %v2319_v44, %v2319_v44 }
 0x269   : > { %v2322_v45 = vadd.f32 %v2317_v42, %v2316_v40  ;;  %v2334_v46 = vmul.f32 %v2317_v42, %v2317_v42 }
 0x26b   : > { %v2323_v48 = vadd.f32 %v2322_v45, %v2318_v55  ;;  %v2337_v49 = vadd.f32 %v2334_v46, %v2333_v43 }
 0x26d   : > { %v2324_v51 = vadd.f32 %v2323_v48, %v2319_v44  ;;  %v2338_v22 = vadd.f32 %v2337_v49, %v2335_v47 }
 0x26f   : > { %v2325_v52 = vrot.slane %v2324_v51, 4  ;;  %v2339_v53 = vadd.f32 %v2338_v22, %v2336_v50 }
 0x271   : > { %v2326_v54 = vadd.f32 %v2325_v52, %v2324_v51  ;;  %v2340_v56 = vrot.slane %v2339_v53, 4 }
 0x273   : > { %v2327_v57 = vrot.slane %v2326_v54, 2  ;;  %v2341_v58 = vadd.f32 %v2340_v56, %v2339_v53 }
 0x275   : > { %v2328_v60 = vadd.f32 %v2327_v57, %v2326_v54  ;;  %v2342_v61 = vrot.slane %v2341_v58, 2 }
 0x277   : > { %v2329_v62 = vrot.slane %v2328_v60, 1  ;;  %v2343_v0 = vadd.f32 %v2342_v61, %v2341_v58 }
 0x279   : > { %v2330_v1 = vadd.f32 %v2329_v62, %v2328_v60  ;;  %v2344_v2 = vrot.slane %v2343_v0, 1 }
 0x27b   : > { %v2332_v3 = vmul.f32 0.03125, %v2330_v1  ;;  %v2345_v5 = vadd.f32 %v2344_v2, %v2343_v0 }
 0x27d   : > { %v2346_v6 = vmul.f32 0.03125, %v2345_v5  ;;  %v2347_v7 = vmul.f32 %v2332_v3, %v2332_v3  ;;  %v2350_v8 = vsub.f32 %v2316_v40, %v2332_v3  ;;  %v2351_v9 = vsub.f32 %v2317_v42, %v2332_v3 }
 0x27e   : > { %v2352_v10 = vsub.f32 %v2318_v55, %v2332_v3  ;;  %v2353_v11 = vsub.f32 %v2319_v44, %v2332_v3 }
 0x27f   : > { %v2348_v12 = vsub.f32 %v2346_v6, %v2347_v7 }
 0x281   : > { %v2349_v13 = vmax.f32 %v2348_v12, 0.0 }
 0x283   : > { %v2354_v14 = vadd.f32 1e-05, %v2349_v13 }
 0x285   : > { %6856 = vrsqrt.f32 %v2354_v14 }
 0x28f   : > { %v6857_v15 = vpop.eup %6856 }
 0x290   : > { %v2356_v20 = vmul.f32 %v6857_v15, %v2350_v8  ;;  %v2357_v21 = vmul.f32 %v6857_v15, %v2351_v9  ;;  %v2358_v24 = vmul.f32 %v6857_v15, %v2352_v10  ;;  %v2359_v25 = vmul.f32 %v6857_v15, %v2353_v11 }
 0x292   : > { %v2366_v27 = vmul.f32 %v5943_v16, %v2356_v20  ;;  %v2367_v28 = vmul.f32 %v5943_v16, %v2357_v21  ;;  %v2368_v29 = vmul.f32 %v5943_v16, %v2358_v24  ;;  %v2369_v30 = vmul.f32 %v5943_v16, %v2359_v25 }
 0x294   : > { %v2376_v63 = vadd.f32 %v5944_v26, %v2366_v27  ;;  %v2377_v4 = vadd.f32 %v5944_v26, %v2367_v28  ;;  %v2378_v32 = vadd.f32 %v5944_v26, %v2368_v29  ;;  %v2379_v33 = vadd.f32 %v5944_v26, %v2369_v30 }
 0x296   : > { %vm2380_vm0 = vcmp.gt.f32.partialorder %v2376_v63, 0.0  ;;  %vm2381_vm3 = vcmp.gt.f32.partialorder %v2377_v4, 0.0  ;;  %vm2382_vm4 = vcmp.gt.f32.partialorder %v2378_v32, 0.0  ;;  %vm2383_vm5 = vcmp.gt.f32.partialorder %v2379_v33, 0.0 }
 0x297   : > { %v2384_v34 = vmul.f32 0.2, %v2376_v63  ;;  %v2385_v35 = vmul.f32 0.2, %v2377_v4  ;;  %v2386_v36 = vmul.f32 0.2, %v2378_v32 }
 0x298   : > { %v2387_v37 = vmul.f32 0.2, %v2379_v33 }
 0x299   : > { %v2388_v38 = vsel %vm2380_vm0, %v2376_v63, %v2384_v34  ;;  %v2389_v39 = vsel %vm2381_vm3, %v2377_v4, %v2385_v35  ;;  %v2390_v40 = vsel %vm2382_vm4, %v2378_v32, %v2386_v36 }
 0x29a   : > { %v2391_v41 = vsel %vm2383_vm5, %v2379_v33, %v2387_v37  ;;  %v2392_v55 = vpack.c.bf16 %v2389_v39, %v2388_v38  ;;  %v5946_v42 = vpack.c.bf16 %v2389_v39, %v2389_v39 }
 0x29b   : > { %v2393_v43 = vpack.c.bf16 %v2391_v41, %v2390_v40  ;;  %v5950_v44 = vpack.c.bf16 %v2391_v41, %v2391_v41 }
 0x29c   : > { %2394 = vst [vmem:[#allocation3] sm:$0x1] %v2392_v55  ;;  %v2402_v45 = vrot.slane %v2392_v55, %v2401_v23  ;;  %v2433_v46 = vrot.slane %v5946_v42, %v2401_v23 }
 0x29d   : > { %2461 = vst [vmem:[#allocation3 + $0x8] sm:$0x1] %v2393_v43  ;;  %v2469_v47 = vrot.slane %v2393_v43, %v2401_v23  ;;  %v2500_v48 = vrot.slane %v5950_v44, %v2401_v23 }
 0x29e   : > { %v2403_v49 = vcombine.high %v2402_v45, %v2402_v45  ;;  %v2410_v50 = vrot.slane %v2402_v45, %v2401_v23  ;;  %v2440_v51 = vrot.slane %v2433_v46, %v2401_v23  ;;  %5947 = vst.sshfl [vmem:[#allocation3 + $0x4] sm:$0x1 pattern:$0x73625140] %v2433_v46  ;;  %v2444_v22 = vcombine.high %v2433_v46, %v2433_v46 }
 0x29f   : > { %v2470_v52 = vcombine.high %v2469_v47, %v2469_v47  ;;  %v2477_v53 = vrot.slane %v2469_v47, %v2401_v23  ;;  %v2507_v54 = vrot.slane %v2500_v48, %v2401_v23  ;;  %5951 = vst.sshfl [vmem:[#allocation3 + $0xc] sm:$0x1 pattern:$0x73625140] %v2500_v48  ;;  %v2511_v56 = vcombine.high %v2500_v48, %v2500_v48 }
 0x2a0   : > { %v2417_v57 = vrot.slane %v2403_v49, %v2401_v23  ;;  %5945 = vst.sshfl [vmem:[#allocation3 + $0x1] sm:$0x1 pattern:$0x73625140] %v2403_v49  ;;  %v2420_v58 = vcombine.high %v2410_v50, %v2410_v50  ;;  %v2451_v60 = vrot.slane %v2444_v22, %v2401_v23  ;;  %v2454_v61 = vcombine.high %v2440_v51, %v2440_v51 }
 0x2a1   : > { %5948 = vst.sshfl [vmem:[#allocation3 + $0x5] sm:$0x1 pattern:$0x73625140] %v2444_v22  ;;  %v2484_v62 = vrot.slane %v2470_v52, %v2401_v23  ;;  %v2487_v0 = vcombine.high %v2477_v53, %v2477_v53  ;;  %v2518_v1 = vrot.slane %v2511_v56, %v2401_v23  ;;  %v2521_v2 = vcombine.high %v2507_v54, %v2507_v54 }
 0x2a2   : > { %5949 = vst.sshfl [vmem:[#allocation3 + $0x9] sm:$0x1 pattern:$0x73625140] %v2470_v52  ;;  %2422 = vst [vmem:[#allocation3 + $0x2] sm:$0x1] %v2420_v58  ;;  %v2423_v3 = vcombine.high %v2417_v57, %v2417_v57  ;;  %v2457_v5 = vcombine.high %v2451_v60, %v2451_v60 }
 0x2a3   : > { %5952 = vst.sshfl [vmem:[#allocation3 + $0xd] sm:$0x1 pattern:$0x73625140] %v2511_v56  ;;  %2456 = vst [vmem:[#allocation3 + $0x6] sm:$0x1] %v2454_v61  ;;  %v2490_v6 = vcombine.high %v2484_v62, %v2484_v62  ;;  %v2524_v7 = vcombine.high %v2518_v1, %v2518_v1 }
 0x2a4   : > { %2489 = vst [vmem:[#allocation3 + $0xa] sm:$0x1] %v2487_v0  ;;  %2523 = vst [vmem:[#allocation3 + $0xe] sm:$0x1] %v2521_v2 }
 0x2a5   : > { %2425 = vst [vmem:[#allocation3 + $0x3] sm:$0x1] %v2423_v3  ;;  %2459 = vst [vmem:[#allocation3 + $0x7] sm:$0x1] %v2457_v5 }
 0x2a6   : > { %2492 = vst [vmem:[#allocation3 + $0xb] sm:$0x1] %v2490_v6  ;;  %2526 = vst [vmem:[#allocation3 + $0xf] sm:$0x1] %v2524_v7 }
 0x2a7 PF: > { %v2534_v8 = vld [vmem:[%s7034_s14] sm:$0xff]  ;;  %v2535_v10 = vld [vmem:[%s7034_s14 + $0x8] sm:$0xff]  ;;  %v6948_v41 = vmov 1966171168   ;;  %v2802_v42 = vlaneseq  ;;  %s5953_s21 = sshll.u32 %s7026_s26, 2  ;;  %p6211_p5 = scmp.ne.s32.totalorder %s7026_s26, 3 }
 0x2a8   : > { %v2538_v9 = vld [vmem:[%s7034_s14 + $0x20] sm:$0xff]  ;;  %v2539_v12 = vld [vmem:[%s7034_s14 + $0x28] sm:$0xff]  ;;  %v2800_v55 = vunpack.c.l.s4 %v6948_v41  ;;  %s2532_s22 = scalar_lea.vmem [#allocation3], %s5953_s21  ;;  %vm4599_vm6 = vcmask (!%p6211_p5), 1041408  }
 0x2a9   : > { %v5956_v11 = vcombine.high %v2534_v8, %v2538_v9  ;;  %v5955_v13 = vcombine.low %v2534_v8, %v2538_v9  ;;  %v2542_v14 = vld [vmem:[%s7034_s14 + $0x40] sm:$0xff]  ;;  %v5958_v16 = vcombine.high %v2535_v10, %v2539_v12  ;;  %v5957_v17 = vcombine.low %v2535_v10, %v2539_v12  ;;  %v2543_v19 = vld [vmem:[%s7034_s14 + $0x48] sm:$0xff] }
 0x2aa   : > { %v2546_v15 = vld [vmem:[%s7034_s14 + $0x60] sm:$0xff]  ;;  %v2547_v20 = vld [vmem:[%s7034_s14 + $0x68] sm:$0xff]  ;;  %v2801_v51 = vunpack.c.0.s8 %v2800_v55  ;;  %v7443_v22 = vshrl.u32 %v2802_v42, 7 }
 0x2ab   : > { %v5964_v18 = vcombine.high %v2542_v14, %v2546_v15  ;;  %v2550_v21 = vld [vmem:[%s7034_s14 + $0x80] sm:$0xff]  ;;  %4099 = vmatprep.subr.bf16.mxu0 %v5956_v11  ;;  %v5966_v24 = vcombine.high %v2543_v19, %v2547_v20  ;;  %v2551_v26 = vld [vmem:[%s7034_s14 + $0x88] sm:$0xff]  ;;  %4181 = vmatprep.subr.bf16.mxu1 %v5958_v16  ;;  %v5963_v28 = vcombine.low %v2542_v14, %v2546_v15 }
 0x2ac   : > { %v2554_v25 = vld [vmem:[%s7034_s14 + $0xa0] sm:$0xff]  ;;  %v2555_v27 = vld [vmem:[%s7034_s14 + $0xa8] sm:$0xff]  ;;  %4100 = vmatpush1.bf16.msra.mxu0 %v5955_v13  ;;  %4182 = vmatpush1.bf16.msra.mxu1 %v5957_v17  ;;  %v5965_v29 = vcombine.low %v2543_v19, %v2547_v20  ;;  %v7450_v62 = vsub.s32 %v2801_v51, %v7443_v22 }
 0x2ad   : > { %4101 = vmatprep.subr.bf16.mxu0 %v5964_v18  ;;  %v5972_v30 = vcombine.high %v2550_v21, %v2554_v25  ;;  %4183 = vmatprep.subr.bf16.mxu1 %v5966_v24  ;;  %v5974_v31 = vcombine.high %v2551_v26, %v2555_v27  ;;  %v2558_v59 = vld [vmem:[%s7034_s14 + $0xc0] sm:$0xff]  ;;  %v2559_v4 = vld [vmem:[%s7034_s14 + $0xc8] sm:$0xff]  ;;  %v5971_v33 = vcombine.low %v2550_v21, %v2554_v25 }
 0x2ae   : > { %v2562_v63 = vld [vmem:[%s7034_s14 + $0xe0] sm:$0xff]  ;;  %v2563_v32 = vld [vmem:[%s7034_s14 + $0xe8] sm:$0xff]  ;;  %v5973_v34 = vcombine.low %v2551_v26, %v2555_v27 }
 0x2af   : > { %v5980_v35 = vcombine.high %v2558_v59, %v2562_v63  ;;  %v5982_v36 = vcombine.high %v2559_v4, %v2563_v32  ;;  %v2566_v37 = vld [vmem:[%s7034_s14 + $0x100] sm:$0xff]  ;;  %v2567_v38 = vld [vmem:[%s7034_s14 + $0x108] sm:$0xff]  ;;  %v5979_v40 = vcombine.low %v2558_v59, %v2562_v63  ;;  %v5981_v43 = vcombine.low %v2559_v4, %v2563_v32 }
 0x2b0   : > { %4102 = vmatpush1.bf16.msra.mxu0 %v5963_v28  ;;  %4184 = vmatpush1.bf16.msra.mxu1 %v5965_v29  ;;  %v2570_v23 = vld [vmem:[%s7034_s14 + $0x120] sm:$0xff]  ;;  %v2571_v39 = vld [vmem:[%s7034_s14 + $0x128] sm:$0xff] }
 0x2b1   : > { %4103 = vmatprep.subr.bf16.mxu0 %v5972_v30  ;;  %4185 = vmatprep.subr.bf16.mxu1 %v5974_v31  ;;  %v5988_v44 = vcombine.high %v2566_v37, %v2570_v23  ;;  %v5990_v45 = vcombine.high %v2567_v38, %v2571_v39  ;;  %v2574_v46 = vld [vmem:[%s7034_s14 + $0x140] sm:$0xff]  ;;  %v2575_v48 = vld [vmem:[%s7034_s14 + $0x148] sm:$0xff]  ;;  %v5987_v50 = vcombine.low %v2566_v37, %v2570_v23 }
 0x2b2   : > { %v2578_v47 = vld [vmem:[%s7034_s14 + $0x160] sm:$0xff]  ;;  %v2579_v49 = vld [vmem:[%s7034_s14 + $0x168] sm:$0xff]  ;;  %v5989_v52 = vcombine.low %v2567_v38, %v2571_v39 }
 0x2b3   : > { %v5996_v53 = vcombine.high %v2574_v46, %v2578_v47  ;;  %v5998_v54 = vcombine.high %v2575_v48, %v2579_v49  ;;  %v2582_v56 = vld [vmem:[%s7034_s14 + $0x180] sm:$0xff]  ;;  %v2583_v58 = vld [vmem:[%s7034_s14 + $0x188] sm:$0xff]  ;;  %v5995_v61 = vcombine.low %v2574_v46, %v2578_v47  ;;  %v5997_v0 = vcombine.low %v2575_v48, %v2579_v49 }
 0x2b4   : > { %4104 = vmatpush1.bf16.msra.mxu0 %v5971_v33  ;;  %4186 = vmatpush1.bf16.msra.mxu1 %v5973_v34  ;;  %v2586_v57 = vld [vmem:[%s7034_s14 + $0x1a0] sm:$0xff]  ;;  %v2587_v60 = vld [vmem:[%s7034_s14 + $0x1a8] sm:$0xff] }
 0x2b5   : > { %4105 = vmatprep.subr.bf16.mxu0 %v5980_v35  ;;  %4187 = vmatprep.subr.bf16.mxu1 %v5982_v36  ;;  %v6004_v1 = vcombine.high %v2582_v56, %v2586_v57  ;;  %v7452_v2 = vld.sshfl [vmem:[%s2532_s22] sm:$0x33 pattern:$0x75316420]  ;;  %v6006_v3 = vcombine.high %v2583_v58, %v2587_v60  ;;  %v2591_v8 = vld [vmem:[%s7034_s14 + $0x1c8] sm:$0xff]  ;;  %v6003_v10 = vcombine.low %v2582_v56, %v2586_v57 }
 0x2b6   : > { %v2590_v5 = vld [vmem:[%s7034_s14 + $0x1c0] sm:$0xff]  ;;  %v2798_v7 = vcombine.high %v7452_v2, %v7452_v2  ;;  %v2595_v9 = vld [vmem:[%s7034_s14 + $0x1e8] sm:$0xff]  ;;  %v6005_v12 = vcombine.low %v2583_v58, %v2587_v60 }
 0x2b7   : > { %v2594_v6 = vld [vmem:[%s7034_s14 + $0x1e0] sm:$0xff]  ;;  %v6014_v14 = vcombine.high %v2591_v8, %v2595_v9  ;;  %v2599_v17 = vld [vmem:[%s7034_s14 + $0x208] sm:$0xff]  ;;  %v6013_v20 = vcombine.low %v2591_v8, %v2595_v9 }
 0x2b8   : > { %4106 = vmatpush1.bf16.msra.mxu0 %v5979_v40  ;;  %4188 = vmatpush1.bf16.msra.mxu1 %v5981_v43  ;;  %v7461_v11 = vrot.slane %v2798_v7, %v7450_v62  ;;  %v6012_v13 = vcombine.high %v2590_v5, %v2594_v6  ;;  %v2598_v15 = vld [vmem:[%s7034_s14 + $0x200] sm:$0xff]  ;;  %v2603_v18 = vld [vmem:[%s7034_s14 + $0x228] sm:$0xff]  ;;  %v6011_v19 = vcombine.low %v2590_v5, %v2594_v6 }
 0x2b9   : > { %4107 = vmatprep.subr.bf16.mxu0 %v5988_v44  ;;  %4189 = vmatprep.subr.bf16.mxu1 %v5990_v45  ;;  %v2602_v16 = vld [vmem:[%s7034_s14 + $0x220] sm:$0xff]  ;;  %v6022_v24 = vcombine.high %v2599_v17, %v2603_v18  ;;  %v2607_v27 = vld [vmem:[%s7034_s14 + $0x248] sm:$0xff]  ;;  %v6021_v30 = vcombine.low %v2599_v17, %v2603_v18 }
 0x2ba   : > { %4131 = vmatprep.mubr.bf16.mxu0 %v7461_v11  ;;  %4213 = vmatprep.mubr.bf16.mxu1 %v7461_v11  ;;  %v6020_v21 = vcombine.high %v2598_v15, %v2602_v16  ;;  %v2606_v25 = vld [vmem:[%s7034_s14 + $0x240] sm:$0xff]  ;;  %v2611_v28 = vld [vmem:[%s7034_s14 + $0x268] sm:$0xff]  ;;  %v6019_v29 = vcombine.low %v2598_v15, %v2602_v16 }
 0x2bb   : > { %v2610_v26 = vld [vmem:[%s7034_s14 + $0x260] sm:$0xff]  ;;  %v6030_v59 = vcombine.high %v2607_v27, %v2611_v28  ;;  %v2615_v32 = vld [vmem:[%s7034_s14 + $0x288] sm:$0xff]  ;;  %v6029_v35 = vcombine.low %v2607_v27, %v2611_v28 }
 0x2bc   : > { %4108 = vmatpush1.bf16.msra.mxu0 %v5987_v50  ;;  %4190 = vmatpush1.bf16.msra.mxu1 %v5989_v52  ;;  %v6028_v31 = vcombine.high %v2606_v25, %v2610_v26  ;;  %v2614_v63 = vld [vmem:[%s7034_s14 + $0x280] sm:$0xff]  ;;  %v2619_v33 = vld [vmem:[%s7034_s14 + $0x2a8] sm:$0xff]  ;;  %v6027_v34 = vcombine.low %v2606_v25, %v2610_v26 }
 0x2bd   : > { %4109 = vmatprep.subr.bf16.mxu0 %v5996_v53  ;;  %4191 = vmatprep.subr.bf16.mxu1 %v5998_v54  ;;  %v2618_v4 = vld [vmem:[%s7034_s14 + $0x2a0] sm:$0xff]  ;;  %v6038_v37 = vcombine.high %v2615_v32, %v2619_v33  ;;  %v2623_v39 = vld [vmem:[%s7034_s14 + $0x2c8] sm:$0xff]  ;;  %v6037_v55 = vcombine.low %v2615_v32, %v2619_v33 }
 0x2be   : > { %v6036_v36 = vcombine.high %v2614_v63, %v2618_v4  ;;  %v2622_v23 = vld [vmem:[%s7034_s14 + $0x2c0] sm:$0xff]  ;;  %v2627_v40 = vld [vmem:[%s7034_s14 + $0x2e8] sm:$0xff]  ;;  %v6035_v41 = vcombine.low %v2614_v63, %v2618_v4 }
 0x2bf   : > { %v2626_v38 = vld [vmem:[%s7034_s14 + $0x2e0] sm:$0xff]  ;;  %v6046_v43 = vcombine.high %v2623_v39, %v2627_v40  ;;  %v2631_v46 = vld [vmem:[%s7034_s14 + $0x308] sm:$0xff]  ;;  %v6045_v49 = vcombine.low %v2623_v39, %v2627_v40 }
 0x2c0   : > { %4110 = vmatpush1.bf16.msra.mxu0 %v5995_v61  ;;  %4192 = vmatpush1.bf16.msra.mxu1 %v5997_v0  ;;  %v6044_v42 = vcombine.high %v2622_v23, %v2626_v38  ;;  %v2630_v44 = vld [vmem:[%s7034_s14 + $0x300] sm:$0xff]  ;;  %v2635_v47 = vld [vmem:[%s7034_s14 + $0x328] sm:$0xff]  ;;  %v6043_v48 = vcombine.low %v2622_v23, %v2626_v38 }
 0x2c1   : > { %4111 = vmatprep.subr.bf16.mxu0 %v6004_v1  ;;  %4193 = vmatprep.subr.bf16.mxu1 %v6006_v3  ;;  %v2634_v45 = vld [vmem:[%s7034_s14 + $0x320] sm:$0xff]  ;;  %v6054_v51 = vcombine.high %v2631_v46, %v2635_v47  ;;  %v2639_v54 = vld [vmem:[%s7034_s14 + $0x348] sm:$0xff]  ;;  %v6053_v58 = vcombine.low %v2631_v46, %v2635_v47 }
 0x2c2   : > { %v6052_v50 = vcombine.high %v2630_v44, %v2634_v45  ;;  %v2638_v52 = vld [vmem:[%s7034_s14 + $0x340] sm:$0xff]  ;;  %v2643_v56 = vld [vmem:[%s7034_s14 + $0x368] sm:$0xff]  ;;  %v6051_v57 = vcombine.low %v2630_v44, %v2634_v45 }
 0x2c3   : > { %v2642_v53 = vld [vmem:[%s7034_s14 + $0x360] sm:$0xff]  ;;  %v6062_v61 = vcombine.high %v2639_v54, %v2643_v56  ;;  %v2647_v3 = vld [vmem:[%s7034_s14 + $0x388] sm:$0xff]  ;;  %v6061_v7 = vcombine.low %v2639_v54, %v2643_v56 }
 0x2c4   : > { %4112 = vmatpush1.bf16.msra.mxu0 %v6003_v10  ;;  %4194 = vmatpush1.bf16.msra.mxu1 %v6005_v12  ;;  %v6060_v60 = vcombine.high %v2638_v52, %v2642_v53  ;;  %v2646_v0 = vld [vmem:[%s7034_s14 + $0x380] sm:$0xff]  ;;  %v2651_v5 = vld [vmem:[%s7034_s14 + $0x3a8] sm:$0xff]  ;;  %v6059_v6 = vcombine.low %v2638_v52, %v2642_v53 }
 0x2c5   : > { %4113 = vmatprep.subr.bf16.mxu0 %v6012_v13  ;;  %4195 = vmatprep.subr.bf16.mxu1 %v6014_v14  ;;  %v2650_v1 = vld [vmem:[%s7034_s14 + $0x3a0] sm:$0xff]  ;;  %v6070_v9 = vcombine.high %v2647_v3, %v2651_v5  ;;  %v2655_v13 = vld [vmem:[%s7034_s14 + $0x3c8] sm:$0xff]  ;;  %v6069_v16 = vcombine.low %v2647_v3, %v2651_v5 }
 0x2c6   : > { %v6068_v8 = vcombine.high %v2646_v0, %v2650_v1  ;;  %v2654_v10 = vld [vmem:[%s7034_s14 + $0x3c0] sm:$0xff]  ;;  %v2659_v14 = vld [vmem:[%s7034_s14 + $0x3e8] sm:$0xff]  ;;  %v6067_v15 = vcombine.low %v2646_v0, %v2650_v1 }
 0x2c7   : > { %v2658_v12 = vld [vmem:[%s7034_s14 + $0x3e0] sm:$0xff]  ;;  %v6078_v18 = vcombine.high %v2655_v13, %v2659_v14  ;;  %v6077_v26 = vcombine.low %v2655_v13, %v2659_v14  ;;  %v2675_v63 = vld [vmem:[%s7034_s14 + $0x468] sm:$0xff] }
 0x2c8   : > { %4114 = vmatpush1.bf16.msra.mxu0 %v6011_v19  ;;  %4196 = vmatpush1.bf16.msra.mxu1 %v6013_v20  ;;  %v6076_v17 = vcombine.high %v2654_v10, %v2658_v12  ;;  %v2662_v19 = vld [vmem:[%s7034_s14 + $0x400] sm:$0xff]  ;;  %v6075_v25 = vcombine.low %v2654_v10, %v2658_v12 }
 0x2c9   : > { %4115 = vmatprep.subr.bf16.mxu0 %v6020_v21  ;;  %4197 = vmatprep.subr.bf16.mxu1 %v6022_v24  ;;  %v2666_v20 = vld [vmem:[%s7034_s14 + $0x420] sm:$0xff]  ;;  %v2663_v21 = vld [vmem:[%s7034_s14 + $0x408] sm:$0xff] }
 0x2ca   : > { %v2667_v24 = vld [vmem:[%s7034_s14 + $0x428] sm:$0xff]  ;;  %v6084_v27 = vcombine.high %v2662_v19, %v2666_v20  ;;  %v6083_v4 = vcombine.low %v2662_v19, %v2666_v20 }
 0x2cb   : > { %v6086_v28 = vcombine.high %v2663_v21, %v2667_v24  ;;  %v6085_v32 = vcombine.low %v2663_v21, %v2667_v24 }
 0x2cc   : > { %4116 = vmatpush1.bf16.msra.mxu0 %v6019_v29  ;;  %4198 = vmatpush1.bf16.msra.mxu1 %v6021_v30  ;;  %v2670_v29 = vld [vmem:[%s7034_s14 + $0x440] sm:$0xff] }
 0x2cd   : > { %4117 = vmatprep.subr.bf16.mxu0 %v6028_v31  ;;  %4199 = vmatprep.subr.bf16.mxu1 %v6030_v59  ;;  %v2674_v30 = vld [vmem:[%s7034_s14 + $0x460] sm:$0xff]  ;;  %v7505_v31 = vrot.slane %v7452_v2, %v7450_v62  ;;  %v2671_v59 = vld [vmem:[%s7034_s14 + $0x448] sm:$0xff] }
 0x2ce   : > { %v6092_v33 = vcombine.high %v2670_v29, %v2674_v30  ;;  %v2679_v62 = vld [vmem:[%s7034_s14 + $0x488] sm:$0xff]  ;;  %v6091_v23 = vcombine.low %v2670_v29, %v2674_v30  ;;  %v6093_v38 = vcombine.low %v2671_v59, %v2675_v63 }
 0x2cf   : > { %v2683_v2 = vld [vmem:[%s7034_s14 + $0x4a8] sm:$0xff] }
 0x2d0   : > { %4118 = vmatpush1.bf16.msra.mxu0 %v6027_v34  ;;  %4200 = vmatpush1.bf16.msra.mxu1 %v6029_v35  ;;  %v6094_v34 = vcombine.high %v2671_v59, %v2675_v63  ;;  %v2678_v35 = vld [vmem:[%s7034_s14 + $0x480] sm:$0xff]  ;;  %v6102_v40 = vcombine.high %v2679_v62, %v2683_v2  ;;  %v6101_v45 = vcombine.low %v2679_v62, %v2683_v2 }
 0x2d1   : > { %4119 = vmatprep.subr.bf16.mxu0 %v6036_v36  ;;  %4201 = vmatprep.subr.bf16.mxu1 %v6038_v37  ;;  %v2682_v36 = vld [vmem:[%s7034_s14 + $0x4a0] sm:$0xff]  ;;  %v7513_v37 = vcombine.high %v7461_v11, %v7461_v11 }
 0x2d2   : > { %v6100_v39 = vcombine.high %v2678_v35, %v2682_v36  ;;  %v6099_v44 = vcombine.low %v2678_v35, %v2682_v36 }
 0x2d4   : > { %4120 = vmatpush1.bf16.msra.mxu0 %v6035_v41  ;;  %4202 = vmatpush1.bf16.msra.mxu1 %v6037_v55  ;;  %v2686_v41 = vld [vmem:[%s7034_s14 + $0x4c0] sm:$0xff] }
 0x2d5   : > { %4121 = vmatprep.subr.bf16.mxu0 %v6044_v42  ;;  %4203 = vmatprep.subr.bf16.mxu1 %v6046_v43  ;;  %v2690_v55 = vld [vmem:[%s7034_s14 + $0x4e0] sm:$0xff]  ;;  %v2687_v42 = vld [vmem:[%s7034_s14 + $0x4c8] sm:$0xff] }
 0x2d6   : > { %v2691_v43 = vld [vmem:[%s7034_s14 + $0x4e8] sm:$0xff]  ;;  %v6108_v46 = vcombine.high %v2686_v41, %v2690_v55  ;;  %v6107_v52 = vcombine.low %v2686_v41, %v2690_v55 }
 0x2d7   : > { %v6110_v47 = vcombine.high %v2687_v42, %v2691_v43  ;;  %v6109_v53 = vcombine.low %v2687_v42, %v2691_v43 }
 0x2d8   : > { %4122 = vmatpush1.bf16.msra.mxu0 %v6043_v48  ;;  %4204 = vmatpush1.bf16.msra.mxu1 %v6045_v49  ;;  %v2694_v48 = vld [vmem:[%s7034_s14 + $0x500] sm:$0xff] }
 0x2d9   : > { %4123 = vmatprep.subr.bf16.mxu0 %v6052_v50  ;;  %4205 = vmatprep.subr.bf16.mxu1 %v6054_v51  ;;  %v2698_v49 = vld [vmem:[%s7034_s14 + $0x520] sm:$0xff]  ;;  %v2695_v50 = vld [vmem:[%s7034_s14 + $0x508] sm:$0xff] }
 0x2da   : > { %v2699_v51 = vld [vmem:[%s7034_s14 + $0x528] sm:$0xff]  ;;  %v6116_v54 = vcombine.high %v2694_v48, %v2698_v49  ;;  %v6115_v0 = vcombine.low %v2694_v48, %v2698_v49 }
 0x2db   : > { %v6118_v56 = vcombine.high %v2695_v50, %v2699_v51  ;;  %v6117_v1 = vcombine.low %v2695_v50, %v2699_v51 }
 0x2dc   : > { %4124 = vmatpush1.bf16.msra.mxu0 %v6051_v57  ;;  %4206 = vmatpush1.bf16.msra.mxu1 %v6053_v58  ;;  %v2702_v57 = vld [vmem:[%s7034_s14 + $0x540] sm:$0xff] }
 0x2dd   : > { %4125 = vmatprep.subr.bf16.mxu0 %v6060_v60  ;;  %4207 = vmatprep.subr.bf16.mxu1 %v6062_v61  ;;  %v2706_v58 = vld [vmem:[%s7034_s14 + $0x560] sm:$0xff]  ;;  %v2703_v60 = vld [vmem:[%s7034_s14 + $0x548] sm:$0xff] }
 0x2de   : > { %v2707_v61 = vld [vmem:[%s7034_s14 + $0x568] sm:$0xff]  ;;  %v6124_v3 = vcombine.high %v2702_v57, %v2706_v58  ;;  %v6123_v10 = vcombine.low %v2702_v57, %v2706_v58 }
 0x2df   : > { %v6126_v5 = vcombine.high %v2703_v60, %v2707_v61  ;;  %v6125_v12 = vcombine.low %v2703_v60, %v2707_v61 }
 0x2e0   : > { %4126 = vmatpush1.bf16.msra.mxu0 %v6059_v6  ;;  %4208 = vmatpush1.bf16.msra.mxu1 %v6061_v7  ;;  %v2710_v6 = vld [vmem:[%s7034_s14 + $0x580] sm:$0xff] }
 0x2e1   : > { %4127 = vmatprep.subr.bf16.mxu0 %v6068_v8  ;;  %4209 = vmatprep.subr.bf16.mxu1 %v6070_v9  ;;  %v2714_v7 = vld [vmem:[%s7034_s14 + $0x5a0] sm:$0xff]  ;;  %v2711_v8 = vld [vmem:[%s7034_s14 + $0x588] sm:$0xff] }
 0x2e2   : > { %v2715_v9 = vld [vmem:[%s7034_s14 + $0x5a8] sm:$0xff]  ;;  %v6132_v13 = vcombine.high %v2710_v6, %v2714_v7  ;;  %v6131_v19 = vcombine.low %v2710_v6, %v2714_v7 }
 0x2e3   : > { %v6134_v14 = vcombine.high %v2711_v8, %v2715_v9  ;;  %v6133_v20 = vcombine.low %v2711_v8, %v2715_v9 }
 0x2e4   : > { %4128 = vmatpush1.bf16.msra.mxu0 %v6067_v15  ;;  %4210 = vmatpush1.bf16.msra.mxu1 %v6069_v16  ;;  %v2718_v15 = vld [vmem:[%s7034_s14 + $0x5c0] sm:$0xff] }
 0x2e5   : > { %4129 = vmatprep.subr.bf16.mxu0 %v6076_v17  ;;  %4211 = vmatprep.subr.bf16.mxu1 %v6078_v18  ;;  %v2722_v16 = vld [vmem:[%s7034_s14 + $0x5e0] sm:$0xff]  ;;  %v2719_v17 = vld [vmem:[%s7034_s14 + $0x5c8] sm:$0xff] }
 0x2e6   : > { %v2723_v18 = vld [vmem:[%s7034_s14 + $0x5e8] sm:$0xff]  ;;  %v6140_v21 = vcombine.high %v2718_v15, %v2722_v16  ;;  %v6139_v29 = vcombine.low %v2718_v15, %v2722_v16 }
 0x2e7   : > { %v6142_v24 = vcombine.high %v2719_v17, %v2723_v18  ;;  %v6141_v30 = vcombine.low %v2719_v17, %v2723_v18 }
 0x2e8   : > { %4130 = vmatpush1.bf16.msra.mxu0 %v6075_v25  ;;  %4212 = vmatpush1.bf16.msra.mxu1 %v6077_v26  ;;  %v2726_v25 = vld [vmem:[%s7034_s14 + $0x600] sm:$0xff] }
 0x2e9   : > { %4140 = vmatprep.subr.bf16.mxu0 %v6084_v27  ;;  %4222 = vmatprep.subr.bf16.mxu1 %v6086_v28  ;;  %v2730_v26 = vld [vmem:[%s7034_s14 + $0x620] sm:$0xff]  ;;  %v2727_v27 = vld [vmem:[%s7034_s14 + $0x608] sm:$0xff] }
 0x2ea   : > { %v2731_v28 = vld [vmem:[%s7034_s14 + $0x628] sm:$0xff]  ;;  %v6148_v59 = vcombine.high %v2726_v25, %v2730_v26  ;;  %v6147_v35 = vcombine.low %v2726_v25, %v2730_v26 }
 0x2eb   : > { %4132 = vmatmul.mubr.bf16.vlgmr.msra.gmra.mrb[0].mxu0 %v7505_v31  ;;  %4214 = vmatmul.mubr.bf16.vlgmr.msra.gmra.mrb[0].mxu1 %v7505_v31  ;;  %v6150_v63 = vcombine.high %v2727_v27, %v2731_v28  ;;  %v6149_v36 = vcombine.low %v2727_v27, %v2731_v28 }
 0x2ec   : > { %4141 = vmatpush1.bf16.msra.mxu0 %v6083_v4  ;;  %4223 = vmatpush1.bf16.msra.mxu1 %v6085_v32  ;;  %v2734_v4 = vld [vmem:[%s7034_s14 + $0x640] sm:$0xff] }
 0x2ed   : > { %4142 = vmatprep.subr.bf16.mxu0 %v6092_v33  ;;  %4224 = vmatprep.subr.bf16.mxu1 %v6094_v34  ;;  %v2738_v32 = vld [vmem:[%s7034_s14 + $0x660] sm:$0xff]  ;;  %v2735_v33 = vld [vmem:[%s7034_s14 + $0x648] sm:$0xff] }
 0x2ee   : > { %4172 = vmatprep.mubr.bf16.mxu0 %v7513_v37  ;;  %4254 = vmatprep.mubr.bf16.mxu1 %v7513_v37  ;;  %v2739_v34 = vld [vmem:[%s7034_s14 + $0x668] sm:$0xff]  ;;  %v6156_v62 = vcombine.high %v2734_v4, %v2738_v32  ;;  %v6155_v41 = vcombine.low %v2734_v4, %v2738_v32 }
 0x2ef   : > { %v6158_v2 = vcombine.high %v2735_v33, %v2739_v34  ;;  %v6157_v55 = vcombine.low %v2735_v33, %v2739_v34 }
 0x2f0   : > { %4143 = vmatpush1.bf16.msra.mxu0 %v6091_v23  ;;  %4225 = vmatpush1.bf16.msra.mxu1 %v6093_v38  ;;  %v2742_v23 = vld [vmem:[%s7034_s14 + $0x680] sm:$0xff] }
 0x2f1   : > { %4144 = vmatprep.subr.bf16.mxu0 %v6100_v39  ;;  %4226 = vmatprep.subr.bf16.mxu1 %v6102_v40  ;;  %v2746_v38 = vld [vmem:[%s7034_s14 + $0x6a0] sm:$0xff]  ;;  %v2743_v39 = vld [vmem:[%s7034_s14 + $0x688] sm:$0xff] }
 0x2f2   : > { %v2747_v40 = vld [vmem:[%s7034_s14 + $0x6a8] sm:$0xff]  ;;  %v6164_v42 = vcombine.high %v2742_v23, %v2746_v38  ;;  %v6163_v48 = vcombine.low %v2742_v23, %v2746_v38  ;;  %v2549_v23 = vld [vmem:[%s7034_s14 + $0x78] sm:$0xff] }
 0x2f3   : > { %v6166_v43 = vcombine.high %v2743_v39, %v2747_v40  ;;  %v6165_v49 = vcombine.low %v2743_v39, %v2747_v40 }
 0x2f4   : > { %4145 = vmatpush1.bf16.msra.mxu0 %v6099_v44  ;;  %4227 = vmatpush1.bf16.msra.mxu1 %v6101_v45  ;;  %v2750_v44 = vld [vmem:[%s7034_s14 + $0x6c0] sm:$0xff] }
 0x2f5   : > { %4146 = vmatprep.subr.bf16.mxu0 %v6108_v46  ;;  %4228 = vmatprep.subr.bf16.mxu1 %v6110_v47  ;;  %v2754_v45 = vld [vmem:[%s7034_s14 + $0x6e0] sm:$0xff]  ;;  %v2751_v46 = vld [vmem:[%s7034_s14 + $0x6c8] sm:$0xff] }
 0x2f6   : > { %v2755_v47 = vld [vmem:[%s7034_s14 + $0x6e8] sm:$0xff]  ;;  %v6172_v50 = vcombine.high %v2750_v44, %v2754_v45  ;;  %v6171_v57 = vcombine.low %v2750_v44, %v2754_v45  ;;  %v2557_v44 = vld [vmem:[%s7034_s14 + $0xb8] sm:$0xff] }
 0x2f7   : > { %v6174_v51 = vcombine.high %v2751_v46, %v2755_v47  ;;  %v6173_v58 = vcombine.low %v2751_v46, %v2755_v47 }
 0x2f8   : > { %4147 = vmatpush1.bf16.msra.mxu0 %v6107_v52  ;;  %4229 = vmatpush1.bf16.msra.mxu1 %v6109_v53  ;;  %v2758_v52 = vld [vmem:[%s7034_s14 + $0x700] sm:$0xff] }
 0x2f9   : > { %4148 = vmatprep.subr.bf16.mxu0 %v6116_v54  ;;  %4230 = vmatprep.subr.bf16.mxu1 %v6118_v56  ;;  %v2762_v53 = vld [vmem:[%s7034_s14 + $0x720] sm:$0xff]  ;;  %v2759_v54 = vld [vmem:[%s7034_s14 + $0x708] sm:$0xff] }
 0x2fa   : > { %v2763_v56 = vld [vmem:[%s7034_s14 + $0x728] sm:$0xff]  ;;  %v6180_v60 = vcombine.high %v2758_v52, %v2762_v53  ;;  %v6179_v6 = vcombine.low %v2758_v52, %v2762_v53  ;;  %v2565_v52 = vld [vmem:[%s7034_s14 + $0xf8] sm:$0xff] }
 0x2fb   : > { %v6182_v61 = vcombine.high %v2759_v54, %v2763_v56  ;;  %v6181_v7 = vcombine.low %v2759_v54, %v2763_v56 }
 0x2fc   : > { %4149 = vmatpush1.bf16.msra.mxu0 %v6115_v0  ;;  %4231 = vmatpush1.bf16.msra.mxu1 %v6117_v1  ;;  %v2766_v0 = vld [vmem:[%s7034_s14 + $0x740] sm:$0xff] }
 0x2fd   : > { %4150 = vmatprep.subr.bf16.mxu0 %v6124_v3  ;;  %4232 = vmatprep.subr.bf16.mxu1 %v6126_v5  ;;  %v2770_v1 = vld [vmem:[%s7034_s14 + $0x760] sm:$0xff]  ;;  %v2767_v3 = vld [vmem:[%s7034_s14 + $0x748] sm:$0xff] }
 0x2fe   : > { %v2771_v5 = vld [vmem:[%s7034_s14 + $0x768] sm:$0xff]  ;;  %v6188_v8 = vcombine.high %v2766_v0, %v2770_v1  ;;  %v6187_v15 = vcombine.low %v2766_v0, %v2770_v1  ;;  %v2573_v0 = vld [vmem:[%s7034_s14 + $0x138] sm:$0xff] }
 0x2ff   : > { %v6190_v9 = vcombine.high %v2767_v3, %v2771_v5  ;;  %v6189_v16 = vcombine.low %v2767_v3, %v2771_v5 }
 0x300   : > { %4151 = vmatpush1.bf16.msra.mxu0 %v6123_v10  ;;  %4233 = vmatpush1.bf16.msra.mxu1 %v6125_v12  ;;  %v2774_v10 = vld [vmem:[%s7034_s14 + $0x780] sm:$0xff] }
 0x301   : > { %4152 = vmatprep.subr.bf16.mxu0 %v6132_v13  ;;  %4234 = vmatprep.subr.bf16.mxu1 %v6134_v14  ;;  %v2778_v12 = vld [vmem:[%s7034_s14 + $0x7a0] sm:$0xff]  ;;  %v2775_v13 = vld [vmem:[%s7034_s14 + $0x788] sm:$0xff] }
 0x302   : > { %v2779_v14 = vld [vmem:[%s7034_s14 + $0x7a8] sm:$0xff]  ;;  %v6196_v17 = vcombine.high %v2774_v10, %v2778_v12  ;;  %v6195_v25 = vcombine.low %v2774_v10, %v2778_v12 }
 0x303   : > { %v6198_v18 = vcombine.high %v2775_v13, %v2779_v14  ;;  %v6197_v26 = vcombine.low %v2775_v13, %v2779_v14 }
 0x304   : > { %4153 = vmatpush1.bf16.msra.mxu0 %v6131_v19  ;;  %4235 = vmatpush1.bf16.msra.mxu1 %v6133_v20  ;;  %v2782_v19 = vld [vmem:[%s7034_s14 + $0x7c0] sm:$0xff] }
 0x305   : > { %4154 = vmatprep.subr.bf16.mxu0 %v6140_v21  ;;  %4236 = vmatprep.subr.bf16.mxu1 %v6142_v24  ;;  %v2786_v20 = vld [vmem:[%s7034_s14 + $0x7e0] sm:$0xff]  ;;  %v2783_v21 = vld [vmem:[%s7034_s14 + $0x7c8] sm:$0xff] }
 0x306   : > { %v2787_v24 = vld [vmem:[%s7034_s14 + $0x7e8] sm:$0xff]  ;;  %v6204_v27 = vcombine.high %v2782_v19, %v2786_v20  ;;  %v6203_v4 = vcombine.low %v2782_v19, %v2786_v20 }
 0x307   : > { %v6206_v28 = vcombine.high %v2783_v21, %v2787_v24  ;;  %v6205_v32 = vcombine.low %v2783_v21, %v2787_v24 }
 0x308   : > { %4155 = vmatpush1.bf16.msra.mxu0 %v6139_v29  ;;  %4237 = vmatpush1.bf16.msra.mxu1 %v6141_v30  ;;  %v2536_v29 = vld [vmem:[%s7034_s14 + $0x10] sm:$0xff] }
 0x309   : > { %4156 = vmatprep.subr.bf16.mxu0 %v6148_v59  ;;  %4238 = vmatprep.subr.bf16.mxu1 %v6150_v63  ;;  %v2540_v30 = vld [vmem:[%s7034_s14 + $0x30] sm:$0xff]  ;;  %v2537_v59 = vld [vmem:[%s7034_s14 + $0x18] sm:$0xff] }
 0x30a   : > { %v2541_v63 = vld [vmem:[%s7034_s14 + $0x38] sm:$0xff]  ;;  %v5960_v33 = vcombine.high %v2536_v29, %v2540_v30  ;;  %v5959_v38 = vcombine.low %v2536_v29, %v2540_v30 }
 0x30b   : > { %v5962_v34 = vcombine.high %v2537_v59, %v2541_v63  ;;  %v5961_v39 = vcombine.low %v2537_v59, %v2541_v63 }
 0x30c   : > { %4157 = vmatpush1.bf16.msra.mxu0 %v6147_v35  ;;  %4239 = vmatpush1.bf16.msra.mxu1 %v6149_v36  ;;  %v2544_v35 = vld [vmem:[%s7034_s14 + $0x50] sm:$0xff] }
 0x30d   : > { %4158 = vmatprep.subr.bf16.mxu0 %v6156_v62  ;;  %4240 = vmatprep.subr.bf16.mxu1 %v6158_v2  ;;  %v2548_v36 = vld [vmem:[%s7034_s14 + $0x70] sm:$0xff]  ;;  %v7581_v62 = vcombine.high %v7505_v31, %v7505_v31  ;;  %v2545_v2 = vld [vmem:[%s7034_s14 + $0x58] sm:$0xff] }
 0x30e   : > { %v5968_v40 = vcombine.high %v2544_v35, %v2548_v36  ;;  %v5967_v45 = vcombine.low %v2544_v35, %v2548_v36  ;;  %v5969_v46 = vcombine.low %v2545_v2, %v2549_v23 }
 0x310   : > { %4159 = vmatpush1.bf16.msra.mxu0 %v6155_v41  ;;  %4241 = vmatpush1.bf16.msra.mxu1 %v6157_v55  ;;  %v5970_v41 = vcombine.high %v2545_v2, %v2549_v23  ;;  %v2552_v55 = vld [vmem:[%s7034_s14 + $0x90] sm:$0xff] }
 0x311   : > { %4160 = vmatprep.subr.bf16.mxu0 %v6164_v42  ;;  %4242 = vmatprep.subr.bf16.mxu1 %v6166_v43  ;;  %v2556_v42 = vld [vmem:[%s7034_s14 + $0xb0] sm:$0xff]  ;;  %v2553_v43 = vld [vmem:[%s7034_s14 + $0x98] sm:$0xff] }
 0x312   : > { %v5976_v47 = vcombine.high %v2552_v55, %v2556_v42  ;;  %v5975_v53 = vcombine.low %v2552_v55, %v2556_v42  ;;  %v5977_v54 = vcombine.low %v2553_v43, %v2557_v44 }
 0x314   : > { %4161 = vmatpush1.bf16.msra.mxu0 %v6163_v48  ;;  %4243 = vmatpush1.bf16.msra.mxu1 %v6165_v49  ;;  %v5978_v48 = vcombine.high %v2553_v43, %v2557_v44  ;;  %v2560_v49 = vld [vmem:[%s7034_s14 + $0xd0] sm:$0xff] }
 0x315   : > { %4162 = vmatprep.subr.bf16.mxu0 %v6172_v50  ;;  %4244 = vmatprep.subr.bf16.mxu1 %v6174_v51  ;;  %v2564_v50 = vld [vmem:[%s7034_s14 + $0xf0] sm:$0xff]  ;;  %v2561_v51 = vld [vmem:[%s7034_s14 + $0xd8] sm:$0xff] }
 0x316   : > { %v5984_v56 = vcombine.high %v2560_v49, %v2564_v50  ;;  %v5983_v1 = vcombine.low %v2560_v49, %v2564_v50 }
 0x318   : > { %4163 = vmatpush1.bf16.msra.mxu0 %v6171_v57  ;;  %4245 = vmatpush1.bf16.msra.mxu1 %v6173_v58  ;;  %v5986_v57 = vcombine.high %v2561_v51, %v2565_v52  ;;  %v2568_v58 = vld [vmem:[%s7034_s14 + $0x110] sm:$0xff] }
 0x319   : > { %4164 = vmatprep.subr.bf16.mxu0 %v6180_v60  ;;  %4246 = vmatprep.subr.bf16.mxu1 %v6182_v61  ;;  %v2572_v60 = vld [vmem:[%s7034_s14 + $0x130] sm:$0xff]  ;;  %v2569_v61 = vld [vmem:[%s7034_s14 + $0x118] sm:$0xff] }
 0x31a   : > { %v5992_v3 = vcombine.high %v2568_v58, %v2572_v60  ;;  %v5994_v5 = vcombine.high %v2569_v61, %v2573_v0  ;;  %v5991_v10 = vcombine.low %v2568_v58, %v2572_v60  ;;  %v5993_v12 = vcombine.low %v2569_v61, %v2573_v0 }
 0x31c   : > { %4165 = vmatpush1.bf16.msra.mxu0 %v6179_v6  ;;  %4247 = vmatpush1.bf16.msra.mxu1 %v6181_v7  ;;  %v2576_v6 = vld [vmem:[%s7034_s14 + $0x150] sm:$0xff] }
 0x31d   : > { %4166 = vmatprep.subr.bf16.mxu0 %v6188_v8  ;;  %4248 = vmatprep.subr.bf16.mxu1 %v6190_v9  ;;  %v2580_v7 = vld [vmem:[%s7034_s14 + $0x170] sm:$0xff]  ;;  %v2577_v8 = vld [vmem:[%s7034_s14 + $0x158] sm:$0xff] }
 0x31e   : > { %v2581_v9 = vld [vmem:[%s7034_s14 + $0x178] sm:$0xff]  ;;  %v6000_v13 = vcombine.high %v2576_v6, %v2580_v7  ;;  %v5999_v19 = vcombine.low %v2576_v6, %v2580_v7 }
 0x31f   : > { %v6002_v14 = vcombine.high %v2577_v8, %v2581_v9  ;;  %v6001_v20 = vcombine.low %v2577_v8, %v2581_v9 }
 0x320   : > { %4167 = vmatpush1.bf16.msra.mxu0 %v6187_v15  ;;  %4249 = vmatpush1.bf16.msra.mxu1 %v6189_v16  ;;  %v2584_v15 = vld [vmem:[%s7034_s14 + $0x190] sm:$0xff] }
 0x321   : > { %4168 = vmatprep.subr.bf16.mxu0 %v6196_v17  ;;  %4250 = vmatprep.subr.bf16.mxu1 %v6198_v18  ;;  %v2588_v16 = vld [vmem:[%s7034_s14 + $0x1b0] sm:$0xff]  ;;  %v2585_v17 = vld [vmem:[%s7034_s14 + $0x198] sm:$0xff] }
 0x322   : > { %v2589_v18 = vld [vmem:[%s7034_s14 + $0x1b8] sm:$0xff]  ;;  %v6008_v21 = vcombine.high %v2584_v15, %v2588_v16  ;;  %v6007_v29 = vcombine.low %v2584_v15, %v2588_v16 }
 0x323   : > { %v6010_v24 = vcombine.high %v2585_v17, %v2589_v18  ;;  %v6009_v30 = vcombine.low %v2585_v17, %v2589_v18 }
 0x324   : > { %4169 = vmatpush1.bf16.msra.mxu0 %v6195_v25  ;;  %4251 = vmatpush1.bf16.msra.mxu1 %v6197_v26  ;;  %v2592_v25 = vld [vmem:[%s7034_s14 + $0x1d0] sm:$0xff] }
 0x325   : > { %4170 = vmatprep.subr.bf16.mxu0 %v6204_v27  ;;  %4252 = vmatprep.subr.bf16.mxu1 %v6206_v28  ;;  %v2596_v26 = vld [vmem:[%s7034_s14 + $0x1f0] sm:$0xff]  ;;  %v2593_v27 = vld [vmem:[%s7034_s14 + $0x1d8] sm:$0xff] }
 0x326   : > { %v2597_v28 = vld [vmem:[%s7034_s14 + $0x1f8] sm:$0xff]  ;;  %v6016_v59 = vcombine.high %v2592_v25, %v2596_v26  ;;  %v6015_v35 = vcombine.low %v2592_v25, %v2596_v26 }
 0x327   : > { %v6018_v63 = vcombine.high %v2593_v27, %v2597_v28  ;;  %v6017_v36 = vcombine.low %v2593_v27, %v2597_v28 }
 0x328   : > { %4171 = vmatpush1.bf16.msra.mxu0 %v6203_v4  ;;  %4253 = vmatpush1.bf16.msra.mxu1 %v6205_v32  ;;  %v2600_v4 = vld [vmem:[%s7034_s14 + $0x210] sm:$0xff] }
 0x329   : > { %4263 = vmatprep.subr.bf16.mxu0 %v5960_v33  ;;  %4345 = vmatprep.subr.bf16.mxu1 %v5962_v34  ;;  %v2604_v32 = vld [vmem:[%s7034_s14 + $0x230] sm:$0xff]  ;;  %v2601_v33 = vld [vmem:[%s7034_s14 + $0x218] sm:$0xff] }
 0x32a   : > { %v2605_v34 = vld [vmem:[%s7034_s14 + $0x238] sm:$0xff]  ;;  %v6024_v2 = vcombine.high %v2600_v4, %v2604_v32  ;;  %v6023_v55 = vcombine.low %v2600_v4, %v2604_v32 }
 0x32b   : > { %4173 = vmatmul.mubr.bf16.vlgmr.msra.gmra.mrb[0].mxu0 %v7581_v62  ;;  %4255 = vmatmul.mubr.bf16.vlgmr.msra.gmra.mrb[0].mxu1 %v7581_v62  ;;  %v6026_v23 = vcombine.high %v2601_v33, %v2605_v34  ;;  %v6025_v42 = vcombine.low %v2601_v33, %v2605_v34 }
 0x32c   : > { %4264 = vmatpush1.bf16.msra.mxu0 %v5959_v38  ;;  %4346 = vmatpush1.bf16.msra.mxu1 %v5961_v39  ;;  %v2608_v38 = vld [vmem:[%s7034_s14 + $0x250] sm:$0xff] }
 0x32d   : > { %4265 = vmatprep.subr.bf16.mxu0 %v5968_v40  ;;  %4347 = vmatprep.subr.bf16.mxu1 %v5970_v41  ;;  %v2612_v39 = vld [vmem:[%s7034_s14 + $0x270] sm:$0xff]  ;;  %v2609_v40 = vld [vmem:[%s7034_s14 + $0x258] sm:$0xff] }
 0x32e   : > { %4295 = vmatprep.mubr.bf16.mxu0 %v7461_v11  ;;  %4377 = vmatprep.mubr.bf16.mxu1 %v7461_v11  ;;  %v5985_v11 = vcombine.low %v2561_v51, %v2565_v52  ;;  %v2613_v41 = vld [vmem:[%s7034_s14 + $0x278] sm:$0xff]  ;;  %v6032_v43 = vcombine.high %v2608_v38, %v2612_v39  ;;  %v6031_v49 = vcombine.low %v2608_v38, %v2612_v39 }
 0x32f   : > { %v6034_v44 = vcombine.high %v2609_v40, %v2613_v41  ;;  %v6033_v50 = vcombine.low %v2609_v40, %v2613_v41 }
 0x330   : > { %4266 = vmatpush1.bf16.msra.mxu0 %v5967_v45  ;;  %4348 = vmatpush1.bf16.msra.mxu1 %v5969_v46  ;;  %v2616_v45 = vld [vmem:[%s7034_s14 + $0x290] sm:$0xff] }
 0x331   : > { %4267 = vmatprep.subr.bf16.mxu0 %v5976_v47  ;;  %4349 = vmatprep.subr.bf16.mxu1 %v5978_v48  ;;  %v2620_v46 = vld [vmem:[%s7034_s14 + $0x2b0] sm:$0xff]  ;;  %v2617_v47 = vld [vmem:[%s7034_s14 + $0x298] sm:$0xff] }
 0x332   : > { %v2621_v48 = vld [vmem:[%s7034_s14 + $0x2b8] sm:$0xff]  ;;  %v6040_v51 = vcombine.high %v2616_v45, %v2620_v46  ;;  %v6039_v58 = vcombine.low %v2616_v45, %v2620_v46 }
 0x333   : > { %v6042_v52 = vcombine.high %v2617_v47, %v2621_v48  ;;  %v6041_v60 = vcombine.low %v2617_v47, %v2621_v48 }
 0x334   : > { %4268 = vmatpush1.bf16.msra.mxu0 %v5975_v53  ;;  %4350 = vmatpush1.bf16.msra.mxu1 %v5977_v54  ;;  %v2624_v53 = vld [vmem:[%s7034_s14 + $0x2d0] sm:$0xff] }
 0x335   : > { %4269 = vmatprep.subr.bf16.mxu0 %v5984_v56  ;;  %4351 = vmatprep.subr.bf16.mxu1 %v5986_v57  ;;  %v2628_v54 = vld [vmem:[%s7034_s14 + $0x2f0] sm:$0xff]  ;;  %v2625_v56 = vld [vmem:[%s7034_s14 + $0x2d8] sm:$0xff] }
 0x336   : > { %v2629_v57 = vld [vmem:[%s7034_s14 + $0x2f8] sm:$0xff]  ;;  %v6048_v61 = vcombine.high %v2624_v53, %v2628_v54  ;;  %v6047_v6 = vcombine.low %v2624_v53, %v2628_v54 }
 0x337   : > { %v6050_v0 = vcombine.high %v2625_v56, %v2629_v57  ;;  %v6049_v7 = vcombine.low %v2625_v56, %v2629_v57 }
 0x338   : > { %4270 = vmatpush1.bf16.msra.mxu0 %v5983_v1  ;;  %4352 = vmatpush1.bf16.msra.mxu1 %v5985_v11  ;;  %v2632_v1 = vld [vmem:[%s7034_s14 + $0x310] sm:$0xff] }
 0x339   : > { %4271 = vmatprep.subr.bf16.mxu0 %v5992_v3  ;;  %4353 = vmatprep.subr.bf16.mxu1 %v5994_v5  ;;  %v2636_v11 = vld [vmem:[%s7034_s14 + $0x330] sm:$0xff]  ;;  %v2633_v3 = vld [vmem:[%s7034_s14 + $0x318] sm:$0xff] }
 0x33a   : > { %v2637_v5 = vld [vmem:[%s7034_s14 + $0x338] sm:$0xff]  ;;  %v6056_v8 = vcombine.high %v2632_v1, %v2636_v11  ;;  %v6055_v15 = vcombine.low %v2632_v1, %v2636_v11 }
 0x33b   : > { %v6058_v9 = vcombine.high %v2633_v3, %v2637_v5  ;;  %v6057_v16 = vcombine.low %v2633_v3, %v2637_v5  ;;  %v2696_v5 = vld [vmem:[%s7034_s14 + $0x510] sm:$0xff] }
 0x33c   : > { %4272 = vmatpush1.bf16.msra.mxu0 %v5991_v10  ;;  %4354 = vmatpush1.bf16.msra.mxu1 %v5993_v12  ;;  %v2640_v10 = vld [vmem:[%s7034_s14 + $0x350] sm:$0xff] }
 0x33d   : > { %4273 = vmatprep.subr.bf16.mxu0 %v6000_v13  ;;  %4355 = vmatprep.subr.bf16.mxu1 %v6002_v14  ;;  %v2644_v12 = vld [vmem:[%s7034_s14 + $0x370] sm:$0xff]  ;;  %v2641_v13 = vld [vmem:[%s7034_s14 + $0x358] sm:$0xff] }
 0x33e   : > { %v2645_v14 = vld [vmem:[%s7034_s14 + $0x378] sm:$0xff]  ;;  %v6064_v17 = vcombine.high %v2640_v10, %v2644_v12  ;;  %v6063_v25 = vcombine.low %v2640_v10, %v2644_v12 }
 0x33f   : > { %v6066_v18 = vcombine.high %v2641_v13, %v2645_v14  ;;  %v6065_v26 = vcombine.low %v2641_v13, %v2645_v14  ;;  %v2704_v13 = vld [vmem:[%s7034_s14 + $0x550] sm:$0xff] }
 0x340   : > { %4274 = vmatpush1.bf16.msra.mxu0 %v5999_v19  ;;  %4356 = vmatpush1.bf16.msra.mxu1 %v6001_v20  ;;  %v2648_v19 = vld [vmem:[%s7034_s14 + $0x390] sm:$0xff] }
 0x341   : > { %4275 = vmatprep.subr.bf16.mxu0 %v6008_v21  ;;  %4357 = vmatprep.subr.bf16.mxu1 %v6010_v24  ;;  %v2652_v20 = vld [vmem:[%s7034_s14 + $0x3b0] sm:$0xff]  ;;  %v2649_v21 = vld [vmem:[%s7034_s14 + $0x398] sm:$0xff] }
 0x342   : > { %v2653_v24 = vld [vmem:[%s7034_s14 + $0x3b8] sm:$0xff]  ;;  %v6072_v27 = vcombine.high %v2648_v19, %v2652_v20  ;;  %v6071_v4 = vcombine.low %v2648_v19, %v2652_v20  ;;  %v2708_v14 = vld [vmem:[%s7034_s14 + $0x570] sm:$0xff] }
 0x343   : > { %v6074_v28 = vcombine.high %v2649_v21, %v2653_v24  ;;  %v6073_v32 = vcombine.low %v2649_v21, %v2653_v24  ;;  %v6128_v19 = vcombine.high %v2704_v13, %v2708_v14  ;;  %v2712_v21 = vld [vmem:[%s7034_s14 + $0x590] sm:$0xff] }
 0x344   : > { %4276 = vmatpush1.bf16.msra.mxu0 %v6007_v29  ;;  %4358 = vmatpush1.bf16.msra.mxu1 %v6009_v30  ;;  %v2656_v29 = vld [vmem:[%s7034_s14 + $0x3d0] sm:$0xff] }
 0x345   : > { %4277 = vmatprep.subr.bf16.mxu0 %v6016_v59  ;;  %4359 = vmatprep.subr.bf16.mxu1 %v6018_v63  ;;  %v2660_v30 = vld [vmem:[%s7034_s14 + $0x3f0] sm:$0xff]  ;;  %v2657_v59 = vld [vmem:[%s7034_s14 + $0x3d8] sm:$0xff] }
 0x346   : > { %v2661_v63 = vld [vmem:[%s7034_s14 + $0x3f8] sm:$0xff]  ;;  %v6080_v33 = vcombine.high %v2656_v29, %v2660_v30  ;;  %v6079_v38 = vcombine.low %v2656_v29, %v2660_v30  ;;  %v2716_v24 = vld [vmem:[%s7034_s14 + $0x5b0] sm:$0xff] }
 0x347   : > { %v6082_v34 = vcombine.high %v2657_v59, %v2661_v63  ;;  %v6081_v39 = vcombine.low %v2657_v59, %v2661_v63  ;;  %v6136_v29 = vcombine.high %v2712_v21, %v2716_v24  ;;  %v2720_v59 = vld [vmem:[%s7034_s14 + $0x5d0] sm:$0xff] }
 0x348   : > { %4278 = vmatpush1.bf16.msra.mxu0 %v6015_v35  ;;  %4360 = vmatpush1.bf16.msra.mxu1 %v6017_v36  ;;  %v2664_v35 = vld [vmem:[%s7034_s14 + $0x410] sm:$0xff] }
 0x349   : > { %4279 = vmatprep.subr.bf16.mxu0 %v6024_v2  ;;  %4361 = vmatprep.subr.bf16.mxu1 %v6026_v23  ;;  %v2668_v36 = vld [vmem:[%s7034_s14 + $0x430] sm:$0xff]  ;;  %v2665_v2 = vld [vmem:[%s7034_s14 + $0x418] sm:$0xff] }
 0x34a   : > { %v2669_v23 = vld [vmem:[%s7034_s14 + $0x438] sm:$0xff]  ;;  %v6088_v40 = vcombine.high %v2664_v35, %v2668_v36  ;;  %v6087_v45 = vcombine.low %v2664_v35, %v2668_v36  ;;  %v2724_v63 = vld [vmem:[%s7034_s14 + $0x5f0] sm:$0xff] }
 0x34b   : > { %v6090_v41 = vcombine.high %v2665_v2, %v2669_v23  ;;  %v6089_v46 = vcombine.low %v2665_v2, %v2669_v23  ;;  %v6144_v35 = vcombine.high %v2720_v59, %v2724_v63  ;;  %v2728_v2 = vld [vmem:[%s7034_s14 + $0x610] sm:$0xff] }
 0x34c   : > { %4280 = vmatpush1.bf16.msra.mxu0 %v6023_v55  ;;  %4362 = vmatpush1.bf16.msra.mxu1 %v6025_v42  ;;  %v2672_v55 = vld [vmem:[%s7034_s14 + $0x450] sm:$0xff] }
 0x34d   : > { %4281 = vmatprep.subr.bf16.mxu0 %v6032_v43  ;;  %4363 = vmatprep.subr.bf16.mxu1 %v6034_v44  ;;  %v2676_v42 = vld [vmem:[%s7034_s14 + $0x470] sm:$0xff]  ;;  %v2673_v43 = vld [vmem:[%s7034_s14 + $0x458] sm:$0xff] }
 0x34e   : > { %v2677_v44 = vld [vmem:[%s7034_s14 + $0x478] sm:$0xff]  ;;  %v6096_v47 = vcombine.high %v2672_v55, %v2676_v42  ;;  %v6095_v53 = vcombine.low %v2672_v55, %v2676_v42  ;;  %v2732_v23 = vld [vmem:[%s7034_s14 + $0x630] sm:$0xff] }
 0x34f   : > { %v6098_v48 = vcombine.high %v2673_v43, %v2677_v44  ;;  %v6097_v54 = vcombine.low %v2673_v43, %v2677_v44  ;;  %v6152_v55 = vcombine.high %v2728_v2, %v2732_v23  ;;  %v2736_v43 = vld [vmem:[%s7034_s14 + $0x650] sm:$0xff] }
 0x350   : > { %4282 = vmatpush1.bf16.msra.mxu0 %v6031_v49  ;;  %4364 = vmatpush1.bf16.msra.mxu1 %v6033_v50  ;;  %v2680_v49 = vld [vmem:[%s7034_s14 + $0x490] sm:$0xff] }
 0x351   : > { %4283 = vmatprep.subr.bf16.mxu0 %v6040_v51  ;;  %4365 = vmatprep.subr.bf16.mxu1 %v6042_v52  ;;  %v2684_v50 = vld [vmem:[%s7034_s14 + $0x4b0] sm:$0xff]  ;;  %v2681_v51 = vld [vmem:[%s7034_s14 + $0x498] sm:$0xff] }
 0x352   : > { %v2685_v52 = vld [vmem:[%s7034_s14 + $0x4b8] sm:$0xff]  ;;  %v6104_v56 = vcombine.high %v2680_v49, %v2684_v50  ;;  %v2740_v44 = vld [vmem:[%s7034_s14 + $0x670] sm:$0xff] }
 0x353   : > { %v6106_v57 = vcombine.high %v2681_v51, %v2685_v52  ;;  %v6105_v1 = vcombine.low %v2681_v51, %v2685_v52  ;;  %v2744_v51 = vld [vmem:[%s7034_s14 + $0x690] sm:$0xff] }
 0x354   : > { %4284 = vmatpush1.bf16.msra.mxu0 %v6039_v58  ;;  %4366 = vmatpush1.bf16.msra.mxu1 %v6041_v60  ;;  %v2688_v58 = vld [vmem:[%s7034_s14 + $0x4d0] sm:$0xff] }
 0x355   : > { %4285 = vmatprep.subr.bf16.mxu0 %v6048_v61  ;;  %4367 = vmatprep.subr.bf16.mxu1 %v6050_v0  ;;  %v2692_v60 = vld [vmem:[%s7034_s14 + $0x4f0] sm:$0xff]  ;;  %v2689_v61 = vld [vmem:[%s7034_s14 + $0x4d8] sm:$0xff] }
 0x356   : > { %v2693_v0 = vld [vmem:[%s7034_s14 + $0x4f8] sm:$0xff]  ;;  %v6112_v11 = vcombine.high %v2688_v58, %v2692_v60  ;;  %v2748_v52 = vld [vmem:[%s7034_s14 + $0x6b0] sm:$0xff] }
 0x357   : > { %v6114_v3 = vcombine.high %v2689_v61, %v2693_v0 }
 0x358   : > { %4286 = vmatpush1.bf16.msra.mxu0 %v6047_v6  ;;  %4368 = vmatpush1.bf16.msra.mxu1 %v6049_v7  ;;  %v2700_v6 = vld [vmem:[%s7034_s14 + $0x530] sm:$0xff]  ;;  %v2697_v7 = vld [vmem:[%s7034_s14 + $0x518] sm:$0xff] }
 0x359   : > { %4287 = vmatprep.subr.bf16.mxu0 %v6056_v8  ;;  %4369 = vmatprep.subr.bf16.mxu1 %v6058_v9  ;;  %v2701_v8 = vld [vmem:[%s7034_s14 + $0x538] sm:$0xff]  ;;  %v6111_v9 = vcombine.low %v2688_v58, %v2692_v60  ;;  %v6120_v10 = vcombine.high %v2696_v5, %v2700_v6  ;;  %v6168_v58 = vcombine.high %v2744_v51, %v2748_v52 }
 0x35a   : > { %v6122_v12 = vcombine.high %v2697_v7, %v2701_v8 }
 0x35c   : > { %4288 = vmatpush1.bf16.msra.mxu0 %v6055_v15  ;;  %4370 = vmatpush1.bf16.msra.mxu1 %v6057_v16  ;;  %v2705_v15 = vld [vmem:[%s7034_s14 + $0x558] sm:$0xff] }
 0x35d   : > { %4289 = vmatprep.subr.bf16.mxu0 %v6064_v17  ;;  %4371 = vmatprep.subr.bf16.mxu1 %v6066_v18  ;;  %v2709_v16 = vld [vmem:[%s7034_s14 + $0x578] sm:$0xff]  ;;  %v6119_v17 = vcombine.low %v2696_v5, %v2700_v6  ;;  %v6121_v18 = vcombine.low %v2697_v7, %v2701_v8  ;;  %v2760_v7 = vld [vmem:[%s7034_s14 + $0x710] sm:$0xff] }
 0x35e   : > { %v6130_v20 = vcombine.high %v2705_v15, %v2709_v16  ;;  %v2764_v8 = vld [vmem:[%s7034_s14 + $0x730] sm:$0xff] }
 0x360   : > { %4290 = vmatpush1.bf16.msra.mxu0 %v6063_v25  ;;  %4372 = vmatpush1.bf16.msra.mxu1 %v6065_v26  ;;  %v2713_v25 = vld [vmem:[%s7034_s14 + $0x598] sm:$0xff] }
 0x361   : > { %4291 = vmatprep.subr.bf16.mxu0 %v6072_v27  ;;  %4373 = vmatprep.subr.bf16.mxu1 %v6074_v28  ;;  %v2717_v26 = vld [vmem:[%s7034_s14 + $0x5b8] sm:$0xff]  ;;  %v6127_v27 = vcombine.low %v2704_v13, %v2708_v14  ;;  %v6129_v28 = vcombine.low %v2705_v15, %v2709_v16  ;;  %v6184_v13 = vcombine.high %v2760_v7, %v2764_v8  ;;  %v2768_v15 = vld [vmem:[%s7034_s14 + $0x750] sm:$0xff] }
 0x362   : > { %v6138_v30 = vcombine.high %v2713_v25, %v2717_v26  ;;  %v2772_v16 = vld [vmem:[%s7034_s14 + $0x770] sm:$0xff] }
 0x364   : > { %4292 = vmatpush1.bf16.msra.mxu0 %v6071_v4  ;;  %4374 = vmatpush1.bf16.msra.mxu1 %v6073_v32  ;;  %v2721_v4 = vld [vmem:[%s7034_s14 + $0x5d8] sm:$0xff] }
 0x365   : > { %4293 = vmatprep.subr.bf16.mxu0 %v6080_v33  ;;  %4375 = vmatprep.subr.bf16.mxu1 %v6082_v34  ;;  %v2725_v32 = vld [vmem:[%s7034_s14 + $0x5f8] sm:$0xff]  ;;  %v6135_v33 = vcombine.low %v2712_v21, %v2716_v24  ;;  %v6137_v34 = vcombine.low %v2713_v25, %v2717_v26  ;;  %v6192_v21 = vcombine.high %v2768_v15, %v2772_v16  ;;  %v2776_v25 = vld [vmem:[%s7034_s14 + $0x790] sm:$0xff] }
 0x366   : > { %v6146_v36 = vcombine.high %v2721_v4, %v2725_v32  ;;  %v2780_v26 = vld [vmem:[%s7034_s14 + $0x7b0] sm:$0xff] }
 0x368   : > { %4294 = vmatpush1.bf16.msra.mxu0 %v6079_v38  ;;  %4376 = vmatpush1.bf16.msra.mxu1 %v6081_v39  ;;  %v2729_v38 = vld [vmem:[%s7034_s14 + $0x618] sm:$0xff] }
 0x369   : > { %4304 = vmatprep.subr.bf16.mxu0 %v6088_v40  ;;  %4386 = vmatprep.subr.bf16.mxu1 %v6090_v41  ;;  %v2733_v39 = vld [vmem:[%s7034_s14 + $0x638] sm:$0xff]  ;;  %v6143_v40 = vcombine.low %v2720_v59, %v2724_v63  ;;  %v6145_v41 = vcombine.low %v2721_v4, %v2725_v32  ;;  %v6200_v59 = vcombine.high %v2776_v25, %v2780_v26  ;;  %v2784_v4 = vld [vmem:[%s7034_s14 + $0x7d0] sm:$0xff] }
 0x36a   : > { %v6154_v42 = vcombine.high %v2729_v38, %v2733_v39  ;;  %v2788_v32 = vld [vmem:[%s7034_s14 + $0x7f0] sm:$0xff] }
 0x36b   : > { %4296 = vmatmul.mubr.bf16.vlgmr.msra.gmra.mrb[4].mxu0 %v7505_v31  ;;  %4378 = vmatmul.mubr.bf16.vlgmr.msra.gmra.mrb[4].mxu1 %v7505_v31  ;;  %v6103_v31 = vcombine.low %v2680_v49, %v2684_v50  ;;  %v6160_v49 = vcombine.high %v2736_v43, %v2740_v44 }
 0x36c   : > { %4305 = vmatpush1.bf16.msra.mxu0 %v6087_v45  ;;  %4387 = vmatpush1.bf16.msra.mxu1 %v6089_v46  ;;  %v2737_v45 = vld [vmem:[%s7034_s14 + $0x658] sm:$0xff] }
 0x36d   : > { %4306 = vmatprep.subr.bf16.mxu0 %v6096_v47  ;;  %4388 = vmatprep.subr.bf16.mxu1 %v6098_v48  ;;  %v2741_v46 = vld [vmem:[%s7034_s14 + $0x678] sm:$0xff]  ;;  %v6151_v47 = vcombine.low %v2728_v2, %v2732_v23  ;;  %v6153_v48 = vcombine.low %v2729_v38, %v2733_v39  ;;  %v6208_v2 = vcombine.high %v2784_v4, %v2788_v32 }
 0x36e   : > { %4336 = vmatprep.mubr.bf16.mxu0 %v7513_v37  ;;  %4418 = vmatprep.mubr.bf16.mxu1 %v7513_v37  ;;  %v6113_v37 = vcombine.low %v2689_v61, %v2693_v0  ;;  %v6162_v50 = vcombine.high %v2737_v45, %v2741_v46  ;;  %v2752_v61 = vld [vmem:[%s7034_s14 + $0x6d0] sm:$0xff]  ;;  %v6207_v38 = vcombine.low %v2784_v4, %v2788_v32  ;;  %v6877_v4 = vld [vmem:[%s8135_s11 + $0xa0] sm:$0xff] (!%p6211_p5)   ;;  %v6878_v32 = vld [vmem:[%s8135_s11 + $0x68] sm:$0xff] (!%p6211_p5)  }
 0x36f   : > { %v2756_v0 = vld [vmem:[%s7034_s14 + $0x6f0] sm:$0xff] }
 0x370   : > { %4307 = vmatpush1.bf16.msra.mxu0 %v6095_v53  ;;  %4389 = vmatpush1.bf16.msra.mxu1 %v6097_v54  ;;  %v2745_v53 = vld [vmem:[%s7034_s14 + $0x698] sm:$0xff]  ;;  %v6176_v5 = vcombine.high %v2752_v61, %v2756_v0 }
 0x371   : > { %4308 = vmatprep.subr.bf16.mxu0 %v6104_v56  ;;  %4390 = vmatprep.subr.bf16.mxu1 %v6106_v57  ;;  %v2749_v54 = vld [vmem:[%s7034_s14 + $0x6b8] sm:$0xff]  ;;  %v6159_v56 = vcombine.low %v2736_v43, %v2740_v44  ;;  %v6161_v57 = vcombine.low %v2737_v45, %v2741_v46 }
 0x372   : > { %v6170_v60 = vcombine.high %v2745_v53, %v2749_v54 }
 0x374   : > { %4309 = vmatpush1.bf16.msra.mxu0 %v6103_v31  ;;  %4391 = vmatpush1.bf16.msra.mxu1 %v6105_v1  ;;  %v2753_v31 = vld [vmem:[%s7034_s14 + $0x6d8] sm:$0xff] }
 0x375   : > { %4310 = vmatprep.subr.bf16.mxu0 %v6112_v11  ;;  %4392 = vmatprep.subr.bf16.mxu1 %v6114_v3  ;;  %v2757_v1 = vld [vmem:[%s7034_s14 + $0x6f8] sm:$0xff]  ;;  %v6167_v11 = vcombine.low %v2744_v51, %v2748_v52  ;;  %v6169_v3 = vcombine.low %v2745_v53, %v2749_v54  ;;  %v2529_v54 = vld [vmem:[#allocation4] sm:$0xff] }
 0x376   : > { %v6178_v6 = vcombine.high %v2753_v31, %v2757_v1 }
 0x378   : > { %4311 = vmatpush1.bf16.msra.mxu0 %v6111_v9  ;;  %4393 = vmatpush1.bf16.msra.mxu1 %v6113_v37  ;;  %v2761_v9 = vld [vmem:[%s7034_s14 + $0x718] sm:$0xff] }
 0x379   : > { %4312 = vmatprep.subr.bf16.mxu0 %v6120_v10  ;;  %4394 = vmatprep.subr.bf16.mxu1 %v6122_v12  ;;  %v2765_v37 = vld [vmem:[%s7034_s14 + $0x738] sm:$0xff]  ;;  %v6175_v10 = vcombine.low %v2752_v61, %v2756_v0  ;;  %v6177_v12 = vcombine.low %v2753_v31, %v2757_v1 }
 0x37a   : > { %v6186_v14 = vcombine.high %v2761_v9, %v2765_v37 }
 0x37c   : > { %4313 = vmatpush1.bf16.msra.mxu0 %v6119_v17  ;;  %4395 = vmatpush1.bf16.msra.mxu1 %v6121_v18  ;;  %v2769_v17 = vld [vmem:[%s7034_s14 + $0x758] sm:$0xff] }
 0x37d   : > { %4314 = vmatprep.subr.bf16.mxu0 %v6128_v19  ;;  %4396 = vmatprep.subr.bf16.mxu1 %v6130_v20  ;;  %v2773_v18 = vld [vmem:[%s7034_s14 + $0x778] sm:$0xff]  ;;  %v6183_v19 = vcombine.low %v2760_v7, %v2764_v8  ;;  %v6185_v20 = vcombine.low %v2761_v9, %v2765_v37 }
 0x37e   : > { %v6194_v24 = vcombine.high %v2769_v17, %v2773_v18  ;;  %v2530_v9 = vld [vmem:[#allocation4 + $0x8] sm:$0xff] }
 0x380   : > { %4315 = vmatpush1.bf16.msra.mxu0 %v6127_v27  ;;  %4397 = vmatpush1.bf16.msra.mxu1 %v6129_v28  ;;  %v2777_v27 = vld [vmem:[%s7034_s14 + $0x798] sm:$0xff] }
 0x381   : > { %4316 = vmatprep.subr.bf16.mxu0 %v6136_v29  ;;  %4398 = vmatprep.subr.bf16.mxu1 %v6138_v30  ;;  %v2781_v28 = vld [vmem:[%s7034_s14 + $0x7b8] sm:$0xff]  ;;  %v6191_v29 = vcombine.low %v2768_v15, %v2772_v16  ;;  %v6193_v30 = vcombine.low %v2769_v17, %v2773_v18  ;;  %v6861_v15 = vld [vmem:[%s8135_s11 + $0x80] sm:$0xff] (!%p6211_p5)   ;;  %v6862_v16 = vld [vmem:[%s8135_s11 + $0x48] sm:$0xff] (!%p6211_p5)  }
 0x382   : > { %v6202_v63 = vcombine.high %v2777_v27, %v2781_v28  ;;  %v6863_v17 = vld [vmem:[%s8135_s11 + $0x8] sm:$0xff] (!%p6211_p5)  }
 0x383   : > { %v6864_v18 = vld [vmem:[%s8135_s11 + $0xc8] sm:$0xff] (!%p6211_p5)  }
 0x384   : > { %4317 = vmatpush1.bf16.msra.mxu0 %v6135_v33  ;;  %4399 = vmatpush1.bf16.msra.mxu1 %v6137_v34  ;;  %v2785_v33 = vld [vmem:[%s7034_s14 + $0x7d8] sm:$0xff] }
 0x385   : > { %4318 = vmatprep.subr.bf16.mxu0 %v6144_v35  ;;  %4400 = vmatprep.subr.bf16.mxu1 %v6146_v36  ;;  %v2789_v34 = vld [vmem:[%s7034_s14 + $0x7f8] sm:$0xff]  ;;  %v6199_v35 = vcombine.low %v2776_v25, %v2780_v26  ;;  %v6201_v36 = vcombine.low %v2777_v27, %v2781_v28  ;;  %v6869_v25 = vld [vmem:[%s8135_s11 + $0x90] sm:$0xff] (!%p6211_p5)  }
 0x386   : > { %v6210_v23 = vcombine.high %v2785_v33, %v2789_v34  ;;  %v6209_v39 = vcombine.low %v2785_v33, %v2789_v34  ;;  %v6870_v26 = vld [vmem:[%s8135_s11 + $0x58] sm:$0xff] (!%p6211_p5)   ;;  %v6879_v33 = vld [vmem:[%s8135_s11 + $0x28] sm:$0xff] (!%p6211_p5)  }
 0x387   : > { %v6871_v27 = vld [vmem:[%s8135_s11 + $0x18] sm:$0xff] (!%p6211_p5)   ;;  %v6880_v34 = vld [vmem:[%s8135_s11 + $0xe8] sm:$0xff] (!%p6211_p5)  }
 0x388   : > { %4319 = vmatpush1.bf16.msra.mxu0 %v6143_v40  ;;  %4401 = vmatpush1.bf16.msra.mxu1 %v6145_v41  ;;  %v6949_v40 = vmov 1983009808   ;;  %v6872_v28 = vld [vmem:[%s8135_s11 + $0xd8] sm:$0xff] (!%p6211_p5)  }
 0x389   : > { %4320 = vmatprep.subr.bf16.mxu0 %v6152_v55  ;;  %4402 = vmatprep.subr.bf16.mxu1 %v6154_v42  ;;  %v4438_v41 = vunpack.c.l.s4 %v6949_v40  ;;  %v7811_v40 = vsub.s32 (!%p6211_p5), 1, %v7443_v22 }
 0x38b   : > { %v4439_v55 = vunpack.c.0.s8 %v4438_v41  ;;  %v6886_v41 = vld [vmem:[%s8135_s11 + $0x78] sm:$0xff] (!%p6211_p5)  }
 0x38c   : > { %4321 = vmatpush1.bf16.msra.mxu0 %v6151_v47  ;;  %4403 = vmatpush1.bf16.msra.mxu1 %v6153_v48 }
 0x38d   : > { %4322 = vmatprep.subr.bf16.mxu0 %v6160_v49  ;;  %4404 = vmatprep.subr.bf16.mxu1 %v6162_v50  ;;  %v7716_v43 = vsub.s32 %v4439_v55, %v7443_v22  ;;  %v7817_v55 = vsub.s32 (!%p6211_p5), 2, %v7443_v22 }
 0x390   : > { %4323 = vmatpush1.bf16.msra.mxu0 %v6159_v56  ;;  %4405 = vmatpush1.bf16.msra.mxu1 %v6161_v57 }
 0x391   : > { %4324 = vmatprep.subr.bf16.mxu0 %v6168_v58  ;;  %4406 = vmatprep.subr.bf16.mxu1 %v6170_v60 }
 0x394   : > { %4325 = vmatpush1.bf16.msra.mxu0 %v6167_v11  ;;  %4407 = vmatpush1.bf16.msra.mxu1 %v6169_v3 }
 0x395   : > { %4326 = vmatprep.subr.bf16.mxu0 %v6176_v5  ;;  %4408 = vmatprep.subr.bf16.mxu1 %v6178_v6 }
 0x398   : > { %4327 = vmatpush1.bf16.msra.mxu0 %v6175_v10  ;;  %4409 = vmatpush1.bf16.msra.mxu1 %v6177_v12  ;;  %v6858_v12 = vld [vmem:[%s8135_s11 + $0x40] sm:$0xff] (!%p6211_p5)  }
 0x399   : > { %4328 = vmatprep.subr.bf16.mxu0 %v6184_v13  ;;  %4410 = vmatprep.subr.bf16.mxu1 %v6186_v14  ;;  %v6859_v13 = vld [vmem:[%s8135_s11] sm:$0xff] (!%p6211_p5)  }
 0x39a   : > { %v6860_v14 = vld [vmem:[%s8135_s11 + $0xc0] sm:$0xff] (!%p6211_p5)  }
 0x39c   : > { %4329 = vmatpush1.bf16.msra.mxu0 %v6183_v19  ;;  %4411 = vmatpush1.bf16.msra.mxu1 %v6185_v20  ;;  %v6865_v19 = vld [vmem:[%s8135_s11 + $0x88] sm:$0xff] (!%p6211_p5)   ;;  %v6866_v20 = vld [vmem:[%s8135_s11 + $0x50] sm:$0xff] (!%p6211_p5)  }
 0x39d   : > { %4330 = vmatprep.subr.bf16.mxu0 %v6192_v21  ;;  %4412 = vmatprep.subr.bf16.mxu1 %v6194_v24  ;;  %v6867_v21 = vld [vmem:[%s8135_s11 + $0x10] sm:$0xff] (!%p6211_p5)  }
 0x39e   : > { %v6868_v24 = vld [vmem:[%s8135_s11 + $0xd0] sm:$0xff] (!%p6211_p5)  }
 0x3a0   : > { %4331 = vmatpush1.bf16.msra.mxu0 %v6191_v29  ;;  %4413 = vmatpush1.bf16.msra.mxu1 %v6193_v30  ;;  %v6873_v29 = vld [vmem:[%s8135_s11 + $0x98] sm:$0xff] (!%p6211_p5)   ;;  %v6874_v30 = vld [vmem:[%s8135_s11 + $0x60] sm:$0xff] (!%p6211_p5)  }
 0x3a1   : > { %4332 = vmatprep.subr.bf16.mxu0 %v6200_v59  ;;  %4414 = vmatprep.subr.bf16.mxu1 %v6202_v63  ;;  %v6875_v59 = vld [vmem:[%s8135_s11 + $0x20] sm:$0xff] (!%p6211_p5)  }
 0x3a2   : > { %v6876_v63 = vld [vmem:[%s8135_s11 + $0xe0] sm:$0xff] (!%p6211_p5)  }
 0x3a4   : > { %4333 = vmatpush1.bf16.msra.mxu0 %v6199_v35  ;;  %4415 = vmatpush1.bf16.msra.mxu1 %v6201_v36  ;;  %v6881_v35 = vld [vmem:[%s8135_s11 + $0xa8] sm:$0xff] (!%p6211_p5)   ;;  %v6882_v36 = vld [vmem:[%s8135_s11 + $0x70] sm:$0xff] (!%p6211_p5)  }
 0x3a5   : > { %4334 = vmatprep.subr.bf16.mxu0 %v6208_v2  ;;  %4416 = vmatprep.subr.bf16.mxu1 %v6210_v23  ;;  %v6883_v2 = vld [vmem:[%s8135_s11 + $0x30] sm:$0xff] (!%p6211_p5)  }
 0x3a6   : > { %v6884_v23 = vld [vmem:[%s8135_s11 + $0xf0] sm:$0xff] (!%p6211_p5)  }
 0x3a8   : > { %4335 = vmatpush1.bf16.msra.mxu0 %v6207_v38  ;;  %4417 = vmatpush1.bf16.msra.mxu1 %v6209_v39  ;;  %v7805_v38 = vsub.s32 (!%p6211_p5), 0, %v7443_v22  ;;  %v6885_v39 = vld [vmem:[%s8135_s11 + $0xb0] sm:$0xff] (!%p6211_p5)  }
 0x3a9   : > { %6388 = vmatprep.subr.bf16.mxu0 (!%p6211_p5), %v6858_v12  ;;  %6410 = vmatprep.subr.bf16.mxu1 (!%p6211_p5), %v6860_v14 }
 0x3ab   : > { %4337 = vmatmul.mubr.bf16.vlgmr.msra.gmra.mrb[4].mxu0 %v7581_v62  ;;  %4419 = vmatmul.mubr.bf16.vlgmr.msra.gmra.mrb[4].mxu1 %v7581_v62 }
 0x3ac   : > { %6389 = vmatpush3.bf16.msra.mxu0 (!%p6211_p5), %v6859_v13  ;;  %6411 = vmatpush3.bf16.msra.mxu1 (!%p6211_p5), %v6861_v15 }
 0x3ad   : > { %6390 = vmatprep.subr.bf16.mxu0 (!%p6211_p5), %v6862_v16  ;;  %6412 = vmatprep.subr.bf16.mxu1 (!%p6211_p5), %v6864_v18 }
 0x3b0   : > { %6391 = vmatpush3.bf16.msra.mxu0 (!%p6211_p5), %v6863_v17  ;;  %6413 = vmatpush3.bf16.msra.mxu1 (!%p6211_p5), %v6865_v19 }
 0x3b1   : > { %6392 = vmatprep.subr.bf16.mxu0 (!%p6211_p5), %v6866_v20  ;;  %6414 = vmatprep.subr.bf16.mxu1 (!%p6211_p5), %v6868_v24 }
 0x3b4   : > { %6393 = vmatpush3.bf16.msra.mxu0 (!%p6211_p5), %v6867_v21  ;;  %6415 = vmatpush3.bf16.msra.mxu1 (!%p6211_p5), %v6869_v25 }
 0x3b5   : > { %6394 = vmatprep.subr.bf16.mxu0 (!%p6211_p5), %v6870_v26  ;;  %6416 = vmatprep.subr.bf16.mxu1 (!%p6211_p5), %v6872_v28 }
 0x3b8   : > { %6395 = vmatpush3.bf16.msra.mxu0 (!%p6211_p5), %v6871_v27  ;;  %6417 = vmatpush3.bf16.msra.mxu1 (!%p6211_p5), %v6873_v29 }
 0x3b9   : > { %6396 = vmatprep.subr.bf16.mxu0 (!%p6211_p5), %v6874_v30  ;;  %6418 = vmatprep.subr.bf16.mxu1 (!%p6211_p5), %v6876_v63 }
 0x3bc   : > { %6397 = vmatpush3.bf16.msra.mxu0 (!%p6211_p5), %v6875_v59  ;;  %6419 = vmatpush3.bf16.msra.mxu1 (!%p6211_p5), %v6877_v4 }
 0x3bd   : > { %6398 = vmatprep.subr.bf16.mxu0 (!%p6211_p5), %v6878_v32  ;;  %6420 = vmatprep.subr.bf16.mxu1 (!%p6211_p5), %v6880_v34 }
 0x3c0   : > { %6399 = vmatpush3.bf16.msra.mxu0 (!%p6211_p5), %v6879_v33  ;;  %6421 = vmatpush3.bf16.msra.mxu1 (!%p6211_p5), %v6881_v35 }
 0x3c1   : > { %6400 = vmatprep.subr.bf16.mxu0 (!%p6211_p5), %v6882_v36  ;;  %6422 = vmatprep.subr.bf16.mxu1 (!%p6211_p5), %v6884_v23 }
 0x3c4   : > { %6401 = vmatpush3.bf16.msra.mxu0 (!%p6211_p5), %v6883_v2  ;;  %6423 = vmatpush3.bf16.msra.mxu1 (!%p6211_p5), %v6885_v39 }
 0x3c5   : > { %6402 = vmatprep.subr.bf16.mxu0 (!%p6211_p5), %v6886_v41 }
 0x3fe   : > { %v4174_v42 = vpop.f32.mrb[0].mxu0  ;;  %v4256_v44 = vpop.f32.mrb[0].mxu1 }
 0x3ff   : > { %v4176_v45 = vpop.f32.mrb[1].mxu0  ;;  %v4258_v47 = vpop.f32.mrb[1].mxu1 }
 0x400   : > { %v4435_v46 = vcombine.low %v4174_v42, %v4176_v45  ;;  %v4178_v48 = vpop.f32.mrb[2].mxu0  ;;  %v4436_v49 = vcombine.low %v4256_v44, %v4258_v47  ;;  %v4260_v50 = vpop.f32.mrb[2].mxu1  ;;  %v6887_v42 = vld [vmem:[%s8135_s11 + $0x38] sm:$0xff] (!%p6211_p5)   ;;  %v7823_v44 = vsub.s32 (!%p6211_p5), 3, %v7443_v22  ;;  %v4481_v47 = vld [vmem:[%s8132_s8] sm:$0xff] (!%p6211_p5) }
 0x401   : > { %v4179_v51 = vpop.f32.mrb[3].mxu0  ;;  %v4261_v53 = vpop.f32.mrb[3].mxu1  ;;  %v6888_v45 = vld [vmem:[%s8135_s11 + $0xf8] sm:$0xff] (!%p6211_p5)   ;;  %6403 = vmatpush3.bf16.msra.mxu0 (!%p6211_p5), %v6887_v42  ;;  %v7835_v48 = vsub.s32 (!%p6211_p5), 4, %v7443_v22  ;;  %v4490_v50 = vrot.slane (!%p6211_p5), %v4481_v47, %v7811_v40 }
 0x402   : > { %v4443_v52 = vrot.slane %v4435_v46, %v7716_v43  ;;  %v4450_v62 = vrot.slane %v4436_v49, %v7716_v43  ;;  %v6889_v46 = vld [vmem:[%s8135_s11 + $0xb8] sm:$0xff] (!%p6211_p5)   ;;  %6424 = vmatprep.subr.bf16.mxu1 (!%p6211_p5), %v6888_v45  ;;  %v4486_v49 = vrot.slane (!%p6211_p5), %v4481_v47, %v7805_v38  ;;  %v4494_v51 = vrot.slane (!%p6211_p5), %v4481_v47, %v7817_v55  ;;  %v6890_v53 = vld [vmem:[%s8135_s11 + $0x140] sm:$0xff] (!%p6211_p5)  }
 0x403   : > { %6425 = vmatpush3.bf16.msra.mxu1 (!%p6211_p5), %v6889_v46  ;;  %6432 = vmatprep.subr.bf16.mxu0 (!%p6211_p5), %v6890_v53 }
 0x404   : > { %v4451_v56 = vcombine.low %v4443_v52, %v4450_v62  ;;  %v4498_v52 = vrot.slane (!%p6211_p5), %v4481_v47, %v7823_v44  ;;  %v7845_v62 = vsub.s32 (!%p6211_p5), 5, %v7443_v22 }
 0x406   : > { %v4471_v57 = vadd.f32 %v4451_v56, %v2529_v54  ;;  %v4515_v54 = vcombine.low (!%p6211_p5), %v4486_v49, %v4490_v50  ;;  %v4516_v56 = vcombine.low (!%p6211_p5), %v4494_v51, %v4498_v52 }
 0x408   : > { %4473 = vst [vmem:[#allocation4] sm:$0xff] %v4471_v57  ;;  %v6892_v57 = vld [vmem:[%s8135_s11 + $0x1c0] sm:$0xff] (!%p6211_p5)  }
 0x409   : > { %6454 = vmatprep.subr.bf16.mxu1 (!%p6211_p5), %v6892_v57 }
 0x47e   : > { %v4338_v58 = vpop.f32.mrb[4].mxu0  ;;  %v4420_v60 = vpop.f32.mrb[4].mxu1 }
 0x47f   : > { %v4340_v61 = vpop.f32.mrb[5].mxu0  ;;  %v4422_v31 = vpop.f32.mrb[5].mxu1 }
 0x480   : > { %v4452_v0 = vcombine.low %v4338_v58, %v4340_v61  ;;  %v4342_v1 = vpop.f32.mrb[6].mxu0  ;;  %v4453_v11 = vcombine.low %v4420_v60, %v4422_v31  ;;  %v4424_v3 = vpop.f32.mrb[6].mxu1  ;;  %v4523_v58 = vrot.slane (!%p6211_p5), %v4515_v54, %v7716_v43  ;;  %v4530_v60 = vrot.slane (!%p6211_p5), %v4516_v56, %v7716_v43 }
 0x481   : > { %v4343_v5 = vpop.f32.mrb[7].mxu0  ;;  %v4425_v7 = vpop.f32.mrb[7].mxu1  ;;  %v7853_v61 = vsub.s32 (!%p6211_p5), 6, %v7443_v22  ;;  %v4502_v31 = vrot.slane (!%p6211_p5), %v4481_v47, %v7835_v48  ;;  %v4506_v1 = vrot.slane (!%p6211_p5), %v4481_v47, %v7845_v62 }
 0x482   : > { %v4460_v6 = vrot.slane %v4452_v0, %v7716_v43  ;;  %v4467_v8 = vrot.slane %v4453_v11, %v7716_v43  ;;  %4478 = sbr.rel (%p6211_p5) target bundleno = 1478 (0x5c6), region = 80  ;;  %v4479_v0 = vld [vmem:[#allocation4] sm:$0xff] (!%p6211_p5)  ;;  %v7858_v11 = vsub.s32 (!%p6211_p5), 7, %v7443_v22  ;;  %v4531_v3 = vcombine.low (!%p6211_p5), %v4523_v58, %v4530_v60  ;;  %v7863_v5 = vld [vmem:[%s8133_s9] sm:$0xff] (!%p6211_p5) }
 0x483   : > { %v7870_v7 = vld [vmem:[%s8134_s10] sm:$0xff] (!%p6211_p5)  ;;  %v4510_v22 = vrot.slane (!%p6211_p5), %v4481_v47, %v7853_v61  ;;  %v4915_v14 = vrot.slane (!%p6211_p5), %v7863_v5, %v7811_v40  ;;  %v4919_v15 = vrot.slane (!%p6211_p5), %v7863_v5, %v7817_v55  ;;  %v4923_v16 = vrot.slane (!%p6211_p5), %v7863_v5, %v7823_v44 }
 0x484   : > { %v4468_v37 = vcombine.low %v4460_v6, %v4467_v8  ;;  %v7865_v6 = vadd.f32 (!%p6211_p5), %v4531_v3, %v4479_v0  ;;  %v4911_v8 = vrot.slane (!%p6211_p5), %v7863_v5, %v7805_v38  ;;  %v4982_v17 = vrot.slane (!%p6211_p5), %v7870_v7, %v7805_v38 }
 0x485   : > { %v4986_v18 = vrot.slane (!%p6211_p5), %v7870_v7, %v7811_v40 }
 0x486   : > { %v4472_v10 = vadd.f32 %v4468_v37, %v2530_v9  ;;  %v4514_v9 = vrot.slane (!%p6211_p5), %v4481_v47, %v7858_v11  ;;  %v7876_v37 = vcombine.low (!%p6211_p5), %v4502_v31, %v4506_v1  ;;  %v4564_v12 = vrot.slane (!%p6211_p5), %v7865_v6, %v7716_v43 }
 0x487   : > { %v4665_v13 = vmul.f32 (!%p6211_p5), %v7865_v6, %v7865_v6 }
 0x488   : > { %4474 = vst [vmem:[#allocation4 + $0x8] sm:$0xff] %v4472_v10  ;;  %v4557_v10 = vcombine.high (!%p6211_p5), %v7865_v6, %v7865_v6  ;;  %v4572_v20 = vcombine.high (!%p6211_p5), %v4564_v12, %v4564_v12  ;;  %v4600_v21 = vsel (!%p6211_p5), %vm4599_vm6, %v4564_v12, 0.0  ;;  %v7897_v27 = vcombine.low (!%p6211_p5), %v4510_v22, %v4514_v9 }
 0x489   : > { %v4669_v24 = vcombine.high %v4665_v13, %v4665_v13  ;;  %v4601_v25 = vrot.slane %v4600_v21, 4  ;;  %v4676_v26 = vrot.slane %v4665_v13, %v7716_v43  ;;  %v4540_v28 = vrot.slane %v7876_v37, %v7716_v43 }
 0x48a   : > { %v4571_v19 = vrot.slane %v4557_v10, %v7716_v43  ;;  %v4607_v30 = vsel %vm4599_vm6, %v4572_v20, 0.0 }
 0x48b   : > { %v4683_v63 = vrot.slane %v4669_v24, %v7716_v43  ;;  %v4602_v4 = vadd.f32 %v4601_v25, %v4600_v21  ;;  %v4608_v32 = vrot.slane %v4607_v30, 4  ;;  %v4684_v34 = vcombine.high %v4676_v26, %v4676_v26 }
 0x48c   : > { %v4573_v29 = vcombine.high %v4571_v19, %v4571_v19  ;;  %v4614_v59 = vsel %vm4599_vm6, %v4571_v19, 0.0  ;;  %v4711_v2 = vsel %vm4599_vm6, %v4676_v26, 0.0 }
 0x48d   : > { %v4615_v33 = vrot.slane %v4614_v59, 4  ;;  %v4685_v36 = vcombine.high %v4683_v63, %v4683_v63  ;;  %v4725_v23 = vsel %vm4599_vm6, %v4683_v63, 0.0  ;;  %v4603_v39 = vrot.slane %v4602_v4, 2 }
 0x48e   : > { %v4621_v35 = vsel %vm4599_vm6, %v4573_v29, 0.0  ;;  %v4609_v41 = vadd.f32 %v4608_v32, %v4607_v30  ;;  %v4712_v46 = vrot.slane %v4711_v2, 4  ;;  %v4718_v47 = vsel %vm4599_vm6, %v4684_v34, 0.0 }
 0x48f   : > { %v4616_v42 = vadd.f32 %v4615_v33, %v4614_v59  ;;  %v4622_v45 = vrot.slane %v4621_v35, 4  ;;  %v4726_v49 = vrot.slane %v4725_v23, 4  ;;  %v4732_v50 = vsel %vm4599_vm6, %v4685_v36, 0.0 }
 0x490   : > { %v4604_v51 = vadd.f32 %v4603_v39, %v4602_v4  ;;  %v4610_v52 = vrot.slane %v4609_v41, 2  ;;  %v4713_v56 = vadd.f32 %v4712_v46, %v4711_v2  ;;  %v4719_v57 = vrot.slane %v4718_v47, 4 }
 0x491   : > { %v4617_v53 = vrot.slane %v4616_v42, 2  ;;  %v4623_v54 = vadd.f32 %v4622_v45, %v4621_v35  ;;  %v4727_v58 = vadd.f32 %v4726_v49, %v4725_v23  ;;  %v4733_v60 = vrot.slane %v4732_v50, 4 }
 0x492   : > { %v4605_v0 = vrot.slane %v4604_v51, 1  ;;  %v4611_v31 = vadd.f32 %v4610_v52, %v4609_v41  ;;  %v4714_v22 = vrot.slane %v4713_v56, 2  ;;  %v4720_v9 = vadd.f32 %v4719_v57, %v4718_v47 }
 0x493   : > { %v4618_v1 = vadd.f32 %v4617_v53, %v4616_v42  ;;  %v4624_v3 = vrot.slane %v4623_v54, 2  ;;  %v4728_v10 = vrot.slane %v4727_v58, 2  ;;  %v4734_v12 = vadd.f32 %v4733_v60, %v4732_v50 }
 0x494   : > { %v4606_v13 = vadd.f32 %v4605_v0, %v4604_v51  ;;  %v4612_v19 = vrot.slane %v4611_v31, 1  ;;  %v4715_v24 = vadd.f32 %v4714_v22, %v4713_v56  ;;  %v4721_v25 = vrot.slane %v4720_v9, 2 }
 0x495   : > { %v4619_v20 = vrot.slane %v4618_v1, 1  ;;  %v4625_v21 = vadd.f32 %v4624_v3, %v4623_v54  ;;  %v4729_v26 = vadd.f32 %v4728_v10, %v4727_v58  ;;  %v4735_v29 = vrot.slane %v4734_v12, 2 }
 0x496   : > { %v4613_v30 = vadd.f32 %v4612_v19, %v4611_v31  ;;  %v4657_v4 = vmul.f32 0.5, %v4606_v13  ;;  %v4716_v32 = vrot.slane %v4715_v24, 1  ;;  %v4722_v33 = vadd.f32 %v4721_v25, %v4720_v9 }
 0x497   : > { %v4620_v59 = vadd.f32 %v4619_v20, %v4618_v1  ;;  %v4626_v63 = vrot.slane %v4625_v21, 1  ;;  %v4730_v34 = vrot.slane %v4729_v26, 1  ;;  %v4736_v35 = vadd.f32 %v4735_v29, %v4734_v12 }
 0x498   : > { %v4658_v2 = vmul.f32 0.5, %v4613_v30  ;;  %v4775_v39 = vmul.f32 %v4657_v4, %v4657_v4  ;;  %v4717_v41 = vadd.f32 %v4716_v32, %v4715_v24  ;;  %v4723_v42 = vrot.slane %v4722_v33, 1 }
 0x499   : > { %v4627_v36 = vadd.f32 %v4626_v63, %v4625_v21  ;;  %v4659_v23 = vmul.f32 0.5, %v4620_v59  ;;  %v4731_v45 = vadd.f32 %v4730_v34, %v4729_v26  ;;  %v4737_v46 = vrot.slane %v4736_v35, 1 }
 0x49a   : > { %v4776_v49 = vmul.f32 %v4658_v2, %v4658_v2  ;;  %v4547_v51 = vrot.slane %v7897_v27, %v7716_v43  ;;  %v4724_v52 = vadd.f32 %v4723_v42, %v4722_v33  ;;  %v4767_v54 = vmul.f32 0.5, %v4717_v41 }
 0x49b   : > { %v4660_v47 = vmul.f32 0.5, %v4627_v36  ;;  %v4777_v50 = vmul.f32 %v4659_v23, %v4659_v23  ;;  %v4738_v53 = vadd.f32 %v4737_v46, %v4736_v35  ;;  %v4769_v56 = vmul.f32 0.5, %v4731_v45 }
 0x49c   : > { %v4807_v58 = vcombine.low %v4657_v4, %v4658_v2  ;;  %v4940_v0 = vcombine.low %v4911_v8, %v4915_v14  ;;  %v4768_v31 = vmul.f32 0.5, %v4724_v52  ;;  %v4783_v3 = vsub.f32 %v4767_v54, %v4775_v39 }
 0x49d   : > { %v4778_v57 = vmul.f32 %v4660_v47, %v4660_v47  ;;  %v4808_v60 = vcombine.low %v4659_v23, %v4660_v47  ;;  %v4770_v1 = vmul.f32 0.5, %v4738_v53  ;;  %v4785_v22 = vsub.f32 %v4769_v56, %v4777_v50 }
 0x49e   : > { %v4941_v27 = vcombine.low %v4919_v15, %v4923_v16  ;;  %v4990_v9 = vrot.slane %v7870_v7, %v7817_v55  ;;  %v4994_v10 = vrot.slane %v7870_v7, %v7823_v44  ;;  %v4548_v8 = vcombine.low %v4540_v28, %v4547_v51  ;;  %v4480_v44 = vld [vmem:[#allocation4 + $0x8] sm:$0xff] }
 0x49f   : > { %v4784_v14 = vsub.f32 %v4768_v31, %v4776_v49  ;;  %v4786_v12 = vsub.f32 %v4770_v1, %v4778_v57  ;;  %v4791_v13 = vmax.f32 %v4783_v3, 0.0  ;;  %v4793_v19 = vmax.f32 %v4785_v22, 0.0 }
 0x4a0   : > { %v4815_v20 = vrot.slane %v4807_v58, %v7716_v43  ;;  %v4822_v21 = vrot.slane %v4808_v60, %v7716_v43  ;;  %v7938_v55 = vcombine.low %v4982_v17, %v4986_v18  ;;  %v4948_v24 = vrot.slane %v4940_v0, %v7716_v43 }
 0x4a1   : > { %v4792_v15 = vmax.f32 %v4784_v14, 0.0  ;;  %v4794_v37 = vmax.f32 %v4786_v12, 0.0  ;;  %v4845_v16 = vadd.f32 1e-05, %v4791_v13  ;;  %v4847_v28 = vadd.f32 1e-05, %v4793_v19 }
 0x4a2   : > { %v4955_v25 = vrot.slane %v4941_v27, %v7716_v43  ;;  %v7942_v26 = vadd.f32 %v4548_v8, %v4480_v44  ;;  %v7944_v40 = vcombine.low %v4990_v9, %v4994_v10  ;;  %v4823_v59 = vcombine.low %v4815_v20, %v4822_v21 }
 0x4a3   : > { %v4846_v29 = vadd.f32 1e-05, %v4792_v15  ;;  %v4848_v30 = vadd.f32 1e-05, %v4794_v37  ;;  %6922 = vrsqrt.f32 %v4845_v16  ;;  %v5019_v63 = vrot.slane %v7938_v55, %v7716_v43 }
 0x4a4   : > { %6924 = vrsqrt.f32 %v4847_v28  ;;  %v4574_v38 = vcombine.high %v7942_v26, %v7942_v26  ;;  %v4581_v17 = vrot.slane %v7942_v26, %v7716_v43  ;;  %v4666_v18 = vmul.f32 %v7942_v26, %v7942_v26 }
 0x4a5   : > { %6926 = vrsqrt.f32 %v4846_v29  ;;  %v7956_v34 = vcombine.low %v4948_v24, %v4955_v25  ;;  %v5026_v23 = vrot.slane %v7944_v40, %v7716_v43  ;;  %v4843_v50 = vsub.f32 %v7865_v6, %v4823_v59 }
 0x4a6   : > { %6928 = vrsqrt.f32 %v4848_v30  ;;  %v4588_v4 = vrot.slane %v4574_v38, %v7716_v43  ;;  %v4589_v32 = vcombine.high %v4581_v17, %v4581_v17  ;;  %v4628_v33 = vsel %vm4599_vm6, %v4581_v17, 0.0 }
 0x4a7   : > { %v4629_v35 = vrot.slane %v4628_v33, 4  ;;  %v4686_v36 = vcombine.high %v4666_v18, %v4666_v18  ;;  %v4693_v2 = vrot.slane %v4666_v18, %v7716_v43 }
 0x4a8   : > { %v4590_v39 = vcombine.high %v4588_v4, %v4588_v4  ;;  %v4635_v41 = vsel %vm4599_vm6, %v4589_v32, 0.0  ;;  %v4642_v42 = vsel %vm4599_vm6, %v4588_v4, 0.0 }
 0x4a9   : > { %v4630_v45 = vadd.f32 %v4629_v35, %v4628_v33  ;;  %v4636_v46 = vrot.slane %v4635_v41, 4  ;;  %v4643_v47 = vrot.slane %v4642_v42, 4  ;;  %v4700_v49 = vrot.slane %v4686_v36, %v7716_v43 }
 0x4aa   : > { %v4649_v51 = vsel %vm4599_vm6, %v4590_v39, 0.0  ;;  %v4701_v52 = vcombine.high %v4693_v2, %v4693_v2  ;;  %v4739_v53 = vsel %vm4599_vm6, %v4693_v2, 0.0 }
 0x4ab   : > { %v4631_v54 = vrot.slane %v4630_v45, 2  ;;  %v4637_v56 = vadd.f32 %v4636_v46, %v4635_v41  ;;  %v4644_v57 = vadd.f32 %v4643_v47, %v4642_v42  ;;  %v4650_v58 = vrot.slane %v4649_v51, 4 }
 0x4ac   : > { %v4702_v60 = vcombine.high %v4700_v49, %v4700_v49  ;;  %v4740_v0 = vrot.slane %v4739_v53, 4  ;;  %v4746_v31 = vsel %vm4599_vm6, %v4701_v52, 0.0  ;;  %v4753_v1 = vsel %vm4599_vm6, %v4700_v49, 0.0 }
 0x4ad   : > { %v6923_v3 = vpop.eup %6922  ;;  %v4632_v22 = vadd.f32 %v4631_v54, %v4630_v45  ;;  %v4638_v27 = vrot.slane %v4637_v56, 2  ;;  %v4645_v9 = vrot.slane %v4644_v57, 2  ;;  %v4651_v6 = vadd.f32 %v4650_v58, %v4649_v51 }
 0x4ae   : > { %v6925_v10 = vpop.eup %6924  ;;  %v4741_v8 = vadd.f32 %v4740_v0, %v4739_v53  ;;  %v4747_v14 = vrot.slane %v4746_v31, 4  ;;  %v4754_v12 = vrot.slane %v4753_v1, 4  ;;  %v4760_v13 = vsel %vm4599_vm6, %v4702_v60, 0.0 }
 0x4af   : > { %v6927_v19 = vpop.eup %6926  ;;  %v4633_v20 = vrot.slane %v4632_v22, 1  ;;  %v4639_v21 = vadd.f32 %v4638_v27, %v4637_v56  ;;  %v4646_v44 = vadd.f32 %v4645_v9, %v4644_v57  ;;  %v4652_v15 = vrot.slane %v4651_v6, 2 }
 0x4b0   : > { %v6929_v37 = vpop.eup %6928  ;;  %v4869_v16 = vcombine.low %v6923_v3, %v6927_v19  ;;  %v4742_v28 = vrot.slane %v4741_v8, 2  ;;  %v4748_v24 = vadd.f32 %v4747_v14, %v4746_v31  ;;  %v4755_v25 = vadd.f32 %v4754_v12, %v4753_v1 }
 0x4b1   : > { %v4870_v29 = vcombine.low %v6925_v10, %v6929_v37  ;;  %v4634_v30 = vadd.f32 %v4633_v20, %v4632_v22  ;;  %v4640_v40 = vrot.slane %v4639_v21, 1  ;;  %v4647_v38 = vrot.slane %v4646_v44, 1 }
 0x4b2   : > { %v4877_v17 = vrot.slane %v4869_v16, %v7716_v43  ;;  %v4653_v18 = vadd.f32 %v4652_v15, %v4651_v6  ;;  %v4743_v59 = vadd.f32 %v4742_v28, %v4741_v8  ;;  %v4749_v4 = vrot.slane %v4748_v24, 2 }
 0x4b3   : > { %v4884_v32 = vrot.slane %v4870_v29, %v7716_v43  ;;  %v4641_v33 = vadd.f32 %v4640_v40, %v4639_v21  ;;  %v4648_v35 = vadd.f32 %v4647_v38, %v4646_v44  ;;  %v7972_v36 = vmul.f32 0.5, %v4634_v30 }
 0x4b4   : > { %v4654_v2 = vrot.slane %v4653_v18, 1  ;;  %v4744_v39 = vrot.slane %v4743_v59, 1  ;;  %v4750_v41 = vadd.f32 %v4749_v4, %v4748_v24  ;;  %v4756_v42 = vrot.slane %v4755_v25, 2  ;;  %v6891_v4 = vld [vmem:[%s8135_s11 + $0x100] sm:$0xff]  }
 0x4b5   : > { %v4885_v45 = vcombine.low %v4877_v17, %v4884_v32  ;;  %v5027_v46 = vcombine.low %v5019_v63, %v5026_v23  ;;  %v7977_v47 = vmul.f32 0.5, %v4641_v33  ;;  %v4761_v49 = vrot.slane %v4760_v13, 4 }
 0x4b6   : > { %v7979_v51 = vmul.f32 0.5, %v4648_v35  ;;  %v4745_v52 = vadd.f32 %v4744_v39, %v4743_v59  ;;  %v4751_v53 = vrot.slane %v4750_v41, 1  ;;  %v4757_v54 = vadd.f32 %v4756_v42, %v4755_v25  ;;  %v6894_v35 = vld [vmem:[%s8135_s11 + $0x148] sm:$0xff]  }
 0x4b7   : > { %v4905_v56 = vmul.f32 %v4885_v45, %v4843_v50  ;;  %v4655_v57 = vadd.f32 %v4654_v2, %v4653_v18  ;;  %v4762_v58 = vadd.f32 %v4761_v49, %v4760_v13  ;;  %v4779_v60 = vmul.f32 %v7972_v36, %v7972_v36  ;;  %v6896_v42 = vld [vmem:[%s8135_s11 + $0x1c8] sm:$0xff]   ;;  %v6898_v49 = vld [vmem:[%s8135_s11 + $0x150] sm:$0xff]  }
 0x4b8   : > { %v4752_v0 = vadd.f32 %v4751_v53, %v4750_v41  ;;  %v4758_v31 = vrot.slane %v4757_v54, 1  ;;  %v4771_v1 = vmul.f32 0.5, %v4745_v52  ;;  %v4780_v55 = vmul.f32 %v7977_v47, %v7977_v47  ;;  %v6893_v41 = vld [vmem:[%s8135_s11 + $0x180] sm:$0xff]   ;;  %v6897_v52 = vld [vmem:[%s8135_s11 + $0x188] sm:$0xff]  }
 0x4b9   : > { %v4976_v63 = vmul.f32 %v7956_v34, %v4905_v56  ;;  %v4763_v23 = vrot.slane %v4762_v58, 2  ;;  %v4781_v27 = vmul.f32 %v7979_v51, %v7979_v51  ;;  %v7988_v6 = vmul.f32 0.5, %v4655_v57  ;;  %v6900_v56 = vld [vmem:[%s8135_s11 + $0x1d0] sm:$0xff]  }
 0x4ba   : > { %v4759_v3 = vadd.f32 %v4758_v31, %v4757_v54  ;;  %v4772_v22 = vmul.f32 0.5, %v4752_v0  ;;  %v4787_v50 = vsub.f32 %v4771_v1, %v4779_v60  ;;  %v4824_v53 = vcombine.low %v7972_v36, %v7977_v47  ;;  %v6902_v31 = vld [vmem:[%s8135_s11 + $0x158] sm:$0xff]  }
 0x4bb   : > { %v5047_v9 = vadd.f32 %v5027_v46, %v4976_v63  ;;  %v4764_v10 = vadd.f32 %v4763_v23, %v4762_v58  ;;  %v4782_v37 = vmul.f32 %v7988_v6, %v7988_v6  ;;  %v6895_v46 = vld [vmem:[%s8135_s11 + $0x108] sm:$0xff]   ;;  %v4825_v54 = vcombine.low %v7979_v51, %v7988_v6  ;;  %v6899_v58 = vld [vmem:[%s8135_s11 + $0x110] sm:$0xff]  }
 0x4bc   : > { %v4773_v8 = vmul.f32 0.5, %v4759_v3  ;;  %v4788_v14 = vsub.f32 %v4772_v22, %v4780_v55  ;;  %v4795_v12 = vmax.f32 %v4787_v50, 0.0  ;;  %v4927_v60 = vrot.slane %v7863_v5, %v7835_v48  ;;  %v6901_v63 = vld [vmem:[%s8135_s11 + $0x190] sm:$0xff]  }
 0x4bd   : > { %vm5049_vm7 = vcmp.gt.f32.partialorder %v5047_v9, 0.0  ;;  %v5051_v13 = vmul.f32 0.2, %v5047_v9  ;;  %v4765_v19 = vrot.slane %v4764_v10, 1  ;;  %v4931_v36 = vrot.slane %v7863_v5, %v7845_v62 }
 0x4be   : > { %v4789_v20 = vsub.f32 %v4773_v8, %v4781_v27  ;;  %v4796_v21 = vmax.f32 %v4788_v14, 0.0  ;;  %v4849_v34 = vadd.f32 1e-05, %v4795_v12  ;;  %v4935_v47 = vrot.slane %v7863_v5, %v7853_v61  ;;  %v6908_v12 = vld [vmem:[%s8135_s11 + $0x1e0] sm:$0xff]  }
 0x4bf   : > { %v5053_v44 = vsel %vm5049_vm7, %v5047_v9, %v5051_v13  ;;  %v4766_v15 = vadd.f32 %v4765_v19, %v4764_v10  ;;  %v4939_v51 = vrot.slane %v7863_v5, %v7858_v11  ;;  %v4998_v1 = vrot.slane %v7870_v7, %v7835_v48  ;;  %v6904_v48 = vld [vmem:[%s8135_s11 + $0x1d8] sm:$0xff]   ;;  %v6907_v13 = vld [vmem:[%s8135_s11 + $0x120] sm:$0xff]  }
 0x4c0   : > { %v5064_v16 = vrot.slane %v5053_v44, %v7716_v43  ;;  %v5057_v28 = vcombine.high %v5053_v44, %v5053_v44  ;;  %v4797_v24 = vmax.f32 %v4789_v20, 0.0  ;;  %v4850_v25 = vadd.f32 1e-05, %v4796_v21  ;;  %v6910_v44 = vld [vmem:[%s8135_s11 + $0x168] sm:$0xff]  }
 0x4c1   : > { %v4774_v29 = vmul.f32 0.5, %v4766_v15  ;;  %6930 = vrsqrt.f32 %v4849_v34  ;;  %v5002_v55 = vrot.slane %v7870_v7, %v7845_v62  ;;  %v4832_v23 = vrot.slane %v4824_v53, %v7716_v43  ;;  %v6903_v62 = vld [vmem:[%s8135_s11 + $0x118] sm:$0xff]   ;;  %v6909_v15 = vld [vmem:[%s8135_s11 + $0x1a0] sm:$0xff]  }
 0x4c2   : > { %v5072_v30 = vcombine.high %v5064_v16, %v5064_v16  ;;  %v5071_v40 = vrot.slane %v5057_v28, %v7716_v43  ;;  %v5099_v38 = vpack.c.bf16 %v5064_v16, %v5064_v16  ;;  %v4851_v18 = vadd.f32 1e-05, %v4797_v24 }
 0x4c3   : > { %v4790_v17 = vsub.f32 %v4774_v29, %v4782_v37  ;;  %6932 = vrsqrt.f32 %v4850_v25  ;;  %v4839_v5 = vrot.slane %v4825_v54, %v7716_v43  ;;  %v5006_v3 = vrot.slane %v7870_v7, %v7853_v61  ;;  %v6906_v61 = vld [vmem:[%s8135_s11 + $0x160] sm:$0xff]   ;;  %v6912_v25 = vld [vmem:[%s8135_s11 + $0x1e8] sm:$0xff]  }
 0x4c4   : > { %v5100_v59 = vpack.c.bf16 %v5072_v30, %v5072_v30  ;;  %v5073_v32 = vcombine.high %v5071_v40, %v5071_v40  ;;  %v5101_v33 = vpack.c.bf16 %v5071_v40, %v5071_v40  ;;  %6934 = vrsqrt.f32 %v4851_v18  ;;  %v6911_v29 = vld [vmem:[%s8135_s11 + $0x128] sm:$0xff]  }
 0x4c5   : > { %v4798_v2 = vmax.f32 %v4790_v17, 0.0  ;;  %v5010_v22 = vrot.slane %v7870_v7, %v7858_v11  ;;  %v4957_v50 = vcombine.low %v4927_v60, %v4931_v36  ;;  %v4958_v9 = vcombine.low %v4935_v47, %v4939_v51  ;;  %v6905_v11 = vld [vmem:[%s8135_s11 + $0x198] sm:$0xff]   ;;  %v6212_v51 = vld [vmem:[%s8136_s12] ss:$0 sm:$0xff] }
 0x4c6   : > { %5658 = vmatprep.mubr.bf16.mxu0 %v5100_v59  ;;  %v5102_v39 = vpack.c.bf16 %v5073_v32, %v5073_v32  ;;  %v4840_v7 = vcombine.low %v4832_v23, %v4839_v5  ;;  %v5028_v10 = vcombine.low %v4998_v1, %v5002_v55  ;;  %v6916_v59 = vld [vmem:[%s8135_s11 + $0x1f0] sm:$0xff]  }
 0x4c7   : > { %5659 = vmatmul.mubr.bf16.vlgmr.msra.gmra.mrb[0].mxu0 %v5099_v38  ;;  %v4852_v45 = vadd.f32 1e-05, %v4798_v2  ;;  %v5029_v8 = vcombine.low %v5006_v3, %v5010_v22  ;;  %v4965_v21 = vrot.slane %v4957_v50, %v7716_v43  ;;  %v4972_v34 = vrot.slane %v4958_v9, %v7716_v43  ;;  %v6913_v38 = vld [vmem:[%s8135_s11 + $0x1a8] sm:$0xff]  }
 0x4c8   : > { %6433 = vmatpush3.bf16.msra.mxu0 %v6891_v4  ;;  %5698 = vmatprep.mubr.bf16.mxu1 %v5102_v39  ;;  %v4844_v37 = vsub.f32 %v7942_v26, %v4840_v7  ;;  %v5036_v28 = vrot.slane %v5028_v10, %v7716_v43  ;;  %v6914_v26 = vld [vmem:[%s8135_s11 + $0x170] sm:$0xff]   ;;  %v6920_v39 = vld [vmem:[%s8135_s11 + $0x1f8] sm:$0xff]  }
 0x4c9   : > { %5699 = vmatmul.mubr.bf16.vlgmr.msra.gmra.mrb[0].mxu1 %v5101_v33  ;;  %6434 = vmatprep.subr.bf16.mxu0 %v6894_v35  ;;  %6936 = vrsqrt.f32 %v4852_v45  ;;  %v5043_v24 = vrot.slane %v5029_v8, %v7716_v43  ;;  %v4973_v40 = vcombine.low %v4965_v21, %v4972_v34  ;;  %v6915_v4 = vld [vmem:[%s8135_s11 + $0x130] sm:$0xff]   ;;  %v6918_v33 = vld [vmem:[%s8135_s11 + $0x178] sm:$0xff]  }
 0x4ca   : > { %6455 = vmatpush3.bf16.msra.mxu1 %v6893_v41  ;;  %v6917_v35 = vld [vmem:[%s8135_s11 + $0x1b0] sm:$0xff]   ;;  %v6919_v41 = vld [vmem:[%s8135_s11 + $0x138] sm:$0xff]  }
 0x4cb   : > { %6456 = vmatprep.subr.bf16.mxu1 %v6896_v42  ;;  %v6931_v57 = vpop.eup %6930  ;;  %v5044_v18 = vcombine.low %v5036_v28, %v5043_v24 }
 0x4cc   : > { %6435 = vmatpush3.bf16.msra.mxu0 %v6895_v46  ;;  %v6921_v46 = vld [vmem:[%s8135_s11 + $0x1b8] sm:$0xff]  }
 0x4cd   : > { %v6933_v0 = vpop.eup %6932  ;;  %6436 = vmatprep.subr.bf16.mxu0 %v6898_v49 }
 0x4ce   : > { %6457 = vmatpush3.bf16.msra.mxu1 %v6897_v52  ;;  %v4886_v27 = vcombine.low %v6931_v57, %v6933_v0  ;;  %v6935_v6 = vpop.eup %6934 }
 0x4cf   : > { %6458 = vmatprep.subr.bf16.mxu1 %v6900_v56 }
 0x4d0   : > { %6437 = vmatpush3.bf16.msra.mxu0 %v6899_v58  ;;  %v4894_v20 = vrot.slane %v4886_v27, %v7716_v43 }
 0x4d1   : > { %6438 = vmatprep.subr.bf16.mxu0 %v6902_v31 }
 0x4d2   : > { %6459 = vmatpush3.bf16.msra.mxu1 %v6901_v63 }
 0x4d3   : > { %v6937_v14 = vpop.eup %6936  ;;  %6460 = vmatprep.subr.bf16.mxu1 %v6904_v48 }
 0x4d4   : > { %6439 = vmatpush3.bf16.msra.mxu0 %v6903_v62  ;;  %v4887_v19 = vcombine.low %v6935_v6, %v6937_v14 }
 0x4d5   : > { %6440 = vmatprep.subr.bf16.mxu0 %v6906_v61 }
 0x4d6   : > { %6461 = vmatpush3.bf16.msra.mxu1 %v6905_v11  ;;  %v4901_v16 = vrot.slane %v4887_v19, %v7716_v43 }
 0x4d7   : > { %6462 = vmatprep.subr.bf16.mxu1 %v6908_v12 }
 0x4d8   : > { %6441 = vmatpush3.bf16.msra.mxu0 %v6907_v13  ;;  %v4902_v30 = vcombine.low %v4894_v20, %v4901_v16 }
 0x4d9   : > { %6442 = vmatprep.subr.bf16.mxu0 %v6910_v44 }
 0x4da   : > { %6463 = vmatpush3.bf16.msra.mxu1 %v6909_v15  ;;  %v4906_v17 = vmul.f32 %v4902_v30, %v4844_v37 }
 0x4db   : > { %6464 = vmatprep.subr.bf16.mxu1 %v6912_v25 }
 0x4dc   : > { %6443 = vmatpush3.bf16.msra.mxu0 %v6911_v29  ;;  %v4977_v32 = vmul.f32 %v4973_v40, %v4906_v17 }
 0x4dd   : > { %6444 = vmatprep.subr.bf16.mxu0 %v6914_v26 }
 0x4de   : > { %6465 = vmatpush3.bf16.msra.mxu1 %v6913_v38  ;;  %v5048_v2 = vadd.f32 %v5044_v18, %v4977_v32 }
 0x4df   : > { %6466 = vmatprep.subr.bf16.mxu1 %v6916_v59 }
 0x4e0   : > { %6445 = vmatpush3.bf16.msra.mxu0 %v6915_v4  ;;  %vm5050_vm8 = vcmp.gt.f32.partialorder %v5048_v2, 0.0  ;;  %v5052_v42 = vmul.f32 0.2, %v5048_v2 }
 0x4e1   : > { %6446 = vmatprep.subr.bf16.mxu0 %v6918_v33 }
 0x4e2   : > { %6467 = vmatpush3.bf16.msra.mxu1 %v6917_v35  ;;  %v5054_v45 = vsel %vm5050_vm8, %v5048_v2, %v5052_v42 }
 0x4e3   : > { %6468 = vmatprep.subr.bf16.mxu1 %v6920_v39  ;;  %v5081_v49 = vrot.slane %v5054_v45, %v7716_v43  ;;  %v5074_v52 = vcombine.high %v5054_v45, %v5054_v45 }
 0x4e4   : > { %6447 = vmatpush3.bf16.msra.mxu0 %v6919_v41 }
 0x4e5   : > { %v5089_v53 = vcombine.high %v5081_v49, %v5081_v49  ;;  %v5088_v54 = vrot.slane %v5074_v52, %v7716_v43  ;;  %v5103_v56 = vpack.c.bf16 %v5081_v49, %v5081_v49 }
 0x4e6   : > { %6469 = vmatpush3.bf16.msra.mxu1 %v6921_v46 }
 0x4e7   : > { %v5104_v57 = vpack.c.bf16 %v5089_v53, %v5089_v53  ;;  %v5090_v58 = vcombine.high %v5088_v54, %v5088_v54  ;;  %v5105_v60 = vpack.c.bf16 %v5088_v54, %v5088_v54 }
 0x4e9   : > { %5738 = vmatprep.mubr.bf16.mxu0 %v5104_v57  ;;  %v5106_v36 = vpack.c.bf16 %v5090_v58, %v5090_v58 }
 0x4ea   : > { %5739 = vmatmul.mubr.bf16.vlgmr.msra.gmra.mrb[4].mxu0 %v5103_v56 }
 0x4eb   : > { %5778 = vmatprep.mubr.bf16.mxu1 %v5106_v36 }
 0x4ec   : > { %5779 = vmatmul.mubr.bf16.vlgmr.msra.gmra.mrb[4].mxu1 %v5105_v60 }
 0x59a   : > { %v6404_v47 = vpop.f32.mrb[0].mxu0 }
 0x59b   : > { %v6405_v0 = vpop.f32.mrb[1].mxu0 }
 0x59c   : > { %v6406_v31 = vadd.f32 %v6405_v0, %v6404_v47  ;;  %v6407_v1 = vpop.f32.mrb[2].mxu0  ;;  %v6426_v55 = vpop.f32.mrb[0].mxu1 }
 0x59d   : > { %v6408_v43 = vpop.f32.mrb[3].mxu0  ;;  %v6427_v63 = vpop.f32.mrb[1].mxu1 }
 0x59e   : > { %v5661_v23 = vadd.f32 %v6406_v31, %v6212_v51  ;;  %v6428_v5 = vadd.f32 %v6427_v63, %v6426_v55  ;;  %v6429_v3 = vpop.f32.mrb[2].mxu1 }
 0x59f   : > { %v6430_v22 = vpop.f32.mrb[3].mxu1 }
 0x5a0   : > { %v5701_v48 = vadd.f32 %v6428_v5, %v5661_v23 }
 0x5bd   : > { %v6448_v62 = vpop.f32.mrb[4].mxu0 }
 0x5be   : > { %v6449_v27 = vpop.f32.mrb[5].mxu0 }
 0x5bf   : > { %v6450_v50 = vadd.f32 %v6449_v27, %v6448_v62  ;;  %v6451_v9 = vpop.f32.mrb[6].mxu0  ;;  %v6470_v6 = vpop.f32.mrb[4].mxu1 }
 0x5c0   : > { %v6452_v61 = vpop.f32.mrb[7].mxu0  ;;  %v6471_v11 = vpop.f32.mrb[5].mxu1 }
 0x5c1   : > { %v5741_v7 = vadd.f32 %v6450_v50, %v5701_v48  ;;  %v6472_v10 = vadd.f32 %v6471_v11, %v6470_v6  ;;  %v6473_v8 = vpop.f32.mrb[6].mxu1 }
 0x5c2   : > { %v6474_v14 = vpop.f32.mrb[7].mxu1 }
 0x5c3   : > { %v5781_v12 = vadd.f32 %v6472_v10, %v5741_v7 }
 0x5c5   : > { %5786 = vst [vmem:[%s8137_s13] sm:$0x3] %v5781_v12 }
 0x5c6 PF: > { %s23_s25 = sadd.s32 1, %s6944_s25  }
 0x5c7   : > { %p20_p6 = scmp.ge.s32.totalorder %s23_s25, 6  }
 0x5c9   :  { %22 = sbr.rel (!%p20_p6) target bundleno = 1 (0x1), region = 117 }

</bundles_post_ra>
